<compile_context>
chip_gen: v7x
topology: tpu7x:2x2x1
jax: 0.10.0
libtpu: 0.0.40
codegen_flags: <defaults>
</compile_context>

<pallas_src>
import functools

import jax
import jax.numpy as jnp
from jax.experimental import pallas as pl
from jax.experimental.pallas import tpu as pltpu

EPS = 1e-5


def res2d_kernel(x_ref, w1_ref, b1_ref, g1_ref, be1_ref,
                 w2_ref, b2_ref, g2_ref, be2_ref, o_ref,
                 *, n, c, h, w, batch_norm):
    """All refs hold the (N, C, H*W) lane-dense layout.

    x_ref   : (N, C, H*W) f32
    w*_ref  : (9*C, C, 1) f32, [tap*C + ci, co, 0] = W[ky, kx, ci, co]
    b*/g*/be*_ref : (C, 1) f32 per-channel vectors
    o_ref   : (N, C, H*W) f32
    """
    hw = h * w

    # Flat spatial coordinate on the lane axis; border masks are shared by
    # both convolutions (computed once).
    lane = jax.lax.broadcasted_iota(jnp.int32, (1, 1, hw), 2)
    col = lane % w
    left_ok = col >= 1             # tap reads x-1
    right_ok = col < (w - 1)       # tap reads x+1
    top_ok = lane >= w             # tap reads y-1
    bot_ok = lane < (h - 1) * w    # tap reads y+1

    def conv3x3(v, wv_ref, b_ref, add_bias):
        # Column-shifted, border-masked copies of the input, shared by all
        # three kernel rows:  u[kx][q] = v[q + (kx-1)]  (zero outside row).
        u = (
            jnp.where(left_ok, pltpu.roll(v, 1, axis=2), 0.0),
            v,
            jnp.where(right_ok, pltpu.roll(v, hw - 1, axis=2), 0.0),
        )
        # Per-input-channel slabs (N, 1, HW) of each shifted copy.
        uc = [[uk[:, ci:ci + 1, :] for ci in range(c)] for uk in u]

        def mix(tap, kx):
            # Channel mix for one tap on the VPU:
            #   (C,1) output-channel weight column x (N,1,HW) channel slab.
            m = wv_ref[tap * c + 0] * uc[kx][0]
            for ci in range(1, c):
                m = m + wv_ref[tap * c + ci] * uc[kx][ci]
            return m

        def row(ky):
            r = mix(ky * 3 + 0, 0)
            r = r + mix(ky * 3 + 1, 1)
            r = r + mix(ky * 3 + 2, 2)
            return r

        acc = row(1)                                             # ky = 1
        acc = acc + jnp.where(top_ok, pltpu.roll(row(0), w, axis=2), 0.0)
        acc = acc + jnp.where(bot_ok, pltpu.roll(row(2), hw - w, axis=2), 0.0)
        if add_bias:
            acc = acc + b_ref[...]
        return acc

    def bnorm(v, g_ref, be_ref):
        # Training-mode BN: per-channel biased statistics over (N, H, W).
        inv_cnt = 1.0 / (n * hw)
        mean = jnp.sum(jnp.sum(v, axis=2, keepdims=True),
                       axis=0, keepdims=True) * inv_cnt            # (1, C, 1)
        cen = v - mean
        var = jnp.sum(jnp.sum(cen * cen, axis=2, keepdims=True),
                      axis=0, keepdims=True) * inv_cnt             # (1, C, 1)
        scale = jax.lax.rsqrt(var + EPS) * g_ref[...]   # gamma folded (tiny)
        return cen * scale + be_ref[...]

    x = x_ref[...]
    # Conv bias is a per-channel constant over the BN reduction axes, so it
    # cancels exactly in training-mode BN -> only add it when BN is disabled.
    out = conv3x3(x, w1_ref, b1_ref, add_bias=not batch_norm)
    if batch_norm:
        out = bnorm(out, g1_ref, be1_ref)
    out = jnp.maximum(out, 0.0)
    out = conv3x3(out, w2_ref, b2_ref, add_bias=not batch_norm)
    if batch_norm:
        out = bnorm(out, g2_ref, be2_ref)
    o_ref[...] = x + out


def res2d_forward(x_nchw, params, *, batch_norm=True):
    """Pallas implementation. x_nchw: (N, C, H, W) float32, returns NCHW."""
    w1, b1, g1, be1, w2, b2, g2, be2 = params
    N, C, H, W = x_nchw.shape
    Cout = w1.shape[-1]
    assert C == Cout, "residual add requires in_channels == out_channels"
    HW = H * W

    # Free reshape (no transpose): channels stay a leading dim, spatial is
    # flattened onto the 128-lane axis (256 lanes -> lane-dense stores).
    x = jnp.asarray(x_nchw, jnp.float32).reshape(N, C, HW)

    def build_w(wk):
        # (3, 3, Cin, Cout) HWIO -> (9*C, C, 1): one (C,1) output-channel
        # weight column per (tap, input-channel).
        return jnp.asarray(wk, jnp.float32).reshape(9 * C, C, 1)

    def per_chan(v):
        return jnp.asarray(v, jnp.float32).reshape(C, 1)

    inputs = (
        x,
        build_w(w1), per_chan(b1), per_chan(g1), per_chan(be1),
        build_w(w2), per_chan(b2), per_chan(g2), per_chan(be2),
    )

    def full_spec(shape):
        nd = len(shape)
        return pl.BlockSpec(shape, lambda i, _nd=nd: (0,) * _nd)

    kernel = functools.partial(res2d_kernel, n=N, c=C, h=H, w=W,
                               batch_norm=batch_norm)

    out = pl.pallas_call(
        kernel,
        out_shape=jax.ShapeDtypeStruct((N, C, HW), jnp.float32),
        grid=(1,),
        in_specs=[full_spec(a.shape) for a in inputs],
        out_specs=full_spec((N, C, HW)),
        compiler_params=pltpu.CompilerParams(
            dimension_semantics=("arbitrary",)),
    )(*inputs)
    return out.reshape(N, C, H, W)


def res2d_reference(x_nchw, params, *, batch_norm=True):
    """Pure-JAX reference with the same semantics (training-mode BN)."""
    w1, b1, g1, be1, w2, b2, g2, be2 = params
    x = jnp.asarray(x_nchw, jnp.float32)

    def conv(v, wk, b):
        y = jax.lax.conv_general_dilated(
            v, jnp.asarray(wk, jnp.float32), (1, 1), "SAME",
            dimension_numbers=("NCHW", "HWIO", "NCHW"),
            precision=jax.lax.Precision.HIGHEST)
        return y + jnp.asarray(b, jnp.float32)[None, :, None, None]

    def bn(v, g, be):
        mean = v.mean(axis=(0, 2, 3), keepdims=True)
        var = v.var(axis=(0, 2, 3), keepdims=True)
        return ((v - mean) * jax.lax.rsqrt(var + EPS)
                * jnp.asarray(g, jnp.float32)[None, :, None, None]
                + jnp.asarray(be, jnp.float32)[None, :, None, None])

    out = conv(x, w1, b1)
    if batch_norm:
        out = bn(out, g1, be1)
    out = jnp.maximum(out, 0.0)
    out = conv(out, w2, b2)
    if batch_norm:
        out = bn(out, g2, be2)
    return x + out


if __name__ == "__main__":
    # cfg.model.in_channels == cfg.model.out_channels == 4, batch_norm == True
    N, C, H, W = 2, 4, 16, 16
    key = jax.random.PRNGKey(0)
    k_x, k_w1, k_b1, k_w2, k_b2 = jax.random.split(key, 5)

    x = jax.random.normal(k_x, (N, C, H, W), jnp.float32)  # NCHW like PyTorch

    # Conv2d-style init (uniform +/- 1/sqrt(fan_in)), HWIO layout.
    fan_in = C * 3 * 3
    bound = float(1.0 / (fan_in ** 0.5))
    w1 = jax.random.uniform(k_w1, (3, 3, C, C), jnp.float32, -bound, bound)
    b1 = jax.random.uniform(k_b1, (C,), jnp.float32, -bound, bound)
    w2 = jax.random.uniform(k_w2, (3, 3, C, C), jnp.float32, -bound, bound)
    b2 = jax.random.uniform(k_b2, (C,), jnp.float32, -bound, bound)
    # BatchNorm2d default init: gamma=1, beta=0.
    g1 = jnp.ones((C,), jnp.float32)
    be1 = jnp.zeros((C,), jnp.float32)
    g2 = jnp.ones((C,), jnp.float32)
    be2 = jnp.zeros((C,), jnp.float32)

    params = (w1, b1, g1, be1, w2, b2, g2, be2)

    y = res2d_forward(x, params, batch_norm=True)
    y = jax.block_until_ready(y)

    y_ref = res2d_reference(x, params, batch_norm=True)
    assert y.shape == (N, C, H, W)
    max_diff = float(jnp.max(jnp.abs(y - y_ref)))
    assert jnp.allclose(y, y_ref, atol=1e-4, rtol=1e-4), \
        f"max abs diff {max_diff}"

    print("KERNEL_OK")
</pallas_src>

<mosaic_0001>
module attributes {stable_mosaic.version = 11 : i64} {
  func.func @res2d_kernel(%arg0: i32, %arg1: memref<2x4x256xf32, #tpu.memory_space<vmem>>, %arg2: memref<36x4x1xf32, #tpu.memory_space<vmem>>, %arg3: memref<4x1xf32, #tpu.memory_space<vmem>>, %arg4: memref<4x1xf32, #tpu.memory_space<vmem>>, %arg5: memref<4x1xf32, #tpu.memory_space<vmem>>, %arg6: memref<36x4x1xf32, #tpu.memory_space<vmem>>, %arg7: memref<4x1xf32, #tpu.memory_space<vmem>>, %arg8: memref<4x1xf32, #tpu.memory_space<vmem>>, %arg9: memref<4x1xf32, #tpu.memory_space<vmem>>, %arg10: memref<2x4x256xf32, #tpu.memory_space<vmem>>) attributes {dimension_semantics = [#tpu.dimension_semantics<arbitrary>], iteration_bounds = array<i64: 1>, scalar_prefetch = 0 : i64, scratch_operands = 0 : i64, tpu.core_type = #tpu.core_type<tc>, window_params = [{pipeline_mode = #tpu.pipeline_mode<synchronous>, transform_indices = @transform_0, window_bounds = array<i64: 2, 4, 256>}, {pipeline_mode = #tpu.pipeline_mode<synchronous>, transform_indices = @transform_1, window_bounds = array<i64: 36, 4, 1>}, {pipeline_mode = #tpu.pipeline_mode<synchronous>, transform_indices = @transform_2, window_bounds = array<i64: 4, 1>}, {pipeline_mode = #tpu.pipeline_mode<synchronous>, transform_indices = @transform_3, window_bounds = array<i64: 4, 1>}, {pipeline_mode = #tpu.pipeline_mode<synchronous>, transform_indices = @transform_4, window_bounds = array<i64: 4, 1>}, {pipeline_mode = #tpu.pipeline_mode<synchronous>, transform_indices = @transform_5, window_bounds = array<i64: 36, 4, 1>}, {pipeline_mode = #tpu.pipeline_mode<synchronous>, transform_indices = @transform_6, window_bounds = array<i64: 4, 1>}, {pipeline_mode = #tpu.pipeline_mode<synchronous>, transform_indices = @transform_7, window_bounds = array<i64: 4, 1>}, {pipeline_mode = #tpu.pipeline_mode<synchronous>, transform_indices = @transform_8, window_bounds = array<i64: 4, 1>}, {pipeline_mode = #tpu.pipeline_mode<synchronous>, transform_indices = @transform_9, window_bounds = array<i64: 2, 4, 256>}]} {
    %0 = tpu.iota {dimensions = array<i32: 2>} : vector<1x1x256xi32>
    %c16_i32 = arith.constant 16 : i32
    %c0_i32 = arith.constant 0 : i32
    %1 = arith.cmpi eq, %c16_i32, %c0_i32 : i32
    %c1_i32 = arith.constant 1 : i32
    %2 = arith.select %1, %c1_i32, %c16_i32 : i32
    %3 = vector.broadcast %2 : i32 to vector<1x1x256xi32>
    %4 = arith.remsi %0, %3 : vector<1x1x256xi32>
    %c0_i32_0 = arith.constant 0 : i32
    %5 = vector.broadcast %c0_i32_0 : i32 to vector<1x1x256xi32>
    %6 = arith.cmpi ne, %4, %5 : vector<1x1x256xi32>
    %c0_i32_1 = arith.constant 0 : i32
    %7 = vector.broadcast %c0_i32_1 : i32 to vector<1x1x256xi32>
    %8 = arith.cmpi slt, %4, %7 : vector<1x1x256xi32>
    %c0_i32_2 = arith.constant 0 : i32
    %9 = arith.cmpi slt, %2, %c0_i32_2 : i32
    %10 = vector.broadcast %9 : i1 to vector<1x1x256xi1>
    %11 = vector.broadcast %10 : vector<1x1x256xi1> to vector<1x1x256xi1>
    %12 = arith.xori %8, %11 : vector<1x1x256xi1>
    %13 = arith.andi %12, %6 : vector<1x1x256xi1>
    %14 = vector.broadcast %2 : i32 to vector<1x1x256xi32>
    %15 = arith.addi %4, %14 : vector<1x1x256xi32>
    %16 = arith.select %13, %15, %4 : vector<1x1x256xi1>, vector<1x1x256xi32>
    %c1_i32_3 = arith.constant 1 : i32
    %17 = vector.broadcast %c1_i32_3 : i32 to vector<1x1x256xi32>
    %18 = arith.cmpi sge, %16, %17 : vector<1x1x256xi32>
    %c15_i32 = arith.constant 15 : i32
    %19 = vector.broadcast %c15_i32 : i32 to vector<1x1x256xi32>
    %20 = arith.cmpi slt, %16, %19 : vector<1x1x256xi32>
    %c16_i32_4 = arith.constant 16 : i32
    %21 = vector.broadcast %c16_i32_4 : i32 to vector<1x1x256xi32>
    %22 = arith.cmpi sge, %0, %21 : vector<1x1x256xi32>
    %c240_i32 = arith.constant 240 : i32
    %23 = vector.broadcast %c240_i32 : i32 to vector<1x1x256xi32>
    %24 = arith.cmpi slt, %0, %23 : vector<1x1x256xi32>
    %c0 = arith.constant 0 : index
    %c0_5 = arith.constant 0 : index
    %c0_6 = arith.constant 0 : index
    %25 = vector.load %arg1[%c0, %c0_5, %c0_6] : memref<2x4x256xf32, #tpu.memory_space<vmem>>, vector<2x4x256xf32>
    %c1_i32_7 = arith.constant 1 : i32
    %26 = tpu.dynamic_rotate %25 by %c1_i32_7 dim 2 : vector<2x4x256xf32>, i32 -> vector<2x4x256xf32>
    %cst = arith.constant 0.000000e+00 : f32
    %27 = vector.shape_cast %18 : vector<1x1x256xi1> to vector<1x1x256xi1>
    %28 = vector.broadcast %27 : vector<1x1x256xi1> to vector<2x4x256xi1>
    %29 = vector.broadcast %cst : f32 to vector<2x4x256xf32>
    %30 = arith.select %28, %26, %29 : vector<2x4x256xi1>, vector<2x4x256xf32>
    %c255_i32 = arith.constant 255 : i32
    %31 = tpu.dynamic_rotate %25 by %c255_i32 dim 2 : vector<2x4x256xf32>, i32 -> vector<2x4x256xf32>
    %cst_8 = arith.constant 0.000000e+00 : f32
    %32 = vector.shape_cast %20 : vector<1x1x256xi1> to vector<1x1x256xi1>
    %33 = vector.broadcast %32 : vector<1x1x256xi1> to vector<2x4x256xi1>
    %34 = vector.broadcast %cst_8 : f32 to vector<2x4x256xf32>
    %35 = arith.select %33, %31, %34 : vector<2x4x256xi1>, vector<2x4x256xf32>
    %36 = vector.extract_strided_slice %30 {offsets = [0, 0, 0], sizes = [2, 1, 256], strides = [1, 1, 1]} : vector<2x4x256xf32> to vector<2x1x256xf32>
    %37 = vector.extract_strided_slice %30 {offsets = [0, 1, 0], sizes = [2, 1, 256], strides = [1, 1, 1]} : vector<2x4x256xf32> to vector<2x1x256xf32>
    %38 = vector.extract_strided_slice %30 {offsets = [0, 2, 0], sizes = [2, 1, 256], strides = [1, 1, 1]} : vector<2x4x256xf32> to vector<2x1x256xf32>
    %39 = vector.extract_strided_slice %30 {offsets = [0, 3, 0], sizes = [2, 1, 256], strides = [1, 1, 1]} : vector<2x4x256xf32> to vector<2x1x256xf32>
    %40 = vector.extract_strided_slice %25 {offsets = [0, 0, 0], sizes = [2, 1, 256], strides = [1, 1, 1]} : vector<2x4x256xf32> to vector<2x1x256xf32>
    %41 = vector.extract_strided_slice %25 {offsets = [0, 1, 0], sizes = [2, 1, 256], strides = [1, 1, 1]} : vector<2x4x256xf32> to vector<2x1x256xf32>
    %42 = vector.extract_strided_slice %25 {offsets = [0, 2, 0], sizes = [2, 1, 256], strides = [1, 1, 1]} : vector<2x4x256xf32> to vector<2x1x256xf32>
    %43 = vector.extract_strided_slice %25 {offsets = [0, 3, 0], sizes = [2, 1, 256], strides = [1, 1, 1]} : vector<2x4x256xf32> to vector<2x1x256xf32>
    %44 = vector.extract_strided_slice %35 {offsets = [0, 0, 0], sizes = [2, 1, 256], strides = [1, 1, 1]} : vector<2x4x256xf32> to vector<2x1x256xf32>
    %45 = vector.extract_strided_slice %35 {offsets = [0, 1, 0], sizes = [2, 1, 256], strides = [1, 1, 1]} : vector<2x4x256xf32> to vector<2x1x256xf32>
    %46 = vector.extract_strided_slice %35 {offsets = [0, 2, 0], sizes = [2, 1, 256], strides = [1, 1, 1]} : vector<2x4x256xf32> to vector<2x1x256xf32>
    %47 = vector.extract_strided_slice %35 {offsets = [0, 3, 0], sizes = [2, 1, 256], strides = [1, 1, 1]} : vector<2x4x256xf32> to vector<2x1x256xf32>
    %c12 = arith.constant 12 : index
    %c0_9 = arith.constant 0 : index
    %c0_10 = arith.constant 0 : index
    %48 = vector.load %arg2[%c12, %c0_9, %c0_10] : memref<36x4x1xf32, #tpu.memory_space<vmem>>, vector<1x4x1xf32>
    %49 = vector.shape_cast %48 : vector<1x4x1xf32> to vector<4x1xf32>
    %50 = vector.shape_cast %49 : vector<4x1xf32> to vector<1x4x1xf32>
    %51 = vector.broadcast %50 : vector<1x4x1xf32> to vector<2x4x256xf32>
    %52 = vector.broadcast %36 : vector<2x1x256xf32> to vector<2x4x256xf32>
    %53 = arith.mulf %51, %52 : vector<2x4x256xf32>
    %c13 = arith.constant 13 : index
    %c0_11 = arith.constant 0 : index
    %c0_12 = arith.constant 0 : index
    %54 = vector.load %arg2[%c13, %c0_11, %c0_12] : memref<36x4x1xf32, #tpu.memory_space<vmem>>, vector<1x4x1xf32>
    %55 = vector.shape_cast %54 : vector<1x4x1xf32> to vector<4x1xf32>
    %56 = vector.shape_cast %55 : vector<4x1xf32> to vector<1x4x1xf32>
    %57 = vector.broadcast %56 : vector<1x4x1xf32> to vector<2x4x256xf32>
    %58 = vector.broadcast %37 : vector<2x1x256xf32> to vector<2x4x256xf32>
    %59 = arith.mulf %57, %58 : vector<2x4x256xf32>
    %60 = arith.addf %53, %59 : vector<2x4x256xf32>
    %c14 = arith.constant 14 : index
    %c0_13 = arith.constant 0 : index
    %c0_14 = arith.constant 0 : index
    %61 = vector.load %arg2[%c14, %c0_13, %c0_14] : memref<36x4x1xf32, #tpu.memory_space<vmem>>, vector<1x4x1xf32>
    %62 = vector.shape_cast %61 : vector<1x4x1xf32> to vector<4x1xf32>
    %63 = vector.shape_cast %62 : vector<4x1xf32> to vector<1x4x1xf32>
    %64 = vector.broadcast %63 : vector<1x4x1xf32> to vector<2x4x256xf32>
    %65 = vector.broadcast %38 : vector<2x1x256xf32> to vector<2x4x256xf32>
    %66 = arith.mulf %64, %65 : vector<2x4x256xf32>
    %67 = arith.addf %60, %66 : vector<2x4x256xf32>
    %c15 = arith.constant 15 : index
    %c0_15 = arith.constant 0 : index
    %c0_16 = arith.constant 0 : index
    %68 = vector.load %arg2[%c15, %c0_15, %c0_16] : memref<36x4x1xf32, #tpu.memory_space<vmem>>, vector<1x4x1xf32>
    %69 = vector.shape_cast %68 : vector<1x4x1xf32> to vector<4x1xf32>
    %70 = vector.shape_cast %69 : vector<4x1xf32> to vector<1x4x1xf32>
    %71 = vector.broadcast %70 : vector<1x4x1xf32> to vector<2x4x256xf32>
    %72 = vector.broadcast %39 : vector<2x1x256xf32> to vector<2x4x256xf32>
    %73 = arith.mulf %71, %72 : vector<2x4x256xf32>
    %74 = arith.addf %67, %73 : vector<2x4x256xf32>
    %c16 = arith.constant 16 : index
    %c0_17 = arith.constant 0 : index
    %c0_18 = arith.constant 0 : index
    %75 = vector.load %arg2[%c16, %c0_17, %c0_18] : memref<36x4x1xf32, #tpu.memory_space<vmem>>, vector<1x4x1xf32>
    %76 = vector.shape_cast %75 : vector<1x4x1xf32> to vector<4x1xf32>
    %77 = vector.shape_cast %76 : vector<4x1xf32> to vector<1x4x1xf32>
    %78 = vector.broadcast %77 : vector<1x4x1xf32> to vector<2x4x256xf32>
    %79 = vector.broadcast %40 : vector<2x1x256xf32> to vector<2x4x256xf32>
    %80 = arith.mulf %78, %79 : vector<2x4x256xf32>
    %c17 = arith.constant 17 : index
    %c0_19 = arith.constant 0 : index
    %c0_20 = arith.constant 0 : index
    %81 = vector.load %arg2[%c17, %c0_19, %c0_20] : memref<36x4x1xf32, #tpu.memory_space<vmem>>, vector<1x4x1xf32>
    %82 = vector.shape_cast %81 : vector<1x4x1xf32> to vector<4x1xf32>
    %83 = vector.shape_cast %82 : vector<4x1xf32> to vector<1x4x1xf32>
    %84 = vector.broadcast %83 : vector<1x4x1xf32> to vector<2x4x256xf32>
    %85 = vector.broadcast %41 : vector<2x1x256xf32> to vector<2x4x256xf32>
    %86 = arith.mulf %84, %85 : vector<2x4x256xf32>
    %87 = arith.addf %80, %86 : vector<2x4x256xf32>
    %c18 = arith.constant 18 : index
    %c0_21 = arith.constant 0 : index
    %c0_22 = arith.constant 0 : index
    %88 = vector.load %arg2[%c18, %c0_21, %c0_22] : memref<36x4x1xf32, #tpu.memory_space<vmem>>, vector<1x4x1xf32>
    %89 = vector.shape_cast %88 : vector<1x4x1xf32> to vector<4x1xf32>
    %90 = vector.shape_cast %89 : vector<4x1xf32> to vector<1x4x1xf32>
    %91 = vector.broadcast %90 : vector<1x4x1xf32> to vector<2x4x256xf32>
    %92 = vector.broadcast %42 : vector<2x1x256xf32> to vector<2x4x256xf32>
    %93 = arith.mulf %91, %92 : vector<2x4x256xf32>
    %94 = arith.addf %87, %93 : vector<2x4x256xf32>
    %c19 = arith.constant 19 : index
    %c0_23 = arith.constant 0 : index
    %c0_24 = arith.constant 0 : index
    %95 = vector.load %arg2[%c19, %c0_23, %c0_24] : memref<36x4x1xf32, #tpu.memory_space<vmem>>, vector<1x4x1xf32>
    %96 = vector.shape_cast %95 : vector<1x4x1xf32> to vector<4x1xf32>
    %97 = vector.shape_cast %96 : vector<4x1xf32> to vector<1x4x1xf32>
    %98 = vector.broadcast %97 : vector<1x4x1xf32> to vector<2x4x256xf32>
    %99 = vector.broadcast %43 : vector<2x1x256xf32> to vector<2x4x256xf32>
    %100 = arith.mulf %98, %99 : vector<2x4x256xf32>
    %101 = arith.addf %94, %100 : vector<2x4x256xf32>
    %102 = arith.addf %74, %101 : vector<2x4x256xf32>
    %c20 = arith.constant 20 : index
    %c0_25 = arith.constant 0 : index
    %c0_26 = arith.constant 0 : index
    %103 = vector.load %arg2[%c20, %c0_25, %c0_26] : memref<36x4x1xf32, #tpu.memory_space<vmem>>, vector<1x4x1xf32>
    %104 = vector.shape_cast %103 : vector<1x4x1xf32> to vector<4x1xf32>
    %105 = vector.shape_cast %104 : vector<4x1xf32> to vector<1x4x1xf32>
    %106 = vector.broadcast %105 : vector<1x4x1xf32> to vector<2x4x256xf32>
    %107 = vector.broadcast %44 : vector<2x1x256xf32> to vector<2x4x256xf32>
    %108 = arith.mulf %106, %107 : vector<2x4x256xf32>
    %c21 = arith.constant 21 : index
    %c0_27 = arith.constant 0 : index
    %c0_28 = arith.constant 0 : index
    %109 = vector.load %arg2[%c21, %c0_27, %c0_28] : memref<36x4x1xf32, #tpu.memory_space<vmem>>, vector<1x4x1xf32>
    %110 = vector.shape_cast %109 : vector<1x4x1xf32> to vector<4x1xf32>
    %111 = vector.shape_cast %110 : vector<4x1xf32> to vector<1x4x1xf32>
    %112 = vector.broadcast %111 : vector<1x4x1xf32> to vector<2x4x256xf32>
    %113 = vector.broadcast %45 : vector<2x1x256xf32> to vector<2x4x256xf32>
    %114 = arith.mulf %112, %113 : vector<2x4x256xf32>
    %115 = arith.addf %108, %114 : vector<2x4x256xf32>
    %c22 = arith.constant 22 : index
    %c0_29 = arith.constant 0 : index
    %c0_30 = arith.constant 0 : index
    %116 = vector.load %arg2[%c22, %c0_29, %c0_30] : memref<36x4x1xf32, #tpu.memory_space<vmem>>, vector<1x4x1xf32>
    %117 = vector.shape_cast %116 : vector<1x4x1xf32> to vector<4x1xf32>
    %118 = vector.shape_cast %117 : vector<4x1xf32> to vector<1x4x1xf32>
    %119 = vector.broadcast %118 : vector<1x4x1xf32> to vector<2x4x256xf32>
    %120 = vector.broadcast %46 : vector<2x1x256xf32> to vector<2x4x256xf32>
    %121 = arith.mulf %119, %120 : vector<2x4x256xf32>
    %122 = arith.addf %115, %121 : vector<2x4x256xf32>
    %c23 = arith.constant 23 : index
    %c0_31 = arith.constant 0 : index
    %c0_32 = arith.constant 0 : index
    %123 = vector.load %arg2[%c23, %c0_31, %c0_32] : memref<36x4x1xf32, #tpu.memory_space<vmem>>, vector<1x4x1xf32>
    %124 = vector.shape_cast %123 : vector<1x4x1xf32> to vector<4x1xf32>
    %125 = vector.shape_cast %124 : vector<4x1xf32> to vector<1x4x1xf32>
    %126 = vector.broadcast %125 : vector<1x4x1xf32> to vector<2x4x256xf32>
    %127 = vector.broadcast %47 : vector<2x1x256xf32> to vector<2x4x256xf32>
    %128 = arith.mulf %126, %127 : vector<2x4x256xf32>
    %129 = arith.addf %122, %128 : vector<2x4x256xf32>
    %130 = arith.addf %102, %129 : vector<2x4x256xf32>
    %c0_33 = arith.constant 0 : index
    %c0_34 = arith.constant 0 : index
    %c0_35 = arith.constant 0 : index
    %131 = vector.load %arg2[%c0_33, %c0_34, %c0_35] : memref<36x4x1xf32, #tpu.memory_space<vmem>>, vector<1x4x1xf32>
    %132 = vector.shape_cast %131 : vector<1x4x1xf32> to vector<4x1xf32>
    %133 = vector.shape_cast %132 : vector<4x1xf32> to vector<1x4x1xf32>
    %134 = vector.broadcast %133 : vector<1x4x1xf32> to vector<2x4x256xf32>
    %135 = vector.broadcast %36 : vector<2x1x256xf32> to vector<2x4x256xf32>
    %136 = arith.mulf %134, %135 : vector<2x4x256xf32>
    %c1 = arith.constant 1 : index
    %c0_36 = arith.constant 0 : index
    %c0_37 = arith.constant 0 : index
    %137 = vector.load %arg2[%c1, %c0_36, %c0_37] : memref<36x4x1xf32, #tpu.memory_space<vmem>>, vector<1x4x1xf32>
    %138 = vector.shape_cast %137 : vector<1x4x1xf32> to vector<4x1xf32>
    %139 = vector.shape_cast %138 : vector<4x1xf32> to vector<1x4x1xf32>
    %140 = vector.broadcast %139 : vector<1x4x1xf32> to vector<2x4x256xf32>
    %141 = vector.broadcast %37 : vector<2x1x256xf32> to vector<2x4x256xf32>
    %142 = arith.mulf %140, %141 : vector<2x4x256xf32>
    %143 = arith.addf %136, %142 : vector<2x4x256xf32>
    %c2 = arith.constant 2 : index
    %c0_38 = arith.constant 0 : index
    %c0_39 = arith.constant 0 : index
    %144 = vector.load %arg2[%c2, %c0_38, %c0_39] : memref<36x4x1xf32, #tpu.memory_space<vmem>>, vector<1x4x1xf32>
    %145 = vector.shape_cast %144 : vector<1x4x1xf32> to vector<4x1xf32>
    %146 = vector.shape_cast %145 : vector<4x1xf32> to vector<1x4x1xf32>
    %147 = vector.broadcast %146 : vector<1x4x1xf32> to vector<2x4x256xf32>
    %148 = vector.broadcast %38 : vector<2x1x256xf32> to vector<2x4x256xf32>
    %149 = arith.mulf %147, %148 : vector<2x4x256xf32>
    %150 = arith.addf %143, %149 : vector<2x4x256xf32>
    %c3 = arith.constant 3 : index
    %c0_40 = arith.constant 0 : index
    %c0_41 = arith.constant 0 : index
    %151 = vector.load %arg2[%c3, %c0_40, %c0_41] : memref<36x4x1xf32, #tpu.memory_space<vmem>>, vector<1x4x1xf32>
    %152 = vector.shape_cast %151 : vector<1x4x1xf32> to vector<4x1xf32>
    %153 = vector.shape_cast %152 : vector<4x1xf32> to vector<1x4x1xf32>
    %154 = vector.broadcast %153 : vector<1x4x1xf32> to vector<2x4x256xf32>
    %155 = vector.broadcast %39 : vector<2x1x256xf32> to vector<2x4x256xf32>
    %156 = arith.mulf %154, %155 : vector<2x4x256xf32>
    %157 = arith.addf %150, %156 : vector<2x4x256xf32>
    %c4 = arith.constant 4 : index
    %c0_42 = arith.constant 0 : index
    %c0_43 = arith.constant 0 : index
    %158 = vector.load %arg2[%c4, %c0_42, %c0_43] : memref<36x4x1xf32, #tpu.memory_space<vmem>>, vector<1x4x1xf32>
    %159 = vector.shape_cast %158 : vector<1x4x1xf32> to vector<4x1xf32>
    %160 = vector.shape_cast %159 : vector<4x1xf32> to vector<1x4x1xf32>
    %161 = vector.broadcast %160 : vector<1x4x1xf32> to vector<2x4x256xf32>
    %162 = vector.broadcast %40 : vector<2x1x256xf32> to vector<2x4x256xf32>
    %163 = arith.mulf %161, %162 : vector<2x4x256xf32>
    %c5 = arith.constant 5 : index
    %c0_44 = arith.constant 0 : index
    %c0_45 = arith.constant 0 : index
    %164 = vector.load %arg2[%c5, %c0_44, %c0_45] : memref<36x4x1xf32, #tpu.memory_space<vmem>>, vector<1x4x1xf32>
    %165 = vector.shape_cast %164 : vector<1x4x1xf32> to vector<4x1xf32>
    %166 = vector.shape_cast %165 : vector<4x1xf32> to vector<1x4x1xf32>
    %167 = vector.broadcast %166 : vector<1x4x1xf32> to vector<2x4x256xf32>
    %168 = vector.broadcast %41 : vector<2x1x256xf32> to vector<2x4x256xf32>
    %169 = arith.mulf %167, %168 : vector<2x4x256xf32>
    %170 = arith.addf %163, %169 : vector<2x4x256xf32>
    %c6 = arith.constant 6 : index
    %c0_46 = arith.constant 0 : index
    %c0_47 = arith.constant 0 : index
    %171 = vector.load %arg2[%c6, %c0_46, %c0_47] : memref<36x4x1xf32, #tpu.memory_space<vmem>>, vector<1x4x1xf32>
    %172 = vector.shape_cast %171 : vector<1x4x1xf32> to vector<4x1xf32>
    %173 = vector.shape_cast %172 : vector<4x1xf32> to vector<1x4x1xf32>
    %174 = vector.broadcast %173 : vector<1x4x1xf32> to vector<2x4x256xf32>
    %175 = vector.broadcast %42 : vector<2x1x256xf32> to vector<2x4x256xf32>
    %176 = arith.mulf %174, %175 : vector<2x4x256xf32>
    %177 = arith.addf %170, %176 : vector<2x4x256xf32>
    %c7 = arith.constant 7 : index
    %c0_48 = arith.constant 0 : index
    %c0_49 = arith.constant 0 : index
    %178 = vector.load %arg2[%c7, %c0_48, %c0_49] : memref<36x4x1xf32, #tpu.memory_space<vmem>>, vector<1x4x1xf32>
    %179 = vector.shape_cast %178 : vector<1x4x1xf32> to vector<4x1xf32>
    %180 = vector.shape_cast %179 : vector<4x1xf32> to vector<1x4x1xf32>
    %181 = vector.broadcast %180 : vector<1x4x1xf32> to vector<2x4x256xf32>
    %182 = vector.broadcast %43 : vector<2x1x256xf32> to vector<2x4x256xf32>
    %183 = arith.mulf %181, %182 : vector<2x4x256xf32>
    %184 = arith.addf %177, %183 : vector<2x4x256xf32>
    %185 = arith.addf %157, %184 : vector<2x4x256xf32>
    %c8 = arith.constant 8 : index
    %c0_50 = arith.constant 0 : index
    %c0_51 = arith.constant 0 : index
    %186 = vector.load %arg2[%c8, %c0_50, %c0_51] : memref<36x4x1xf32, #tpu.memory_space<vmem>>, vector<1x4x1xf32>
    %187 = vector.shape_cast %186 : vector<1x4x1xf32> to vector<4x1xf32>
    %188 = vector.shape_cast %187 : vector<4x1xf32> to vector<1x4x1xf32>
    %189 = vector.broadcast %188 : vector<1x4x1xf32> to vector<2x4x256xf32>
    %190 = vector.broadcast %44 : vector<2x1x256xf32> to vector<2x4x256xf32>
    %191 = arith.mulf %189, %190 : vector<2x4x256xf32>
    %c9 = arith.constant 9 : index
    %c0_52 = arith.constant 0 : index
    %c0_53 = arith.constant 0 : index
    %192 = vector.load %arg2[%c9, %c0_52, %c0_53] : memref<36x4x1xf32, #tpu.memory_space<vmem>>, vector<1x4x1xf32>
    %193 = vector.shape_cast %192 : vector<1x4x1xf32> to vector<4x1xf32>
    %194 = vector.shape_cast %193 : vector<4x1xf32> to vector<1x4x1xf32>
    %195 = vector.broadcast %194 : vector<1x4x1xf32> to vector<2x4x256xf32>
    %196 = vector.broadcast %45 : vector<2x1x256xf32> to vector<2x4x256xf32>
    %197 = arith.mulf %195, %196 : vector<2x4x256xf32>
    %198 = arith.addf %191, %197 : vector<2x4x256xf32>
    %c10 = arith.constant 10 : index
    %c0_54 = arith.constant 0 : index
    %c0_55 = arith.constant 0 : index
    %199 = vector.load %arg2[%c10, %c0_54, %c0_55] : memref<36x4x1xf32, #tpu.memory_space<vmem>>, vector<1x4x1xf32>
    %200 = vector.shape_cast %199 : vector<1x4x1xf32> to vector<4x1xf32>
    %201 = vector.shape_cast %200 : vector<4x1xf32> to vector<1x4x1xf32>
    %202 = vector.broadcast %201 : vector<1x4x1xf32> to vector<2x4x256xf32>
    %203 = vector.broadcast %46 : vector<2x1x256xf32> to vector<2x4x256xf32>
    %204 = arith.mulf %202, %203 : vector<2x4x256xf32>
    %205 = arith.addf %198, %204 : vector<2x4x256xf32>
    %c11 = arith.constant 11 : index
    %c0_56 = arith.constant 0 : index
    %c0_57 = arith.constant 0 : index
    %206 = vector.load %arg2[%c11, %c0_56, %c0_57] : memref<36x4x1xf32, #tpu.memory_space<vmem>>, vector<1x4x1xf32>
    %207 = vector.shape_cast %206 : vector<1x4x1xf32> to vector<4x1xf32>
    %208 = vector.shape_cast %207 : vector<4x1xf32> to vector<1x4x1xf32>
    %209 = vector.broadcast %208 : vector<1x4x1xf32> to vector<2x4x256xf32>
    %210 = vector.broadcast %47 : vector<2x1x256xf32> to vector<2x4x256xf32>
    %211 = arith.mulf %209, %210 : vector<2x4x256xf32>
    %212 = arith.addf %205, %211 : vector<2x4x256xf32>
    %213 = arith.addf %185, %212 : vector<2x4x256xf32>
    %c16_i32_58 = arith.constant 16 : i32
    %214 = tpu.dynamic_rotate %213 by %c16_i32_58 dim 2 : vector<2x4x256xf32>, i32 -> vector<2x4x256xf32>
    %cst_59 = arith.constant 0.000000e+00 : f32
    %215 = vector.shape_cast %22 : vector<1x1x256xi1> to vector<1x1x256xi1>
    %216 = vector.broadcast %215 : vector<1x1x256xi1> to vector<2x4x256xi1>
    %217 = vector.broadcast %cst_59 : f32 to vector<2x4x256xf32>
    %218 = arith.select %216, %214, %217 : vector<2x4x256xi1>, vector<2x4x256xf32>
    %219 = arith.addf %130, %218 : vector<2x4x256xf32>
    %c24 = arith.constant 24 : index
    %c0_60 = arith.constant 0 : index
    %c0_61 = arith.constant 0 : index
    %220 = vector.load %arg2[%c24, %c0_60, %c0_61] : memref<36x4x1xf32, #tpu.memory_space<vmem>>, vector<1x4x1xf32>
    %221 = vector.shape_cast %220 : vector<1x4x1xf32> to vector<4x1xf32>
    %222 = vector.shape_cast %221 : vector<4x1xf32> to vector<1x4x1xf32>
    %223 = vector.broadcast %222 : vector<1x4x1xf32> to vector<2x4x256xf32>
    %224 = vector.broadcast %36 : vector<2x1x256xf32> to vector<2x4x256xf32>
    %225 = arith.mulf %223, %224 : vector<2x4x256xf32>
    %c25 = arith.constant 25 : index
    %c0_62 = arith.constant 0 : index
    %c0_63 = arith.constant 0 : index
    %226 = vector.load %arg2[%c25, %c0_62, %c0_63] : memref<36x4x1xf32, #tpu.memory_space<vmem>>, vector<1x4x1xf32>
    %227 = vector.shape_cast %226 : vector<1x4x1xf32> to vector<4x1xf32>
    %228 = vector.shape_cast %227 : vector<4x1xf32> to vector<1x4x1xf32>
    %229 = vector.broadcast %228 : vector<1x4x1xf32> to vector<2x4x256xf32>
    %230 = vector.broadcast %37 : vector<2x1x256xf32> to vector<2x4x256xf32>
    %231 = arith.mulf %229, %230 : vector<2x4x256xf32>
    %232 = arith.addf %225, %231 : vector<2x4x256xf32>
    %c26 = arith.constant 26 : index
    %c0_64 = arith.constant 0 : index
    %c0_65 = arith.constant 0 : index
    %233 = vector.load %arg2[%c26, %c0_64, %c0_65] : memref<36x4x1xf32, #tpu.memory_space<vmem>>, vector<1x4x1xf32>
    %234 = vector.shape_cast %233 : vector<1x4x1xf32> to vector<4x1xf32>
    %235 = vector.shape_cast %234 : vector<4x1xf32> to vector<1x4x1xf32>
    %236 = vector.broadcast %235 : vector<1x4x1xf32> to vector<2x4x256xf32>
    %237 = vector.broadcast %38 : vector<2x1x256xf32> to vector<2x4x256xf32>
    %238 = arith.mulf %236, %237 : vector<2x4x256xf32>
    %239 = arith.addf %232, %238 : vector<2x4x256xf32>
    %c27 = arith.constant 27 : index
    %c0_66 = arith.constant 0 : index
    %c0_67 = arith.constant 0 : index
    %240 = vector.load %arg2[%c27, %c0_66, %c0_67] : memref<36x4x1xf32, #tpu.memory_space<vmem>>, vector<1x4x1xf32>
    %241 = vector.shape_cast %240 : vector<1x4x1xf32> to vector<4x1xf32>
    %242 = vector.shape_cast %241 : vector<4x1xf32> to vector<1x4x1xf32>
    %243 = vector.broadcast %242 : vector<1x4x1xf32> to vector<2x4x256xf32>
    %244 = vector.broadcast %39 : vector<2x1x256xf32> to vector<2x4x256xf32>
    %245 = arith.mulf %243, %244 : vector<2x4x256xf32>
    %246 = arith.addf %239, %245 : vector<2x4x256xf32>
    %c28 = arith.constant 28 : index
    %c0_68 = arith.constant 0 : index
    %c0_69 = arith.constant 0 : index
    %247 = vector.load %arg2[%c28, %c0_68, %c0_69] : memref<36x4x1xf32, #tpu.memory_space<vmem>>, vector<1x4x1xf32>
    %248 = vector.shape_cast %247 : vector<1x4x1xf32> to vector<4x1xf32>
    %249 = vector.shape_cast %248 : vector<4x1xf32> to vector<1x4x1xf32>
    %250 = vector.broadcast %249 : vector<1x4x1xf32> to vector<2x4x256xf32>
    %251 = vector.broadcast %40 : vector<2x1x256xf32> to vector<2x4x256xf32>
    %252 = arith.mulf %250, %251 : vector<2x4x256xf32>
    %c29 = arith.constant 29 : index
    %c0_70 = arith.constant 0 : index
    %c0_71 = arith.constant 0 : index
    %253 = vector.load %arg2[%c29, %c0_70, %c0_71] : memref<36x4x1xf32, #tpu.memory_space<vmem>>, vector<1x4x1xf32>
    %254 = vector.shape_cast %253 : vector<1x4x1xf32> to vector<4x1xf32>
    %255 = vector.shape_cast %254 : vector<4x1xf32> to vector<1x4x1xf32>
    %256 = vector.broadcast %255 : vector<1x4x1xf32> to vector<2x4x256xf32>
    %257 = vector.broadcast %41 : vector<2x1x256xf32> to vector<2x4x256xf32>
    %258 = arith.mulf %256, %257 : vector<2x4x256xf32>
    %259 = arith.addf %252, %258 : vector<2x4x256xf32>
    %c30 = arith.constant 30 : index
    %c0_72 = arith.constant 0 : index
    %c0_73 = arith.constant 0 : index
    %260 = vector.load %arg2[%c30, %c0_72, %c0_73] : memref<36x4x1xf32, #tpu.memory_space<vmem>>, vector<1x4x1xf32>
    %261 = vector.shape_cast %260 : vector<1x4x1xf32> to vector<4x1xf32>
    %262 = vector.shape_cast %261 : vector<4x1xf32> to vector<1x4x1xf32>
    %263 = vector.broadcast %262 : vector<1x4x1xf32> to vector<2x4x256xf32>
    %264 = vector.broadcast %42 : vector<2x1x256xf32> to vector<2x4x256xf32>
    %265 = arith.mulf %263, %264 : vector<2x4x256xf32>
    %266 = arith.addf %259, %265 : vector<2x4x256xf32>
    %c31 = arith.constant 31 : index
    %c0_74 = arith.constant 0 : index
    %c0_75 = arith.constant 0 : index
    %267 = vector.load %arg2[%c31, %c0_74, %c0_75] : memref<36x4x1xf32, #tpu.memory_space<vmem>>, vector<1x4x1xf32>
    %268 = vector.shape_cast %267 : vector<1x4x1xf32> to vector<4x1xf32>
    %269 = vector.shape_cast %268 : vector<4x1xf32> to vector<1x4x1xf32>
    %270 = vector.broadcast %269 : vector<1x4x1xf32> to vector<2x4x256xf32>
    %271 = vector.broadcast %43 : vector<2x1x256xf32> to vector<2x4x256xf32>
    %272 = arith.mulf %270, %271 : vector<2x4x256xf32>
    %273 = arith.addf %266, %272 : vector<2x4x256xf32>
    %274 = arith.addf %246, %273 : vector<2x4x256xf32>
    %c32 = arith.constant 32 : index
    %c0_76 = arith.constant 0 : index
    %c0_77 = arith.constant 0 : index
    %275 = vector.load %arg2[%c32, %c0_76, %c0_77] : memref<36x4x1xf32, #tpu.memory_space<vmem>>, vector<1x4x1xf32>
    %276 = vector.shape_cast %275 : vector<1x4x1xf32> to vector<4x1xf32>
    %277 = vector.shape_cast %276 : vector<4x1xf32> to vector<1x4x1xf32>
    %278 = vector.broadcast %277 : vector<1x4x1xf32> to vector<2x4x256xf32>
    %279 = vector.broadcast %44 : vector<2x1x256xf32> to vector<2x4x256xf32>
    %280 = arith.mulf %278, %279 : vector<2x4x256xf32>
    %c33 = arith.constant 33 : index
    %c0_78 = arith.constant 0 : index
    %c0_79 = arith.constant 0 : index
    %281 = vector.load %arg2[%c33, %c0_78, %c0_79] : memref<36x4x1xf32, #tpu.memory_space<vmem>>, vector<1x4x1xf32>
    %282 = vector.shape_cast %281 : vector<1x4x1xf32> to vector<4x1xf32>
    %283 = vector.shape_cast %282 : vector<4x1xf32> to vector<1x4x1xf32>
    %284 = vector.broadcast %283 : vector<1x4x1xf32> to vector<2x4x256xf32>
    %285 = vector.broadcast %45 : vector<2x1x256xf32> to vector<2x4x256xf32>
    %286 = arith.mulf %284, %285 : vector<2x4x256xf32>
    %287 = arith.addf %280, %286 : vector<2x4x256xf32>
    %c34 = arith.constant 34 : index
    %c0_80 = arith.constant 0 : index
    %c0_81 = arith.constant 0 : index
    %288 = vector.load %arg2[%c34, %c0_80, %c0_81] : memref<36x4x1xf32, #tpu.memory_space<vmem>>, vector<1x4x1xf32>
    %289 = vector.shape_cast %288 : vector<1x4x1xf32> to vector<4x1xf32>
    %290 = vector.shape_cast %289 : vector<4x1xf32> to vector<1x4x1xf32>
    %291 = vector.broadcast %290 : vector<1x4x1xf32> to vector<2x4x256xf32>
    %292 = vector.broadcast %46 : vector<2x1x256xf32> to vector<2x4x256xf32>
    %293 = arith.mulf %291, %292 : vector<2x4x256xf32>
    %294 = arith.addf %287, %293 : vector<2x4x256xf32>
    %c35 = arith.constant 35 : index
    %c0_82 = arith.constant 0 : index
    %c0_83 = arith.constant 0 : index
    %295 = vector.load %arg2[%c35, %c0_82, %c0_83] : memref<36x4x1xf32, #tpu.memory_space<vmem>>, vector<1x4x1xf32>
    %296 = vector.shape_cast %295 : vector<1x4x1xf32> to vector<4x1xf32>
    %297 = vector.shape_cast %296 : vector<4x1xf32> to vector<1x4x1xf32>
    %298 = vector.broadcast %297 : vector<1x4x1xf32> to vector<2x4x256xf32>
    %299 = vector.broadcast %47 : vector<2x1x256xf32> to vector<2x4x256xf32>
    %300 = arith.mulf %298, %299 : vector<2x4x256xf32>
    %301 = arith.addf %294, %300 : vector<2x4x256xf32>
    %302 = arith.addf %274, %301 : vector<2x4x256xf32>
    %c240_i32_84 = arith.constant 240 : i32
    %303 = tpu.dynamic_rotate %302 by %c240_i32_84 dim 2 : vector<2x4x256xf32>, i32 -> vector<2x4x256xf32>
    %cst_85 = arith.constant 0.000000e+00 : f32
    %304 = vector.shape_cast %24 : vector<1x1x256xi1> to vector<1x1x256xi1>
    %305 = vector.broadcast %304 : vector<1x1x256xi1> to vector<2x4x256xi1>
    %306 = vector.broadcast %cst_85 : f32 to vector<2x4x256xf32>
    %307 = arith.select %305, %303, %306 : vector<2x4x256xi1>, vector<2x4x256xf32>
    %308 = arith.addf %219, %307 : vector<2x4x256xf32>
    %cst_86 = arith.constant dense<0.000000e+00> : vector<2x4xf32>
    %309 = vector.multi_reduction <add>, %308, %cst_86 [2] : vector<2x4x256xf32> to vector<2x4xf32>
    %310 = vector.shape_cast %309 : vector<2x4xf32> to vector<2x4x1xf32>
    %cst_87 = arith.constant dense<0.000000e+00> : vector<4x1xf32>
    %311 = vector.multi_reduction <add>, %310, %cst_87 [0] : vector<2x4x1xf32> to vector<4x1xf32>
    %312 = vector.shape_cast %311 : vector<4x1xf32> to vector<1x4x1xf32>
    %cst_88 = arith.constant 0.001953125 : f32
    %313 = vector.broadcast %cst_88 : f32 to vector<1x4x1xf32>
    %314 = arith.mulf %312, %313 : vector<1x4x1xf32>
    %315 = vector.broadcast %314 : vector<1x4x1xf32> to vector<2x4x256xf32>
    %316 = arith.subf %308, %315 : vector<2x4x256xf32>
    %317 = arith.mulf %316, %316 : vector<2x4x256xf32>
    %cst_89 = arith.constant dense<0.000000e+00> : vector<2x4xf32>
    %318 = vector.multi_reduction <add>, %317, %cst_89 [2] : vector<2x4x256xf32> to vector<2x4xf32>
    %319 = vector.shape_cast %318 : vector<2x4xf32> to vector<2x4x1xf32>
    %cst_90 = arith.constant dense<0.000000e+00> : vector<4x1xf32>
    %320 = vector.multi_reduction <add>, %319, %cst_90 [0] : vector<2x4x1xf32> to vector<4x1xf32>
    %321 = vector.shape_cast %320 : vector<4x1xf32> to vector<1x4x1xf32>
    %cst_91 = arith.constant 0.001953125 : f32
    %322 = vector.broadcast %cst_91 : f32 to vector<1x4x1xf32>
    %323 = arith.mulf %321, %322 : vector<1x4x1xf32>
    %cst_92 = arith.constant 9.99999974E-6 : f32
    %324 = vector.broadcast %cst_92 : f32 to vector<1x4x1xf32>
    %325 = arith.addf %323, %324 : vector<1x4x1xf32>
    %326 = math.rsqrt %325 : vector<1x4x1xf32>
    %c0_93 = arith.constant 0 : index
    %c0_94 = arith.constant 0 : index
    %327 = vector.load %arg4[%c0_93, %c0_94] : memref<4x1xf32, #tpu.memory_space<vmem>>, vector<4x1xf32>
    %328 = vector.shape_cast %327 : vector<4x1xf32> to vector<1x4x1xf32>
    %329 = arith.mulf %326, %328 : vector<1x4x1xf32>
    %330 = vector.broadcast %329 : vector<1x4x1xf32> to vector<2x4x256xf32>
    %331 = arith.mulf %316, %330 : vector<2x4x256xf32>
    %c0_95 = arith.constant 0 : index
    %c0_96 = arith.constant 0 : index
    %332 = vector.load %arg5[%c0_95, %c0_96] : memref<4x1xf32, #tpu.memory_space<vmem>>, vector<4x1xf32>
    %333 = vector.shape_cast %332 : vector<4x1xf32> to vector<1x4x1xf32>
    %334 = vector.broadcast %333 : vector<1x4x1xf32> to vector<2x4x256xf32>
    %335 = arith.addf %331, %334 : vector<2x4x256xf32>
    %cst_97 = arith.constant 0.000000e+00 : f32
    %336 = vector.broadcast %cst_97 : f32 to vector<2x4x256xf32>
    %337 = arith.maximumf %335, %336 : vector<2x4x256xf32>
    %c1_i32_98 = arith.constant 1 : i32
    %338 = tpu.dynamic_rotate %337 by %c1_i32_98 dim 2 : vector<2x4x256xf32>, i32 -> vector<2x4x256xf32>
    %cst_99 = arith.constant 0.000000e+00 : f32
    %339 = vector.shape_cast %18 : vector<1x1x256xi1> to vector<1x1x256xi1>
    %340 = vector.broadcast %339 : vector<1x1x256xi1> to vector<2x4x256xi1>
    %341 = vector.broadcast %cst_99 : f32 to vector<2x4x256xf32>
    %342 = arith.select %340, %338, %341 : vector<2x4x256xi1>, vector<2x4x256xf32>
    %c255_i32_100 = arith.constant 255 : i32
    %343 = tpu.dynamic_rotate %337 by %c255_i32_100 dim 2 : vector<2x4x256xf32>, i32 -> vector<2x4x256xf32>
    %cst_101 = arith.constant 0.000000e+00 : f32
    %344 = vector.shape_cast %20 : vector<1x1x256xi1> to vector<1x1x256xi1>
    %345 = vector.broadcast %344 : vector<1x1x256xi1> to vector<2x4x256xi1>
    %346 = vector.broadcast %cst_101 : f32 to vector<2x4x256xf32>
    %347 = arith.select %345, %343, %346 : vector<2x4x256xi1>, vector<2x4x256xf32>
    %348 = vector.extract_strided_slice %342 {offsets = [0, 0, 0], sizes = [2, 1, 256], strides = [1, 1, 1]} : vector<2x4x256xf32> to vector<2x1x256xf32>
    %349 = vector.extract_strided_slice %342 {offsets = [0, 1, 0], sizes = [2, 1, 256], strides = [1, 1, 1]} : vector<2x4x256xf32> to vector<2x1x256xf32>
    %350 = vector.extract_strided_slice %342 {offsets = [0, 2, 0], sizes = [2, 1, 256], strides = [1, 1, 1]} : vector<2x4x256xf32> to vector<2x1x256xf32>
    %351 = vector.extract_strided_slice %342 {offsets = [0, 3, 0], sizes = [2, 1, 256], strides = [1, 1, 1]} : vector<2x4x256xf32> to vector<2x1x256xf32>
    %352 = vector.extract_strided_slice %337 {offsets = [0, 0, 0], sizes = [2, 1, 256], strides = [1, 1, 1]} : vector<2x4x256xf32> to vector<2x1x256xf32>
    %353 = vector.extract_strided_slice %337 {offsets = [0, 1, 0], sizes = [2, 1, 256], strides = [1, 1, 1]} : vector<2x4x256xf32> to vector<2x1x256xf32>
    %354 = vector.extract_strided_slice %337 {offsets = [0, 2, 0], sizes = [2, 1, 256], strides = [1, 1, 1]} : vector<2x4x256xf32> to vector<2x1x256xf32>
    %355 = vector.extract_strided_slice %337 {offsets = [0, 3, 0], sizes = [2, 1, 256], strides = [1, 1, 1]} : vector<2x4x256xf32> to vector<2x1x256xf32>
    %356 = vector.extract_strided_slice %347 {offsets = [0, 0, 0], sizes = [2, 1, 256], strides = [1, 1, 1]} : vector<2x4x256xf32> to vector<2x1x256xf32>
    %357 = vector.extract_strided_slice %347 {offsets = [0, 1, 0], sizes = [2, 1, 256], strides = [1, 1, 1]} : vector<2x4x256xf32> to vector<2x1x256xf32>
    %358 = vector.extract_strided_slice %347 {offsets = [0, 2, 0], sizes = [2, 1, 256], strides = [1, 1, 1]} : vector<2x4x256xf32> to vector<2x1x256xf32>
    %359 = vector.extract_strided_slice %347 {offsets = [0, 3, 0], sizes = [2, 1, 256], strides = [1, 1, 1]} : vector<2x4x256xf32> to vector<2x1x256xf32>
    %c12_102 = arith.constant 12 : index
    %c0_103 = arith.constant 0 : index
    %c0_104 = arith.constant 0 : index
    %360 = vector.load %arg6[%c12_102, %c0_103, %c0_104] : memref<36x4x1xf32, #tpu.memory_space<vmem>>, vector<1x4x1xf32>
    %361 = vector.shape_cast %360 : vector<1x4x1xf32> to vector<4x1xf32>
    %362 = vector.shape_cast %361 : vector<4x1xf32> to vector<1x4x1xf32>
    %363 = vector.broadcast %362 : vector<1x4x1xf32> to vector<2x4x256xf32>
    %364 = vector.broadcast %348 : vector<2x1x256xf32> to vector<2x4x256xf32>
    %365 = arith.mulf %363, %364 : vector<2x4x256xf32>
    %c13_105 = arith.constant 13 : index
    %c0_106 = arith.constant 0 : index
    %c0_107 = arith.constant 0 : index
    %366 = vector.load %arg6[%c13_105, %c0_106, %c0_107] : memref<36x4x1xf32, #tpu.memory_space<vmem>>, vector<1x4x1xf32>
    %367 = vector.shape_cast %366 : vector<1x4x1xf32> to vector<4x1xf32>
    %368 = vector.shape_cast %367 : vector<4x1xf32> to vector<1x4x1xf32>
    %369 = vector.broadcast %368 : vector<1x4x1xf32> to vector<2x4x256xf32>
    %370 = vector.broadcast %349 : vector<2x1x256xf32> to vector<2x4x256xf32>
    %371 = arith.mulf %369, %370 : vector<2x4x256xf32>
    %372 = arith.addf %365, %371 : vector<2x4x256xf32>
    %c14_108 = arith.constant 14 : index
    %c0_109 = arith.constant 0 : index
    %c0_110 = arith.constant 0 : index
    %373 = vector.load %arg6[%c14_108, %c0_109, %c0_110] : memref<36x4x1xf32, #tpu.memory_space<vmem>>, vector<1x4x1xf32>
    %374 = vector.shape_cast %373 : vector<1x4x1xf32> to vector<4x1xf32>
    %375 = vector.shape_cast %374 : vector<4x1xf32> to vector<1x4x1xf32>
    %376 = vector.broadcast %375 : vector<1x4x1xf32> to vector<2x4x256xf32>
    %377 = vector.broadcast %350 : vector<2x1x256xf32> to vector<2x4x256xf32>
    %378 = arith.mulf %376, %377 : vector<2x4x256xf32>
    %379 = arith.addf %372, %378 : vector<2x4x256xf32>
    %c15_111 = arith.constant 15 : index
    %c0_112 = arith.constant 0 : index
    %c0_113 = arith.constant 0 : index
    %380 = vector.load %arg6[%c15_111, %c0_112, %c0_113] : memref<36x4x1xf32, #tpu.memory_space<vmem>>, vector<1x4x1xf32>
    %381 = vector.shape_cast %380 : vector<1x4x1xf32> to vector<4x1xf32>
    %382 = vector.shape_cast %381 : vector<4x1xf32> to vector<1x4x1xf32>
    %383 = vector.broadcast %382 : vector<1x4x1xf32> to vector<2x4x256xf32>
    %384 = vector.broadcast %351 : vector<2x1x256xf32> to vector<2x4x256xf32>
    %385 = arith.mulf %383, %384 : vector<2x4x256xf32>
    %386 = arith.addf %379, %385 : vector<2x4x256xf32>
    %c16_114 = arith.constant 16 : index
    %c0_115 = arith.constant 0 : index
    %c0_116 = arith.constant 0 : index
    %387 = vector.load %arg6[%c16_114, %c0_115, %c0_116] : memref<36x4x1xf32, #tpu.memory_space<vmem>>, vector<1x4x1xf32>
    %388 = vector.shape_cast %387 : vector<1x4x1xf32> to vector<4x1xf32>
    %389 = vector.shape_cast %388 : vector<4x1xf32> to vector<1x4x1xf32>
    %390 = vector.broadcast %389 : vector<1x4x1xf32> to vector<2x4x256xf32>
    %391 = vector.broadcast %352 : vector<2x1x256xf32> to vector<2x4x256xf32>
    %392 = arith.mulf %390, %391 : vector<2x4x256xf32>
    %c17_117 = arith.constant 17 : index
    %c0_118 = arith.constant 0 : index
    %c0_119 = arith.constant 0 : index
    %393 = vector.load %arg6[%c17_117, %c0_118, %c0_119] : memref<36x4x1xf32, #tpu.memory_space<vmem>>, vector<1x4x1xf32>
    %394 = vector.shape_cast %393 : vector<1x4x1xf32> to vector<4x1xf32>
    %395 = vector.shape_cast %394 : vector<4x1xf32> to vector<1x4x1xf32>
    %396 = vector.broadcast %395 : vector<1x4x1xf32> to vector<2x4x256xf32>
    %397 = vector.broadcast %353 : vector<2x1x256xf32> to vector<2x4x256xf32>
    %398 = arith.mulf %396, %397 : vector<2x4x256xf32>
    %399 = arith.addf %392, %398 : vector<2x4x256xf32>
    %c18_120 = arith.constant 18 : index
    %c0_121 = arith.constant 0 : index
    %c0_122 = arith.constant 0 : index
    %400 = vector.load %arg6[%c18_120, %c0_121, %c0_122] : memref<36x4x1xf32, #tpu.memory_space<vmem>>, vector<1x4x1xf32>
    %401 = vector.shape_cast %400 : vector<1x4x1xf32> to vector<4x1xf32>
    %402 = vector.shape_cast %401 : vector<4x1xf32> to vector<1x4x1xf32>
    %403 = vector.broadcast %402 : vector<1x4x1xf32> to vector<2x4x256xf32>
    %404 = vector.broadcast %354 : vector<2x1x256xf32> to vector<2x4x256xf32>
    %405 = arith.mulf %403, %404 : vector<2x4x256xf32>
    %406 = arith.addf %399, %405 : vector<2x4x256xf32>
    %c19_123 = arith.constant 19 : index
    %c0_124 = arith.constant 0 : index
    %c0_125 = arith.constant 0 : index
    %407 = vector.load %arg6[%c19_123, %c0_124, %c0_125] : memref<36x4x1xf32, #tpu.memory_space<vmem>>, vector<1x4x1xf32>
    %408 = vector.shape_cast %407 : vector<1x4x1xf32> to vector<4x1xf32>
    %409 = vector.shape_cast %408 : vector<4x1xf32> to vector<1x4x1xf32>
    %410 = vector.broadcast %409 : vector<1x4x1xf32> to vector<2x4x256xf32>
    %411 = vector.broadcast %355 : vector<2x1x256xf32> to vector<2x4x256xf32>
    %412 = arith.mulf %410, %411 : vector<2x4x256xf32>
    %413 = arith.addf %406, %412 : vector<2x4x256xf32>
    %414 = arith.addf %386, %413 : vector<2x4x256xf32>
    %c20_126 = arith.constant 20 : index
    %c0_127 = arith.constant 0 : index
    %c0_128 = arith.constant 0 : index
    %415 = vector.load %arg6[%c20_126, %c0_127, %c0_128] : memref<36x4x1xf32, #tpu.memory_space<vmem>>, vector<1x4x1xf32>
    %416 = vector.shape_cast %415 : vector<1x4x1xf32> to vector<4x1xf32>
    %417 = vector.shape_cast %416 : vector<4x1xf32> to vector<1x4x1xf32>
    %418 = vector.broadcast %417 : vector<1x4x1xf32> to vector<2x4x256xf32>
    %419 = vector.broadcast %356 : vector<2x1x256xf32> to vector<2x4x256xf32>
    %420 = arith.mulf %418, %419 : vector<2x4x256xf32>
    %c21_129 = arith.constant 21 : index
    %c0_130 = arith.constant 0 : index
    %c0_131 = arith.constant 0 : index
    %421 = vector.load %arg6[%c21_129, %c0_130, %c0_131] : memref<36x4x1xf32, #tpu.memory_space<vmem>>, vector<1x4x1xf32>
    %422 = vector.shape_cast %421 : vector<1x4x1xf32> to vector<4x1xf32>
    %423 = vector.shape_cast %422 : vector<4x1xf32> to vector<1x4x1xf32>
    %424 = vector.broadcast %423 : vector<1x4x1xf32> to vector<2x4x256xf32>
    %425 = vector.broadcast %357 : vector<2x1x256xf32> to vector<2x4x256xf32>
    %426 = arith.mulf %424, %425 : vector<2x4x256xf32>
    %427 = arith.addf %420, %426 : vector<2x4x256xf32>
    %c22_132 = arith.constant 22 : index
    %c0_133 = arith.constant 0 : index
    %c0_134 = arith.constant 0 : index
    %428 = vector.load %arg6[%c22_132, %c0_133, %c0_134] : memref<36x4x1xf32, #tpu.memory_space<vmem>>, vector<1x4x1xf32>
    %429 = vector.shape_cast %428 : vector<1x4x1xf32> to vector<4x1xf32>
    %430 = vector.shape_cast %429 : vector<4x1xf32> to vector<1x4x1xf32>
    %431 = vector.broadcast %430 : vector<1x4x1xf32> to vector<2x4x256xf32>
    %432 = vector.broadcast %358 : vector<2x1x256xf32> to vector<2x4x256xf32>
    %433 = arith.mulf %431, %432 : vector<2x4x256xf32>
    %434 = arith.addf %427, %433 : vector<2x4x256xf32>
    %c23_135 = arith.constant 23 : index
    %c0_136 = arith.constant 0 : index
    %c0_137 = arith.constant 0 : index
    %435 = vector.load %arg6[%c23_135, %c0_136, %c0_137] : memref<36x4x1xf32, #tpu.memory_space<vmem>>, vector<1x4x1xf32>
    %436 = vector.shape_cast %435 : vector<1x4x1xf32> to vector<4x1xf32>
    %437 = vector.shape_cast %436 : vector<4x1xf32> to vector<1x4x1xf32>
    %438 = vector.broadcast %437 : vector<1x4x1xf32> to vector<2x4x256xf32>
    %439 = vector.broadcast %359 : vector<2x1x256xf32> to vector<2x4x256xf32>
    %440 = arith.mulf %438, %439 : vector<2x4x256xf32>
    %441 = arith.addf %434, %440 : vector<2x4x256xf32>
    %442 = arith.addf %414, %441 : vector<2x4x256xf32>
    %c0_138 = arith.constant 0 : index
    %c0_139 = arith.constant 0 : index
    %c0_140 = arith.constant 0 : index
    %443 = vector.load %arg6[%c0_138, %c0_139, %c0_140] : memref<36x4x1xf32, #tpu.memory_space<vmem>>, vector<1x4x1xf32>
    %444 = vector.shape_cast %443 : vector<1x4x1xf32> to vector<4x1xf32>
    %445 = vector.shape_cast %444 : vector<4x1xf32> to vector<1x4x1xf32>
    %446 = vector.broadcast %445 : vector<1x4x1xf32> to vector<2x4x256xf32>
    %447 = vector.broadcast %348 : vector<2x1x256xf32> to vector<2x4x256xf32>
    %448 = arith.mulf %446, %447 : vector<2x4x256xf32>
    %c1_141 = arith.constant 1 : index
    %c0_142 = arith.constant 0 : index
    %c0_143 = arith.constant 0 : index
    %449 = vector.load %arg6[%c1_141, %c0_142, %c0_143] : memref<36x4x1xf32, #tpu.memory_space<vmem>>, vector<1x4x1xf32>
    %450 = vector.shape_cast %449 : vector<1x4x1xf32> to vector<4x1xf32>
    %451 = vector.shape_cast %450 : vector<4x1xf32> to vector<1x4x1xf32>
    %452 = vector.broadcast %451 : vector<1x4x1xf32> to vector<2x4x256xf32>
    %453 = vector.broadcast %349 : vector<2x1x256xf32> to vector<2x4x256xf32>
    %454 = arith.mulf %452, %453 : vector<2x4x256xf32>
    %455 = arith.addf %448, %454 : vector<2x4x256xf32>
    %c2_144 = arith.constant 2 : index
    %c0_145 = arith.constant 0 : index
    %c0_146 = arith.constant 0 : index
    %456 = vector.load %arg6[%c2_144, %c0_145, %c0_146] : memref<36x4x1xf32, #tpu.memory_space<vmem>>, vector<1x4x1xf32>
    %457 = vector.shape_cast %456 : vector<1x4x1xf32> to vector<4x1xf32>
    %458 = vector.shape_cast %457 : vector<4x1xf32> to vector<1x4x1xf32>
    %459 = vector.broadcast %458 : vector<1x4x1xf32> to vector<2x4x256xf32>
    %460 = vector.broadcast %350 : vector<2x1x256xf32> to vector<2x4x256xf32>
    %461 = arith.mulf %459, %460 : vector<2x4x256xf32>
    %462 = arith.addf %455, %461 : vector<2x4x256xf32>
    %c3_147 = arith.constant 3 : index
    %c0_148 = arith.constant 0 : index
    %c0_149 = arith.constant 0 : index
    %463 = vector.load %arg6[%c3_147, %c0_148, %c0_149] : memref<36x4x1xf32, #tpu.memory_space<vmem>>, vector<1x4x1xf32>
    %464 = vector.shape_cast %463 : vector<1x4x1xf32> to vector<4x1xf32>
    %465 = vector.shape_cast %464 : vector<4x1xf32> to vector<1x4x1xf32>
    %466 = vector.broadcast %465 : vector<1x4x1xf32> to vector<2x4x256xf32>
    %467 = vector.broadcast %351 : vector<2x1x256xf32> to vector<2x4x256xf32>
    %468 = arith.mulf %466, %467 : vector<2x4x256xf32>
    %469 = arith.addf %462, %468 : vector<2x4x256xf32>
    %c4_150 = arith.constant 4 : index
    %c0_151 = arith.constant 0 : index
    %c0_152 = arith.constant 0 : index
    %470 = vector.load %arg6[%c4_150, %c0_151, %c0_152] : memref<36x4x1xf32, #tpu.memory_space<vmem>>, vector<1x4x1xf32>
    %471 = vector.shape_cast %470 : vector<1x4x1xf32> to vector<4x1xf32>
    %472 = vector.shape_cast %471 : vector<4x1xf32> to vector<1x4x1xf32>
    %473 = vector.broadcast %472 : vector<1x4x1xf32> to vector<2x4x256xf32>
    %474 = vector.broadcast %352 : vector<2x1x256xf32> to vector<2x4x256xf32>
    %475 = arith.mulf %473, %474 : vector<2x4x256xf32>
    %c5_153 = arith.constant 5 : index
    %c0_154 = arith.constant 0 : index
    %c0_155 = arith.constant 0 : index
    %476 = vector.load %arg6[%c5_153, %c0_154, %c0_155] : memref<36x4x1xf32, #tpu.memory_space<vmem>>, vector<1x4x1xf32>
    %477 = vector.shape_cast %476 : vector<1x4x1xf32> to vector<4x1xf32>
    %478 = vector.shape_cast %477 : vector<4x1xf32> to vector<1x4x1xf32>
    %479 = vector.broadcast %478 : vector<1x4x1xf32> to vector<2x4x256xf32>
    %480 = vector.broadcast %353 : vector<2x1x256xf32> to vector<2x4x256xf32>
    %481 = arith.mulf %479, %480 : vector<2x4x256xf32>
    %482 = arith.addf %475, %481 : vector<2x4x256xf32>
    %c6_156 = arith.constant 6 : index
    %c0_157 = arith.constant 0 : index
    %c0_158 = arith.constant 0 : index
    %483 = vector.load %arg6[%c6_156, %c0_157, %c0_158] : memref<36x4x1xf32, #tpu.memory_space<vmem>>, vector<1x4x1xf32>
    %484 = vector.shape_cast %483 : vector<1x4x1xf32> to vector<4x1xf32>
    %485 = vector.shape_cast %484 : vector<4x1xf32> to vector<1x4x1xf32>
    %486 = vector.broadcast %485 : vector<1x4x1xf32> to vector<2x4x256xf32>
    %487 = vector.broadcast %354 : vector<2x1x256xf32> to vector<2x4x256xf32>
    %488 = arith.mulf %486, %487 : vector<2x4x256xf32>
    %489 = arith.addf %482, %488 : vector<2x4x256xf32>
    %c7_159 = arith.constant 7 : index
    %c0_160 = arith.constant 0 : index
    %c0_161 = arith.constant 0 : index
    %490 = vector.load %arg6[%c7_159, %c0_160, %c0_161] : memref<36x4x1xf32, #tpu.memory_space<vmem>>, vector<1x4x1xf32>
    %491 = vector.shape_cast %490 : vector<1x4x1xf32> to vector<4x1xf32>
    %492 = vector.shape_cast %491 : vector<4x1xf32> to vector<1x4x1xf32>
    %493 = vector.broadcast %492 : vector<1x4x1xf32> to vector<2x4x256xf32>
    %494 = vector.broadcast %355 : vector<2x1x256xf32> to vector<2x4x256xf32>
    %495 = arith.mulf %493, %494 : vector<2x4x256xf32>
    %496 = arith.addf %489, %495 : vector<2x4x256xf32>
    %497 = arith.addf %469, %496 : vector<2x4x256xf32>
    %c8_162 = arith.constant 8 : index
    %c0_163 = arith.constant 0 : index
    %c0_164 = arith.constant 0 : index
    %498 = vector.load %arg6[%c8_162, %c0_163, %c0_164] : memref<36x4x1xf32, #tpu.memory_space<vmem>>, vector<1x4x1xf32>
    %499 = vector.shape_cast %498 : vector<1x4x1xf32> to vector<4x1xf32>
    %500 = vector.shape_cast %499 : vector<4x1xf32> to vector<1x4x1xf32>
    %501 = vector.broadcast %500 : vector<1x4x1xf32> to vector<2x4x256xf32>
    %502 = vector.broadcast %356 : vector<2x1x256xf32> to vector<2x4x256xf32>
    %503 = arith.mulf %501, %502 : vector<2x4x256xf32>
    %c9_165 = arith.constant 9 : index
    %c0_166 = arith.constant 0 : index
    %c0_167 = arith.constant 0 : index
    %504 = vector.load %arg6[%c9_165, %c0_166, %c0_167] : memref<36x4x1xf32, #tpu.memory_space<vmem>>, vector<1x4x1xf32>
    %505 = vector.shape_cast %504 : vector<1x4x1xf32> to vector<4x1xf32>
    %506 = vector.shape_cast %505 : vector<4x1xf32> to vector<1x4x1xf32>
    %507 = vector.broadcast %506 : vector<1x4x1xf32> to vector<2x4x256xf32>
    %508 = vector.broadcast %357 : vector<2x1x256xf32> to vector<2x4x256xf32>
    %509 = arith.mulf %507, %508 : vector<2x4x256xf32>
    %510 = arith.addf %503, %509 : vector<2x4x256xf32>
    %c10_168 = arith.constant 10 : index
    %c0_169 = arith.constant 0 : index
    %c0_170 = arith.constant 0 : index
    %511 = vector.load %arg6[%c10_168, %c0_169, %c0_170] : memref<36x4x1xf32, #tpu.memory_space<vmem>>, vector<1x4x1xf32>
    %512 = vector.shape_cast %511 : vector<1x4x1xf32> to vector<4x1xf32>
    %513 = vector.shape_cast %512 : vector<4x1xf32> to vector<1x4x1xf32>
    %514 = vector.broadcast %513 : vector<1x4x1xf32> to vector<2x4x256xf32>
    %515 = vector.broadcast %358 : vector<2x1x256xf32> to vector<2x4x256xf32>
    %516 = arith.mulf %514, %515 : vector<2x4x256xf32>
    %517 = arith.addf %510, %516 : vector<2x4x256xf32>
    %c11_171 = arith.constant 11 : index
    %c0_172 = arith.constant 0 : index
    %c0_173 = arith.constant 0 : index
    %518 = vector.load %arg6[%c11_171, %c0_172, %c0_173] : memref<36x4x1xf32, #tpu.memory_space<vmem>>, vector<1x4x1xf32>
    %519 = vector.shape_cast %518 : vector<1x4x1xf32> to vector<4x1xf32>
    %520 = vector.shape_cast %519 : vector<4x1xf32> to vector<1x4x1xf32>
    %521 = vector.broadcast %520 : vector<1x4x1xf32> to vector<2x4x256xf32>
    %522 = vector.broadcast %359 : vector<2x1x256xf32> to vector<2x4x256xf32>
    %523 = arith.mulf %521, %522 : vector<2x4x256xf32>
    %524 = arith.addf %517, %523 : vector<2x4x256xf32>
    %525 = arith.addf %497, %524 : vector<2x4x256xf32>
    %c16_i32_174 = arith.constant 16 : i32
    %526 = tpu.dynamic_rotate %525 by %c16_i32_174 dim 2 : vector<2x4x256xf32>, i32 -> vector<2x4x256xf32>
    %cst_175 = arith.constant 0.000000e+00 : f32
    %527 = vector.shape_cast %22 : vector<1x1x256xi1> to vector<1x1x256xi1>
    %528 = vector.broadcast %527 : vector<1x1x256xi1> to vector<2x4x256xi1>
    %529 = vector.broadcast %cst_175 : f32 to vector<2x4x256xf32>
    %530 = arith.select %528, %526, %529 : vector<2x4x256xi1>, vector<2x4x256xf32>
    %531 = arith.addf %442, %530 : vector<2x4x256xf32>
    %c24_176 = arith.constant 24 : index
    %c0_177 = arith.constant 0 : index
    %c0_178 = arith.constant 0 : index
    %532 = vector.load %arg6[%c24_176, %c0_177, %c0_178] : memref<36x4x1xf32, #tpu.memory_space<vmem>>, vector<1x4x1xf32>
    %533 = vector.shape_cast %532 : vector<1x4x1xf32> to vector<4x1xf32>
    %534 = vector.shape_cast %533 : vector<4x1xf32> to vector<1x4x1xf32>
    %535 = vector.broadcast %534 : vector<1x4x1xf32> to vector<2x4x256xf32>
    %536 = vector.broadcast %348 : vector<2x1x256xf32> to vector<2x4x256xf32>
    %537 = arith.mulf %535, %536 : vector<2x4x256xf32>
    %c25_179 = arith.constant 25 : index
    %c0_180 = arith.constant 0 : index
    %c0_181 = arith.constant 0 : index
    %538 = vector.load %arg6[%c25_179, %c0_180, %c0_181] : memref<36x4x1xf32, #tpu.memory_space<vmem>>, vector<1x4x1xf32>
    %539 = vector.shape_cast %538 : vector<1x4x1xf32> to vector<4x1xf32>
    %540 = vector.shape_cast %539 : vector<4x1xf32> to vector<1x4x1xf32>
    %541 = vector.broadcast %540 : vector<1x4x1xf32> to vector<2x4x256xf32>
    %542 = vector.broadcast %349 : vector<2x1x256xf32> to vector<2x4x256xf32>
    %543 = arith.mulf %541, %542 : vector<2x4x256xf32>
    %544 = arith.addf %537, %543 : vector<2x4x256xf32>
    %c26_182 = arith.constant 26 : index
    %c0_183 = arith.constant 0 : index
    %c0_184 = arith.constant 0 : index
    %545 = vector.load %arg6[%c26_182, %c0_183, %c0_184] : memref<36x4x1xf32, #tpu.memory_space<vmem>>, vector<1x4x1xf32>
    %546 = vector.shape_cast %545 : vector<1x4x1xf32> to vector<4x1xf32>
    %547 = vector.shape_cast %546 : vector<4x1xf32> to vector<1x4x1xf32>
    %548 = vector.broadcast %547 : vector<1x4x1xf32> to vector<2x4x256xf32>
    %549 = vector.broadcast %350 : vector<2x1x256xf32> to vector<2x4x256xf32>
    %550 = arith.mulf %548, %549 : vector<2x4x256xf32>
    %551 = arith.addf %544, %550 : vector<2x4x256xf32>
    %c27_185 = arith.constant 27 : index
    %c0_186 = arith.constant 0 : index
    %c0_187 = arith.constant 0 : index
    %552 = vector.load %arg6[%c27_185, %c0_186, %c0_187] : memref<36x4x1xf32, #tpu.memory_space<vmem>>, vector<1x4x1xf32>
    %553 = vector.shape_cast %552 : vector<1x4x1xf32> to vector<4x1xf32>
    %554 = vector.shape_cast %553 : vector<4x1xf32> to vector<1x4x1xf32>
    %555 = vector.broadcast %554 : vector<1x4x1xf32> to vector<2x4x256xf32>
    %556 = vector.broadcast %351 : vector<2x1x256xf32> to vector<2x4x256xf32>
    %557 = arith.mulf %555, %556 : vector<2x4x256xf32>
    %558 = arith.addf %551, %557 : vector<2x4x256xf32>
    %c28_188 = arith.constant 28 : index
    %c0_189 = arith.constant 0 : index
    %c0_190 = arith.constant 0 : index
    %559 = vector.load %arg6[%c28_188, %c0_189, %c0_190] : memref<36x4x1xf32, #tpu.memory_space<vmem>>, vector<1x4x1xf32>
    %560 = vector.shape_cast %559 : vector<1x4x1xf32> to vector<4x1xf32>
    %561 = vector.shape_cast %560 : vector<4x1xf32> to vector<1x4x1xf32>
    %562 = vector.broadcast %561 : vector<1x4x1xf32> to vector<2x4x256xf32>
    %563 = vector.broadcast %352 : vector<2x1x256xf32> to vector<2x4x256xf32>
    %564 = arith.mulf %562, %563 : vector<2x4x256xf32>
    %c29_191 = arith.constant 29 : index
    %c0_192 = arith.constant 0 : index
    %c0_193 = arith.constant 0 : index
    %565 = vector.load %arg6[%c29_191, %c0_192, %c0_193] : memref<36x4x1xf32, #tpu.memory_space<vmem>>, vector<1x4x1xf32>
    %566 = vector.shape_cast %565 : vector<1x4x1xf32> to vector<4x1xf32>
    %567 = vector.shape_cast %566 : vector<4x1xf32> to vector<1x4x1xf32>
    %568 = vector.broadcast %567 : vector<1x4x1xf32> to vector<2x4x256xf32>
    %569 = vector.broadcast %353 : vector<2x1x256xf32> to vector<2x4x256xf32>
    %570 = arith.mulf %568, %569 : vector<2x4x256xf32>
    %571 = arith.addf %564, %570 : vector<2x4x256xf32>
    %c30_194 = arith.constant 30 : index
    %c0_195 = arith.constant 0 : index
    %c0_196 = arith.constant 0 : index
    %572 = vector.load %arg6[%c30_194, %c0_195, %c0_196] : memref<36x4x1xf32, #tpu.memory_space<vmem>>, vector<1x4x1xf32>
    %573 = vector.shape_cast %572 : vector<1x4x1xf32> to vector<4x1xf32>
    %574 = vector.shape_cast %573 : vector<4x1xf32> to vector<1x4x1xf32>
    %575 = vector.broadcast %574 : vector<1x4x1xf32> to vector<2x4x256xf32>
    %576 = vector.broadcast %354 : vector<2x1x256xf32> to vector<2x4x256xf32>
    %577 = arith.mulf %575, %576 : vector<2x4x256xf32>
    %578 = arith.addf %571, %577 : vector<2x4x256xf32>
    %c31_197 = arith.constant 31 : index
    %c0_198 = arith.constant 0 : index
    %c0_199 = arith.constant 0 : index
    %579 = vector.load %arg6[%c31_197, %c0_198, %c0_199] : memref<36x4x1xf32, #tpu.memory_space<vmem>>, vector<1x4x1xf32>
    %580 = vector.shape_cast %579 : vector<1x4x1xf32> to vector<4x1xf32>
    %581 = vector.shape_cast %580 : vector<4x1xf32> to vector<1x4x1xf32>
    %582 = vector.broadcast %581 : vector<1x4x1xf32> to vector<2x4x256xf32>
    %583 = vector.broadcast %355 : vector<2x1x256xf32> to vector<2x4x256xf32>
    %584 = arith.mulf %582, %583 : vector<2x4x256xf32>
    %585 = arith.addf %578, %584 : vector<2x4x256xf32>
    %586 = arith.addf %558, %585 : vector<2x4x256xf32>
    %c32_200 = arith.constant 32 : index
    %c0_201 = arith.constant 0 : index
    %c0_202 = arith.constant 0 : index
    %587 = vector.load %arg6[%c32_200, %c0_201, %c0_202] : memref<36x4x1xf32, #tpu.memory_space<vmem>>, vector<1x4x1xf32>
    %588 = vector.shape_cast %587 : vector<1x4x1xf32> to vector<4x1xf32>
    %589 = vector.shape_cast %588 : vector<4x1xf32> to vector<1x4x1xf32>
    %590 = vector.broadcast %589 : vector<1x4x1xf32> to vector<2x4x256xf32>
    %591 = vector.broadcast %356 : vector<2x1x256xf32> to vector<2x4x256xf32>
    %592 = arith.mulf %590, %591 : vector<2x4x256xf32>
    %c33_203 = arith.constant 33 : index
    %c0_204 = arith.constant 0 : index
    %c0_205 = arith.constant 0 : index
    %593 = vector.load %arg6[%c33_203, %c0_204, %c0_205] : memref<36x4x1xf32, #tpu.memory_space<vmem>>, vector<1x4x1xf32>
    %594 = vector.shape_cast %593 : vector<1x4x1xf32> to vector<4x1xf32>
    %595 = vector.shape_cast %594 : vector<4x1xf32> to vector<1x4x1xf32>
    %596 = vector.broadcast %595 : vector<1x4x1xf32> to vector<2x4x256xf32>
    %597 = vector.broadcast %357 : vector<2x1x256xf32> to vector<2x4x256xf32>
    %598 = arith.mulf %596, %597 : vector<2x4x256xf32>
    %599 = arith.addf %592, %598 : vector<2x4x256xf32>
    %c34_206 = arith.constant 34 : index
    %c0_207 = arith.constant 0 : index
    %c0_208 = arith.constant 0 : index
    %600 = vector.load %arg6[%c34_206, %c0_207, %c0_208] : memref<36x4x1xf32, #tpu.memory_space<vmem>>, vector<1x4x1xf32>
    %601 = vector.shape_cast %600 : vector<1x4x1xf32> to vector<4x1xf32>
    %602 = vector.shape_cast %601 : vector<4x1xf32> to vector<1x4x1xf32>
    %603 = vector.broadcast %602 : vector<1x4x1xf32> to vector<2x4x256xf32>
    %604 = vector.broadcast %358 : vector<2x1x256xf32> to vector<2x4x256xf32>
    %605 = arith.mulf %603, %604 : vector<2x4x256xf32>
    %606 = arith.addf %599, %605 : vector<2x4x256xf32>
    %c35_209 = arith.constant 35 : index
    %c0_210 = arith.constant 0 : index
    %c0_211 = arith.constant 0 : index
    %607 = vector.load %arg6[%c35_209, %c0_210, %c0_211] : memref<36x4x1xf32, #tpu.memory_space<vmem>>, vector<1x4x1xf32>
    %608 = vector.shape_cast %607 : vector<1x4x1xf32> to vector<4x1xf32>
    %609 = vector.shape_cast %608 : vector<4x1xf32> to vector<1x4x1xf32>
    %610 = vector.broadcast %609 : vector<1x4x1xf32> to vector<2x4x256xf32>
    %611 = vector.broadcast %359 : vector<2x1x256xf32> to vector<2x4x256xf32>
    %612 = arith.mulf %610, %611 : vector<2x4x256xf32>
    %613 = arith.addf %606, %612 : vector<2x4x256xf32>
    %614 = arith.addf %586, %613 : vector<2x4x256xf32>
    %c240_i32_212 = arith.constant 240 : i32
    %615 = tpu.dynamic_rotate %614 by %c240_i32_212 dim 2 : vector<2x4x256xf32>, i32 -> vector<2x4x256xf32>
    %cst_213 = arith.constant 0.000000e+00 : f32
    %616 = vector.shape_cast %24 : vector<1x1x256xi1> to vector<1x1x256xi1>
    %617 = vector.broadcast %616 : vector<1x1x256xi1> to vector<2x4x256xi1>
    %618 = vector.broadcast %cst_213 : f32 to vector<2x4x256xf32>
    %619 = arith.select %617, %615, %618 : vector<2x4x256xi1>, vector<2x4x256xf32>
    %620 = arith.addf %531, %619 : vector<2x4x256xf32>
    %cst_214 = arith.constant dense<0.000000e+00> : vector<2x4xf32>
    %621 = vector.multi_reduction <add>, %620, %cst_214 [2] : vector<2x4x256xf32> to vector<2x4xf32>
    %622 = vector.shape_cast %621 : vector<2x4xf32> to vector<2x4x1xf32>
    %cst_215 = arith.constant dense<0.000000e+00> : vector<4x1xf32>
    %623 = vector.multi_reduction <add>, %622, %cst_215 [0] : vector<2x4x1xf32> to vector<4x1xf32>
    %624 = vector.shape_cast %623 : vector<4x1xf32> to vector<1x4x1xf32>
    %cst_216 = arith.constant 0.001953125 : f32
    %625 = vector.broadcast %cst_216 : f32 to vector<1x4x1xf32>
    %626 = arith.mulf %624, %625 : vector<1x4x1xf32>
    %627 = vector.broadcast %626 : vector<1x4x1xf32> to vector<2x4x256xf32>
    %628 = arith.subf %620, %627 : vector<2x4x256xf32>
    %629 = arith.mulf %628, %628 : vector<2x4x256xf32>
    %cst_217 = arith.constant dense<0.000000e+00> : vector<2x4xf32>
    %630 = vector.multi_reduction <add>, %629, %cst_217 [2] : vector<2x4x256xf32> to vector<2x4xf32>
    %631 = vector.shape_cast %630 : vector<2x4xf32> to vector<2x4x1xf32>
    %cst_218 = arith.constant dense<0.000000e+00> : vector<4x1xf32>
    %632 = vector.multi_reduction <add>, %631, %cst_218 [0] : vector<2x4x1xf32> to vector<4x1xf32>
    %633 = vector.shape_cast %632 : vector<4x1xf32> to vector<1x4x1xf32>
    %cst_219 = arith.constant 0.001953125 : f32
    %634 = vector.broadcast %cst_219 : f32 to vector<1x4x1xf32>
    %635 = arith.mulf %633, %634 : vector<1x4x1xf32>
    %cst_220 = arith.constant 9.99999974E-6 : f32
    %636 = vector.broadcast %cst_220 : f32 to vector<1x4x1xf32>
    %637 = arith.addf %635, %636 : vector<1x4x1xf32>
    %638 = math.rsqrt %637 : vector<1x4x1xf32>
    %c0_221 = arith.constant 0 : index
    %c0_222 = arith.constant 0 : index
    %639 = vector.load %arg8[%c0_221, %c0_222] : memref<4x1xf32, #tpu.memory_space<vmem>>, vector<4x1xf32>
    %640 = vector.shape_cast %639 : vector<4x1xf32> to vector<1x4x1xf32>
    %641 = arith.mulf %638, %640 : vector<1x4x1xf32>
    %642 = vector.broadcast %641 : vector<1x4x1xf32> to vector<2x4x256xf32>
    %643 = arith.mulf %628, %642 : vector<2x4x256xf32>
    %c0_223 = arith.constant 0 : index
    %c0_224 = arith.constant 0 : index
    %644 = vector.load %arg9[%c0_223, %c0_224] : memref<4x1xf32, #tpu.memory_space<vmem>>, vector<4x1xf32>
    %645 = vector.shape_cast %644 : vector<4x1xf32> to vector<1x4x1xf32>
    %646 = vector.broadcast %645 : vector<1x4x1xf32> to vector<2x4x256xf32>
    %647 = arith.addf %643, %646 : vector<2x4x256xf32>
    %648 = arith.addf %25, %647 : vector<2x4x256xf32>
    %c0_225 = arith.constant 0 : index
    %c0_226 = arith.constant 0 : index
    %c0_227 = arith.constant 0 : index
    %649 = vector.load %arg10[%c0_225, %c0_226, %c0_227] : memref<2x4x256xf32, #tpu.memory_space<vmem>>, vector<2x4x256xf32>
    tpu.vector_store %arg10[%c0_225, %c0_226, %c0_227], %648 {strides = array<i32>} : memref<2x4x256xf32, #tpu.memory_space<vmem>>, vector<2x4x256xf32>,
    return
  }
  func.func @transform_0(%arg0: i32) -> (i32, i32, i32) {
    %c0_i32 = arith.constant 0 : i32
    %c0_i32_0 = arith.constant 0 : i32
    %c0_i32_1 = arith.constant 0 : i32
    %c0_i32_2 = arith.constant 0 : i32
    return %c0_i32, %c0_i32_0, %c0_i32_1 : i32, i32, i32
  }
  func.func @transform_1(%arg0: i32) -> (i32, i32, i32) {
    %c0_i32 = arith.constant 0 : i32
    %c0_i32_0 = arith.constant 0 : i32
    %c0_i32_1 = arith.constant 0 : i32
    %c0_i32_2 = arith.constant 0 : i32
    return %c0_i32, %c0_i32_0, %c0_i32_1 : i32, i32, i32
  }
  func.func @transform_2(%arg0: i32) -> (i32, i32) {
    %c0_i32 = arith.constant 0 : i32
    %c0_i32_0 = arith.constant 0 : i32
    %c0_i32_1 = arith.constant 0 : i32
    return %c0_i32, %c0_i32_0 : i32, i32
  }
  func.func @transform_3(%arg0: i32) -> (i32, i32) {
    %c0_i32 = arith.constant 0 : i32
    %c0_i32_0 = arith.constant 0 : i32
    %c0_i32_1 = arith.constant 0 : i32
    return %c0_i32, %c0_i32_0 : i32, i32
  }
  func.func @transform_4(%arg0: i32) -> (i32, i32) {
    %c0_i32 = arith.constant 0 : i32
    %c0_i32_0 = arith.constant 0 : i32
    %c0_i32_1 = arith.constant 0 : i32
    return %c0_i32, %c0_i32_0 : i32, i32
  }
  func.func @transform_5(%arg0: i32) -> (i32, i32, i32) {
    %c0_i32 = arith.constant 0 : i32
    %c0_i32_0 = arith.constant 0 : i32
    %c0_i32_1 = arith.constant 0 : i32
    %c0_i32_2 = arith.constant 0 : i32
    return %c0_i32, %c0_i32_0, %c0_i32_1 : i32, i32, i32
  }
  func.func @transform_6(%arg0: i32) -> (i32, i32) {
    %c0_i32 = arith.constant 0 : i32
    %c0_i32_0 = arith.constant 0 : i32
    %c0_i32_1 = arith.constant 0 : i32
    return %c0_i32, %c0_i32_0 : i32, i32
  }
  func.func @transform_7(%arg0: i32) -> (i32, i32) {
    %c0_i32 = arith.constant 0 : i32
    %c0_i32_0 = arith.constant 0 : i32
    %c0_i32_1 = arith.constant 0 : i32
    return %c0_i32, %c0_i32_0 : i32, i32
  }
  func.func @transform_8(%arg0: i32) -> (i32, i32) {
    %c0_i32 = arith.constant 0 : i32
    %c0_i32_0 = arith.constant 0 : i32
    %c0_i32_1 = arith.constant 0 : i32
    return %c0_i32, %c0_i32_0 : i32, i32
  }
  func.func @transform_9(%arg0: i32) -> (i32, i32, i32) {
    %c0_i32 = arith.constant 0 : i32
    %c0_i32_0 = arith.constant 0 : i32
    %c0_i32_1 = arith.constant 0 : i32
    %c0_i32_2 = arith.constant 0 : i32
    return %c0_i32, %c0_i32_0, %c0_i32_1 : i32, i32, i32
  }
}

</mosaic_0001>

<bundles_post_ra>
// kernel: tpu_custom_call.1
= control target key start
LH: loop header
LB: loop body
LE: loop exit
PB: predicated region body
PF: predicated region fallthrough
CT: control target
= control target key end

     0   :  { %v2021_v2 = vmov 0   ;;  %s3605_s0 = inlined_call_operand.vmem [shape: f32[2,4,256], index: 0, kind: input, shape index: {}]   ;;  %s3606_s1 = inlined_call_operand.vmem [shape: f32[36,4,1], index: 1, kind: input, shape index: {}]   ;;  %s3607_s2 = inlined_call_operand.vmem [shape: f32[4,1], index: 2, kind: input, shape index: {}]   ;;  %s3608_s3 = inlined_call_operand.vmem [shape: f32[4,1], index: 3, kind: input, shape index: {}]   ;;  %s3609_s4 = inlined_call_operand.vmem [shape: f32[4,1], index: 4, kind: input, shape index: {}]   ;;  %s3610_s5 = inlined_call_operand.vmem [shape: f32[36,4,1], index: 5, kind: input, shape index: {}]   ;;  %s3611_s6 = inlined_call_operand.vmem [shape: f32[4,1], index: 6, kind: input, shape index: {}]   ;;  %s3612_s7 = inlined_call_operand.vmem [shape: f32[4,1], index: 7, kind: input, shape index: {}]   ;;  %s3613_s8 = inlined_call_operand.vmem [shape: f32[4,1], index: 8, kind: input, shape index: {}]   ;;  %s3614_s9 = inlined_call_operand.hbm [shape: f32[2,4,256], index: 9, kind: output, shape index: {}]  }
   0x1   :  { %v1924_v0 = vld [vmem:[%s3606_s1 + $0x10] sm:$0xf]  ;;  %v566_v1 = vld [vmem:[%s3606_s1] sm:$0xf]  ;;  %1988 = vset.pattern.permute.xlu1 %v2021_v2  ;;  %1987 = vset.pattern.permute.xlu0 %v2021_v2  ;;  %v1925_v3 = vld [vmem:[%s3606_s1 + $0x14] sm:$0xf] }
   0x2   :  { %625 = vperm.xlu1 %1988, %v1924_v0   ;;  %569 = vperm.xlu0 %1987, %v566_v1   ;;  %v1921_v4 = vld [vmem:[%s3606_s1 + $0x4] sm:$0xf]  ;;  %v1926_v5 = vld [vmem:[%s3606_s1 + $0x18] sm:$0xf]  ;;  %v1922_v6 = vld [vmem:[%s3606_s1 + $0x8] sm:$0xf] }
   0x3   :  { %v1929_v7 = vld [vmem:[%s3606_s1 + $0x24] sm:$0xf]  ;;  %v1928_v8 = vld [vmem:[%s3606_s1 + $0x20] sm:$0xf] }
   0x6   :  { %636 = vperm.xlu1 %1988, %v1925_v3   ;;  %580 = vperm.xlu0 %1987, %v1921_v4  }
   0xa   :  { %651 = vperm.xlu1 %1988, %v1926_v5   ;;  %595 = vperm.xlu0 %1987, %v1922_v6  }
   0xb   :  { %14 = vsyncpa [#allocation3], 0  ;;  %v1933_v9 = vld [vmem:[%s3606_s1 + $0x64] sm:$0xf]  ;;  %v1932_v10 = vld [vmem:[%s3606_s1 + $0x60] sm:$0xf]  ;;  %v33_v41 = vlaneseq }
   0xc   :  { %v1937_v11 = vld [vmem:[%s3606_s1 + $0x74] sm:$0xf]  ;;  %v1936_v12 = vld [vmem:[%s3606_s1 + $0x70] sm:$0xf]  ;;  %v2118_v13 = vld [vmem:[%s3605_s0 + $0x8] sm:$0xff]  ;;  %s2022_s12 = smov 1  }
   0xd   :  { %v2123_v14 = vld [vmem:[%s3605_s0] sm:$0xff]  ;;  %v73_v15 = vcombine.high %v2118_v13, %v2118_v13  ;;  %v1927_v17 = vld [vmem:[%s3606_s1 + $0x1c] sm:$0xf]  ;;  %v1923_v18 = vld [vmem:[%s3606_s1 + $0xc] sm:$0xf]  ;;  %s2023_s27 = smov 127  }
   0xe   :  { %696 = vperm.xlu1 %1988, %v1929_v7   ;;  %685 = vperm.xlu0 %1987, %v1928_v8   ;;  %v72_v16 = vcombine.high %v2123_v14, %v2123_v14  ;;  %v1934_v19 = vld [vmem:[%s3606_s1 + $0x68] sm:$0xf]  ;;  %v1940_v21 = vld [vmem:[%s3606_s1 + $0x80] sm:$0xf]  ;;  %v1938_v22 = vld [vmem:[%s3606_s1 + $0x78] sm:$0xf] }
   0xf   :  { %v1930_v20 = vld [vmem:[%s3606_s1 + $0x28] sm:$0xf]  ;;  %v1941_v23 = vld [vmem:[%s3606_s1 + $0x84] sm:$0xf]  ;;  %v1931_v24 = vld [vmem:[%s3606_s1 + $0x2c] sm:$0xf] }
  0x10   :  { %v1939_v25 = vld [vmem:[%s3606_s1 + $0x7c] sm:$0xf]  ;;  %v1935_v26 = vld [vmem:[%s3606_s1 + $0x6c] sm:$0xf]  ;;  %v1942_v28 = vld [vmem:[%s3606_s1 + $0x88] sm:$0xf] }
  0x11   :  { %v1943_v27 = vld [vmem:[%s3606_s1 + $0x8c] sm:$0xf]  ;;  %v1910_v29 = vld [vmem:[%s3606_s1 + $0x34] sm:$0xf]  ;;  %v1909_v30 = vld [vmem:[%s3606_s1 + $0x30] sm:$0xf] }
  0x12   :  { %781 = vperm.xlu1 %1988, %v1933_v9   ;;  %770 = vperm.xlu0 %1987, %v1932_v10   ;;  %v1914_v31 = vld [vmem:[%s3606_s1 + $0x44] sm:$0xf]  ;;  %v1913_v32 = vld [vmem:[%s3606_s1 + $0x40] sm:$0xf]  ;;  %v1915_v33 = vld [vmem:[%s3606_s1 + $0x48] sm:$0xf] }
  0x13   :  { %v1911_v34 = vld [vmem:[%s3606_s1 + $0x38] sm:$0xf]  ;;  %v1918_v35 = vld [vmem:[%s3606_s1 + $0x54] sm:$0xf]  ;;  %v1917_v36 = vld [vmem:[%s3606_s1 + $0x50] sm:$0xf] }
  0x14   :  { %v1916_v37 = vld [vmem:[%s3606_s1 + $0x4c] sm:$0xf]  ;;  %v1912_v38 = vld [vmem:[%s3606_s1 + $0x3c] sm:$0xf]  ;;  %v1919_v40 = vld [vmem:[%s3606_s1 + $0x58] sm:$0xf] }
  0x15   :  { %v1920_v39 = vld [vmem:[%s3606_s1 + $0x5c] sm:$0xf]  ;;  %v2215_v44 = vshrl.u32 %v33_v41, 7  ;;  %v2229_v53 = vand.u32 127, %v33_v41  ;;  %s2024_s1 = smov 16   ;;  %s2025_s19 = smov 112  }
  0x16   :  { %837 = vperm.xlu1 %1988, %v1937_v11   ;;  %826 = vperm.xlu0 %1987, %v1936_v12   ;;  %vm967_vm10 = vcmask 1043456  }
  0x17   :  { %v2220_v47 = vsub.s32 0, %v2215_v44  ;;  %v2223_v48 = vsub.s32 1, %v2215_v44  ;;  %v251_v49 = vsub.s32 4, %v2215_v44  ;;  %v298_v50 = vsub.s32 5, %v2215_v44  ;;  %3719 = vst [vmem:[#allocation7_spill] sm:$0xff] %v2229_v53 }
  0x18   :  { %v2232_v54 = vsub.s32 2, %v2215_v44  ;;  %v349_v55 = vsub.s32 6, %v2215_v44  ;;  %v2248_v63 = vadd.s32 128, %v2229_v53  ;;  %v2257_v4 = vsub.s32 3, %v2215_v44 }
  0x19   :  { %3717 = vst [vmem:[#allocation5_spill] sm:$0xff] %v2220_v47  ;;  %3718 = vst [vmem:[#allocation6_spill] sm:$0xff] %v2223_v48  ;;  %v248_v56 = vrot.slane %v2123_v14, %v2220_v47  ;;  %v252_v57 = vrot.slane %v2123_v14, %v251_v49  ;;  %v295_v58 = vrot.slane %v2123_v14, %v2223_v48  ;;  %vm84_vm0 = vcmp.lt.s32.totalorder %v2229_v53, 1 }
  0x1a   :  { %78 = vrot.lane.b32.xlu1 %v2118_v13, %s2022_s12  ;;  %76 = vrot.lane.b32.xlu0 %v2123_v14, %s2022_s12  ;;  %3720 = vst [vmem:[#allocation8_spill] sm:$0xff] %v2232_v54  ;;  %v299_v59 = vrot.slane %v2123_v14, %v298_v50  ;;  %v256_v60 = vrot.slane %v2118_v13, %v2220_v47  ;;  %3721 = vst [vmem:[#allocation9_spill] sm:$0xff] %v2248_v63  ;;  %vm105_vm3 = vcmp.lt.s32.totalorder %v2229_v53, 127 }
  0x1b   :  { %v260_v0 = vrot.slane %v2118_v13, %v251_v49  ;;  %v303_v1 = vrot.slane %v2118_v13, %v2223_v48  ;;  %v307_v2 = vrot.slane %v2118_v13, %v298_v50  ;;  %v346_v3 = vrot.slane %v2123_v14, %v2232_v54  ;;  %3722 = vst [vmem:[#allocation10_spill] sm:$0xff] %v2257_v4 }
  0x1c   :  { %v350_v5 = vrot.slane %v2123_v14, %v349_v55  ;;  %v354_v6 = vrot.slane %v2118_v13, %v2232_v54  ;;  %v358_v7 = vrot.slane %v2118_v13, %v349_v55  ;;  %v2264_v8 = vrot.slane %v248_v56, %v2220_v47 }
  0x1d   :  { %v2267_v9 = vrot.slane %v252_v57, %v2220_v47  ;;  %v2270_v10 = vrot.slane %v295_v58, %v2223_v48  ;;  %v2273_v11 = vrot.slane %v299_v59, %v2223_v48  ;;  %v2276_v12 = vrot.slane %v256_v60, %v2220_v47 }
  0x1e   :  { %82 = vrot.lane.b32.xlu1 %v73_v15, %s2022_s12  ;;  %80 = vrot.lane.b32.xlu0 %v72_v16, %s2022_s12  ;;  %3723 = vst [vmem:[#allocation11_spill] sm:$0xff] %v2264_v8  ;;  %v405_v49 = vrot.slane %v2118_v13, %v2257_v4 }
  0x1f   :  { %3724 = vst [vmem:[#allocation12_spill] sm:$0xff] %v2267_v9  ;;  %3725 = vst [vmem:[#allocation13_spill] sm:$0xff] %v2270_v10 }
  0x20   :  { %3726 = vst [vmem:[#allocation14_spill] sm:$0xff] %v2273_v11  ;;  %3727 = vst [vmem:[#allocation15_spill] sm:$0xff] %v2276_v12 }
  0x22   :  { %666 = vperm.xlu1 %1988, %v1927_v17   ;;  %610 = vperm.xlu0 %1987, %v1923_v18   ;;  %v3616_v17 = vand.u32 15, %v2229_v53  ;;  %v3615_v18 = vand.u32 15, %v2248_v63 }
  0x24   :  { %vm2313_vm1 = vcmp.ge.s32.totalorder %v3616_v17, 1  ;;  %vm2319_vm2 = vcmp.ge.s32.totalorder %v3615_v18, 1 }
  0x26   :  { %796 = vperm.xlu1 %1988, %v1934_v19   ;;  %711 = vperm.xlu0 %1987, %v1930_v20   ;;  %v400_v19 = vsub.s32 7, %v2215_v44  ;;  %v2286_v20 = vrot.slane %v260_v0, %v2220_v47 }
  0x28   :  { %3728 = vst [vmem:[#allocation16_spill] sm:$0xff] %v2286_v20  ;;  %v409_v50 = vrot.slane %v2118_v13, %v400_v19 }
  0x2a   :  { %886 = vperm.xlu1 %1988, %v1940_v21   ;;  %852 = vperm.xlu0 %1987, %v1938_v22   ;;  %v2289_v21 = vrot.slane %v303_v1, %v2223_v48  ;;  %v2292_v22 = vrot.slane %v307_v2, %v2223_v48 }
  0x2c   :  { %3729 = vst [vmem:[#allocation17_spill] sm:$0xff] %v2289_v21  ;;  %3730 = vst [vmem:[#allocation18_spill] sm:$0xff] %v2292_v22 }
  0x2e   :  { %97 = vrot.lane.b32.xlu1 %v2123_v14, %s2023_s27  ;;  %897 = vperm.xlu0 %1987, %v1941_v23   ;;  %v2295_v23 = vrot.slane %v346_v3, %v2232_v54 }
  0x32   :  { %101 = vrot.lane.b32.xlu1 %v72_v16, %s2023_s27  ;;  %99 = vrot.lane.b32.xlu0 %v2118_v13, %s2023_s27 }
  0x36   :  { %726 = vperm.xlu1 %1988, %v1931_v24   ;;  %103 = vrot.lane.b32.xlu0 %v73_v15, %s2023_s27  ;;  %v2298_v24 = vrot.slane %v350_v5, %v2232_v54  ;;  %v2351_v5 = vrot.slane %v409_v50, %v2257_v4 }
  0x38   :  { %3742 = vst [vmem:[#allocation26_spill] sm:$0xff] %v2351_v5 }
  0x3a   :  { %867 = vperm.xlu1 %1988, %v1939_v25   ;;  %811 = vperm.xlu0 %1987, %v1935_v26   ;;  %v2301_v25 = vrot.slane %v354_v6, %v2232_v54  ;;  %v2304_v26 = vrot.slane %v358_v7, %v2232_v54 }
  0x3c   :  { %3731 = vst [vmem:[#allocation19_spill] sm:$0xff] %v2301_v25  ;;  %3732 = vst [vmem:[#allocation20_spill] sm:$0xff] %v2304_v26 }
  0x3e   :  { %927 = vperm.xlu1 %1988, %v1943_v27   ;;  %912 = vperm.xlu0 %1987, %v1942_v28  }
  0x42   :  { %149 = vperm.xlu1 %1988, %v1910_v29   ;;  %122 = vperm.xlu0 %1987, %v1909_v30  }
  0x46   :  { %289 = vperm.xlu1 %1988, %v1914_v31   ;;  %242 = vperm.xlu0 %1987, %v1913_v32  }
  0x4a   :  { %340 = vperm.xlu1 %1988, %v1915_v33   ;;  %180 = vperm.xlu0 %1987, %v1911_v34   ;;  %v3733_v33 = vmov 0  ;;  %v3736_v34 = vmov 0 }
  0x4b   :  { %v3734_v33 = vsel %vm2313_vm1, 4294967295, %v3733_v33  ;;  %v3737_v34 = vsel %vm2319_vm2, 4294967295, %v3736_v34 }
  0x4c   :  { %3735 = vst [vmem:[#allocation21_spill] sm:$0xff] %v3734_v33  ;;  %3738 = vst [vmem:[#allocation22_spill] sm:$0xff] %v3737_v34 }
  0x4e   :  { %473 = vperm.xlu1 %1988, %v1918_v35   ;;  %446 = vperm.xlu0 %1987, %v1917_v36   ;;  %v397_v35 = vrot.slane %v2123_v14, %v2257_v4  ;;  %v401_v36 = vrot.slane %v2123_v14, %v400_v19 }
  0x50   :  { %v2342_v13 = vrot.slane %v397_v35, %v2257_v4  ;;  %v2345_v3 = vrot.slane %v401_v36, %v2257_v4 }
  0x52   :  { %391 = vperm.xlu1 %1988, %v1916_v37   ;;  %211 = vperm.xlu0 %1987, %v1912_v38   ;;  %3739 = vst [vmem:[#allocation23_spill] sm:$0xff] %v2342_v13  ;;  %3740 = vst [vmem:[#allocation24_spill] sm:$0xff] %v2345_v3 }
  0x56   :  { %535 = vperm.xlu1 %1988, %v1920_v39   ;;  %504 = vperm.xlu0 %1987, %v1919_v40  }
  0x81   :  { %v626_v42 = vpop.permute.xlu1 %625  ;;  %v2213_v43 = vpop.permute.xlu0 %569 }
  0x82   :  { %v628_v27 = vmul.f32 %v626_v42, %v2264_v8  ;;  %v629_v28 = vmul.f32 %v626_v42, %v2267_v9  ;;  %v630_v37 = vmul.f32 %v626_v42, %v2276_v12  ;;  %v631_v38 = vmul.f32 %v626_v42, %v2286_v20 }
  0x85   :  { %v637_v45 = vpop.permute.xlu1 %636  ;;  %v2217_v46 = vpop.permute.xlu0 %580 }
  0x86   :  { %v639_v29 = vmul.f32 %v637_v45, %v2270_v10  ;;  %v640_v30 = vmul.f32 %v637_v45, %v2273_v11  ;;  %v641_v39 = vmul.f32 %v637_v45, %v2289_v21  ;;  %v642_v40 = vmul.f32 %v637_v45, %v2292_v22 }
  0x88   :  { %v643_v55 = vadd.f32 %v639_v29, %v628_v27  ;;  %v644_v56 = vadd.f32 %v640_v30, %v629_v28  ;;  %v645_v1 = vadd.f32 %v641_v39, %v630_v37  ;;  %v646_v2 = vadd.f32 %v642_v40, %v631_v38 }
  0x89   :  { %v652_v51 = vpop.permute.xlu1 %651  ;;  %v2227_v52 = vpop.permute.xlu0 %595 }
  0x8a   :  { %v654_v41 = vmul.f32 %v652_v51, %v2295_v23  ;;  %v655_v44 = vmul.f32 %v652_v51, %v2298_v24  ;;  %v656_v14 = vmul.f32 %v652_v51, %v2301_v25  ;;  %v657_v57 = vmul.f32 %v652_v51, %v2304_v26 }
  0x8b   :  { %v2348_v51 = vrot.slane %v405_v49, %v2257_v4 }
  0x8c   :  { %v658_v6 = vadd.f32 %v654_v41, %v643_v55  ;;  %v659_v7 = vadd.f32 %v655_v44, %v644_v56  ;;  %v2355_v28 = vadd.f32 %v656_v14, %v645_v1  ;;  %v2357_v29 = vadd.f32 %v657_v57, %v646_v2 }
  0x8d   :  { %v2243_v61 = vpop.permute.xlu1 %696  ;;  %v2245_v62 = vpop.permute.xlu0 %685  ;;  %3741 = vst [vmem:[#allocation25_spill] sm:$0xff] %v2348_v51 }
  0x91   :  { %v2278_v15 = vpop.permute.xlu1 %781  ;;  %v2280_v16 = vpop.permute.xlu0 %770 }
  0x95   :  { %v838_v31 = vpop.permute.xlu1 %837  ;;  %v827_v32 = vpop.permute.xlu0 %826 }
  0x96   :  { %v840_v42 = vmul.f32 %v838_v31, %v2270_v10  ;;  %v841_v58 = vmul.f32 %v838_v31, %v2273_v11  ;;  %v829_v45 = vmul.f32 %v827_v32, %v2264_v8  ;;  %v830_v59 = vmul.f32 %v827_v32, %v2267_v9 }
  0x97   :  { %v842_v19 = vmul.f32 %v838_v31, %v2289_v21  ;;  %v843_v27 = vmul.f32 %v838_v31, %v2292_v22  ;;  %v831_v30 = vmul.f32 %v827_v32, %v2276_v12  ;;  %v832_v35 = vmul.f32 %v827_v32, %v2286_v20 }
  0x98   :  { %v2361_v38 = vadd.f32 %v840_v42, %v829_v45  ;;  %v2363_v39 = vadd.f32 %v841_v58, %v830_v59 }
  0x99   :  { %v79_v60 = vpop.permute.xlu1 %78  ;;  %v77_v0 = vpop.permute.xlu0 %76  ;;  %v2401_v1 = vadd.f32 %v843_v27, %v832_v35 }
  0x9d   :  { %v83_v36 = vpop.permute.xlu1 %82  ;;  %v81_v37 = vpop.permute.xlu0 %80 }
  0x9e   :  { %v86_v40 = vsel %vm84_vm0, %v79_v60, %v83_v36  ;;  %v88_v31 = vsel %vm84_vm0, %v83_v36, %v79_v60  ;;  %v85_v41 = vsel %vm84_vm0, %v77_v0, %v81_v37  ;;  %v87_v44 = vsel %vm84_vm0, %v81_v37, %v77_v0 }
  0x9f   :  { %v95_v32 = vsel %vm2313_vm1, %v88_v31, 0.0  ;;  %v96_v49 = vsel %vm2319_vm2, %v86_v40, 0.0  ;;  %v93_v50 = vsel %vm2313_vm1, %v87_v44, 0.0  ;;  %v94_v55 = vsel %vm2319_vm2, %v85_v41, 0.0 }
  0xa0   :  { %v2382_v56 = vrot.slane %v95_v32, %v2220_v47  ;;  %v2385_v14 = vrot.slane %v96_v49, %v2220_v47  ;;  %v2388_v57 = vrot.slane %v95_v32, %v2223_v48  ;;  %v2391_v42 = vrot.slane %v96_v49, %v2223_v48 }
  0xa1   :  { %v2394_v58 = vrot.slane %v95_v32, %v2232_v54  ;;  %v2397_v45 = vrot.slane %v96_v49, %v2232_v54  ;;  %v667_v59 = vpop.permute.xlu1 %666  ;;  %v611_v60 = vpop.permute.xlu0 %610  ;;  %v2399_v0 = vadd.f32 %v842_v19, %v831_v30  ;;  %v2404_v2 = vrot.slane %v95_v32, %v2257_v4 }
  0xa2   :  { %3743 = vst [vmem:[#allocation27_spill] sm:$0xff] %v2382_v56  ;;  %3744 = vst [vmem:[#allocation28_spill] sm:$0xff] %v2385_v14  ;;  %v2407_v36 = vrot.slane %v96_v49, %v2257_v4  ;;  %v2411_v37 = vmul.f32 %v2213_v43, %v2382_v56  ;;  %v2415_v40 = vmul.f32 %v2213_v43, %v2385_v14 }
  0xa3   :  { %3745 = vst [vmem:[#allocation29_spill] sm:$0xff] %v2388_v57  ;;  %3746 = vst [vmem:[#allocation30_spill] sm:$0xff] %v2391_v42  ;;  %v2418_v31 = vrot.slane %v93_v50, %v2220_v47  ;;  %v2421_v19 = vrot.slane %v94_v55, %v2220_v47  ;;  %v2424_v27 = vrot.slane %v93_v50, %v2223_v48 }
  0xa4   :  { %3747 = vst [vmem:[#allocation31_spill] sm:$0xff] %v2394_v58  ;;  %3748 = vst [vmem:[#allocation32_spill] sm:$0xff] %v2397_v45  ;;  %v2427_v30 = vrot.slane %v94_v55, %v2223_v48  ;;  %v585_v35 = vmul.f32 %v2217_v46, %v2388_v57  ;;  %v2433_v41 = vmul.f32 %v2217_v46, %v2391_v42 }
  0xa5   :  { %3749 = vst [vmem:[#allocation33_spill] sm:$0xff] %v2404_v2  ;;  %3750 = vst [vmem:[#allocation34_spill] sm:$0xff] %v2407_v36  ;;  %v2436_v44 = vrot.slane %v93_v50, %v2257_v4  ;;  %v2439_v32 = vrot.slane %v94_v55, %v2257_v4  ;;  %v2442_v49 = vrot.slane %v93_v50, %v2232_v54  ;;  %v797_v33 = vpop.permute.xlu1 %796  ;;  %v2451_v20 = vpop.permute.xlu0 %711 }
  0xa6   :  { %3751 = vst [vmem:[#allocation35_spill] sm:$0xff] %v2418_v31  ;;  %3752 = vst [vmem:[#allocation36_spill] sm:$0xff] %v2421_v19  ;;  %v2445_v18 = vrot.slane %v94_v55, %v2232_v54  ;;  %v572_v17 = vmul.f32 %v2213_v43, %v2418_v31  ;;  %v573_v34 = vmul.f32 %v2213_v43, %v2421_v19 }
  0xa7   :  { %3753 = vst [vmem:[#allocation37_spill] sm:$0xff] %v2424_v27  ;;  %3754 = vst [vmem:[#allocation38_spill] sm:$0xff] %v2427_v30  ;;  %v583_v12 = vmul.f32 %v2217_v46, %v2424_v27  ;;  %v584_v9 = vmul.f32 %v2217_v46, %v2427_v30  ;;  %v669_v50 = vmul.f32 %v667_v59, %v2342_v13 }
  0xa8   :  { %3755 = vst [vmem:[#allocation39_spill] sm:$0xff] %v2436_v44  ;;  %3756 = vst [vmem:[#allocation40_spill] sm:$0xff] %v2439_v32  ;;  %v670_v55 = vmul.f32 %v667_v59, %v2345_v3  ;;  %v671_v8 = vmul.f32 %v667_v59, %v2348_v51  ;;  %v672_v22 = vmul.f32 %v667_v59, %v2351_v5  ;;  %v3766_v59 = vand.u32 15, %v2229_v53 }
  0xa9   :  { %3757 = vst [vmem:[#allocation41_spill] sm:$0xff] %v2442_v49  ;;  %3758 = vst [vmem:[#allocation42_spill] sm:$0xff] %v2445_v18  ;;  %v2462_v21 = vmul.f32 %v611_v60, %v2436_v44  ;;  %v2465_v43 = vmul.f32 %v611_v60, %v2439_v32  ;;  %v2468_v11 = vadd.f32 %v669_v50, %v658_v6  ;;  %v3767_v44 = vmov 0 }
  0xaa   :  { %3759 = vst [vmem:[#allocation43_spill] sm:$0xff] %v2451_v20  ;;  %v2470_v10 = vadd.f32 %v670_v55, %v659_v7  ;;  %v2473_v46 = vmul.f32 %v611_v60, %v2404_v2  ;;  %v2476_v20 = vmul.f32 %v611_v60, %v2407_v36  ;;  %vm2480_vm4 = vcmp.lt.s32.totalorder %v3766_v59, 15  ;;  %v2498_v55 = vpop.permute.xlu1 %886  ;;  %v853_v59 = vpop.permute.xlu0 %852 }
  0xab   :  { %3760 = vst [vmem:[#allocation44_spill] sm:$0xff] %v2462_v21  ;;  %3761 = vst [vmem:[#allocation45_spill] sm:$0xff] %v2465_v43  ;;  %v3768_v44 = vsel %vm2480_vm4, 4294967295, %v3767_v44  ;;  %v3770_v43 = vand.u32 15, %v2248_v63  ;;  %v3771_v21 = vmov 0  ;;  %v773_v6 = vmul.f32 %v2280_v16, %v2418_v31 }
  0xac   :  { %3762 = vst [vmem:[#allocation46_spill] sm:$0xff] %v2468_v11  ;;  %3763 = vst [vmem:[#allocation47_spill] sm:$0xff] %v2470_v10  ;;  %v774_v7 = vmul.f32 %v2280_v16, %v2421_v19  ;;  %v775_v60 = vmul.f32 %v2280_v16, %v2382_v56  ;;  %v776_v50 = vmul.f32 %v2280_v16, %v2385_v14 }
  0xad   :  { %3764 = vst [vmem:[#allocation48_spill] sm:$0xff] %v2473_v46  ;;  %3765 = vst [vmem:[#allocation49_spill] sm:$0xff] %v2476_v20  ;;  %vm2486_vm5 = vcmp.lt.s32.totalorder %v3770_v43, 15  ;;  %v784_v43 = vmul.f32 %v2278_v15, %v2424_v27  ;;  %v785_v63 = vmul.f32 %v2278_v15, %v2427_v30  ;;  %v786_v10 = vmul.f32 %v2278_v15, %v2388_v57 }
  0xae   :  { %3769 = vst [vmem:[#allocation50_spill] sm:$0xff] %v3768_v44  ;;  %v3772_v21 = vsel %vm2486_vm5, 4294967295, %v3771_v21  ;;  %v787_v20 = vmul.f32 %v2278_v15, %v2391_v42  ;;  %v799_v46 = vmul.f32 %v797_v33, %v2442_v49  ;;  %v800_v56 = vmul.f32 %v797_v33, %v2445_v18  ;;  %v98_v42 = vpop.permute.xlu1 %97  ;;  %v2516_v2 = vpop.permute.xlu0 %897 }
  0xaf   :  { %3773 = vst [vmem:[#allocation51_spill] sm:$0xff] %v3772_v21  ;;  %v801_v16 = vmul.f32 %v797_v33, %v2394_v58  ;;  %v802_v14 = vmul.f32 %v797_v33, %v2397_v45  ;;  %v788_v19 = vadd.f32 %v784_v43, %v773_v6  ;;  %v789_v31 = vadd.f32 %v785_v63, %v774_v7 }
  0xb0   :  { %v790_v11 = vadd.f32 %v786_v10, %v775_v60  ;;  %v791_v27 = vadd.f32 %v787_v20, %v776_v50  ;;  %v855_v30 = vmul.f32 %v853_v59, %v2295_v23  ;;  %v856_v36 = vmul.f32 %v853_v59, %v2298_v24 }
  0xb1   :  { %v857_v57 = vmul.f32 %v853_v59, %v2301_v25  ;;  %v858_v15 = vmul.f32 %v853_v59, %v2304_v26  ;;  %v2519_v32 = vadd.f32 %v671_v8, %v2355_v28  ;;  %v2522_v33 = vadd.f32 %v672_v22, %v2357_v29 }
  0xb2   :  { %v2524_v63 = vadd.f32 %v799_v46, %v788_v19  ;;  %v2526_v10 = vadd.f32 %v800_v56, %v789_v31  ;;  %v2528_v20 = vadd.f32 %v801_v16, %v790_v11  ;;  %v2530_v6 = vadd.f32 %v802_v14, %v791_v27  ;;  %v102_v56 = vpop.permute.xlu1 %101  ;;  %v100_v11 = vpop.permute.xlu0 %99 }
  0xb3   :  { %v2533_v7 = vadd.f32 %v855_v30, %v2361_v38  ;;  %v2536_v60 = vadd.f32 %v856_v36, %v2363_v39  ;;  %v2539_v8 = vadd.f32 %v857_v57, %v2399_v0  ;;  %v2542_v22 = vadd.f32 %v858_v15, %v2401_v1 }
  0xb4   :  { %v587_v28 = vadd.f32 %v583_v12, %v572_v17  ;;  %v589_v29 = vadd.f32 %v585_v35, %v2411_v37  ;;  %v598_v14 = vmul.f32 %v2227_v52, %v2442_v49  ;;  %v600_v38 = vmul.f32 %v2227_v52, %v2394_v58  ;;  %v3787_v49 = vld [vmem:[#allocation33_spill] sm:$0xff] }
  0xb5   :  { %v588_v31 = vadd.f32 %v584_v9, %v573_v34  ;;  %v590_v39 = vadd.f32 %v2433_v41, %v2415_v40  ;;  %v106_v57 = vsel %vm105_vm3, %v98_v42, %v102_v56  ;;  %v108_v12 = vsel %vm105_vm3, %v102_v56, %v98_v42 }
  0xb6   :  { %v599_v17 = vmul.f32 %v2227_v52, %v2445_v18  ;;  %v601_v0 = vmul.f32 %v2227_v52, %v2397_v45  ;;  %v114_v1 = vsel %vm2480_vm4, %v106_v57, 0.0  ;;  %v115_v9 = vsel %vm2486_vm5, %v108_v12, 0.0  ;;  %v2585_v30 = vpop.permute.xlu1 %726  ;;  %v104_v35 = vpop.permute.xlu0 %103  ;;  %v3785_v45 = vld [vmem:[#allocation39_spill] sm:$0xff] }
  0xb7   :  { %v2563_v34 = vadd.f32 %v598_v14, %v587_v28  ;;  %v2565_v36 = vadd.f32 %v600_v38, %v589_v29  ;;  %v2568_v37 = vrot.slane %v114_v1, %v2220_v47  ;;  %v2571_v42 = vrot.slane %v115_v9, %v2220_v47 }
  0xb8   :  { %v2574_v40 = vrot.slane %v114_v1, %v2223_v48  ;;  %v2577_v52 = vrot.slane %v115_v9, %v2223_v48  ;;  %v2580_v19 = vrot.slane %v114_v1, %v2257_v4  ;;  %v2583_v27 = vrot.slane %v115_v9, %v2257_v4 }
  0xb9   :  { %3774 = vst [vmem:[#allocation52_spill] sm:$0xff] %v2568_v37  ;;  %3775 = vst [vmem:[#allocation53_spill] sm:$0xff] %v2571_v42  ;;  %v2587_v41 = vadd.f32 %v599_v17, %v588_v31  ;;  %v2589_v46 = vadd.f32 %v601_v0, %v590_v39  ;;  %v2592_v50 = vrot.slane %v114_v1, %v2232_v54 }
  0xba   :  { %3776 = vst [vmem:[#allocation54_spill] sm:$0xff] %v2574_v40  ;;  %3777 = vst [vmem:[#allocation55_spill] sm:$0xff] %v2577_v52  ;;  %v2595_v59 = vrot.slane %v115_v9, %v2232_v54  ;;  %v2599_v43 = vmul.f32 %v2245_v62, %v2568_v37  ;;  %v2603_v16 = vmul.f32 %v2245_v62, %v2571_v42  ;;  %v868_v1 = vpop.permute.xlu1 %867  ;;  %v812_v9 = vpop.permute.xlu0 %811 }
  0xbb   :  { %3778 = vst [vmem:[#allocation56_spill] sm:$0xff] %v2580_v19  ;;  %3779 = vst [vmem:[#allocation57_spill] sm:$0xff] %v2583_v27  ;;  %v889_v15 = vmul.f32 %v2498_v55, %v2568_v37  ;;  %v890_v28 = vmul.f32 %v2498_v55, %v2571_v42  ;;  %v900_v29 = vmul.f32 %v2516_v2, %v2574_v40 }
  0xbc   :  { %3780 = vst [vmem:[#allocation58_spill] sm:$0xff] %v2592_v50  ;;  %v901_v56 = vmul.f32 %v2516_v2, %v2577_v52  ;;  %v699_v14 = vmul.f32 %v2243_v61, %v2574_v40  ;;  %v2617_v38 = vmul.f32 %v2243_v61, %v2577_v52  ;;  %v107_v31 = vsel %vm105_vm3, %v100_v11, %v104_v35 }
  0xbd   :  { %v109_v39 = vsel %vm105_vm3, %v104_v35, %v100_v11  ;;  %v2625_v57 = vmul.f32 %v2585_v30, %v2580_v19  ;;  %v2629_v12 = vmul.f32 %v2585_v30, %v2583_v27  ;;  %v116_v17 = vsel %vm2480_vm4, %v107_v31, 0.0 }
  0xbe   :  { %v117_v0 = vsel %vm2486_vm5, %v109_v39, 0.0  ;;  %v2636_v42 = vrot.slane %v116_v17, %v2220_v47  ;;  %v2642_v35 = vrot.slane %v116_v17, %v2223_v48  ;;  %v2648_v44 = vrot.slane %v116_v17, %v2232_v54 }
  0xbf   :  { %v2639_v11 = vrot.slane %v117_v0, %v2220_v47  ;;  %v2645_v53 = vrot.slane %v117_v0, %v2223_v48  ;;  %v2651_v31 = vrot.slane %v117_v0, %v2232_v54  ;;  %v904_v39 = vadd.f32 %v900_v29, %v889_v15 }
  0xc0   :  { %3781 = vst [vmem:[#allocation59_spill] sm:$0xff] %v2636_v42  ;;  %3783 = vst [vmem:[#allocation61_spill] sm:$0xff] %v2642_v35  ;;  %v905_v21 = vadd.f32 %v901_v56, %v890_v28  ;;  %v2654_v37 = vrot.slane %v116_v17, %v2257_v4  ;;  %v2657_v47 = vrot.slane %v117_v0, %v2257_v4  ;;  %v928_v56 = vpop.permute.xlu1 %927  ;;  %v913_v17 = vpop.permute.xlu0 %912 }
  0xc1   :  { %3782 = vst [vmem:[#allocation60_spill] sm:$0xff] %v2639_v11  ;;  %3784 = vst [vmem:[#allocation62_spill] sm:$0xff] %v2645_v53  ;;  %v690_v52 = vmul.f32 %v2245_v62, %v2636_v42  ;;  %v2663_v48 = vmul.f32 %v2245_v62, %v2639_v11  ;;  %v701_v40 = vmul.f32 %v2243_v61, %v2642_v35 }
  0xc2   :  { %v2669_v15 = vmul.f32 %v2243_v61, %v2645_v53  ;;  %v891_v28 = vmul.f32 %v2498_v55, %v2636_v42  ;;  %v892_v29 = vmul.f32 %v2498_v55, %v2639_v11  ;;  %v870_v0 = vmul.f32 %v868_v1, %v2342_v13  ;;  %v3786_v61 = vld [vmem:[#allocation40_spill] sm:$0xff]  ;;  %v3788_v42 = vld [vmem:[#allocation34_spill] sm:$0xff] }
  0xc3   :  { %v871_v62 = vmul.f32 %v868_v1, %v2345_v3  ;;  %v872_v4 = vmul.f32 %v868_v1, %v2348_v51  ;;  %v873_v54 = vmul.f32 %v868_v1, %v2351_v5  ;;  %v814_v58 = vmul.f32 %v812_v9, %v3785_v45 }
  0xc4   :  { %v815_v18 = vmul.f32 %v812_v9, %v3786_v61  ;;  %v816_v26 = vmul.f32 %v812_v9, %v3787_v49  ;;  %v817_v25 = vmul.f32 %v812_v9, %v3788_v42  ;;  %v902_v55 = vmul.f32 %v2516_v2, %v2642_v35  ;;  %v150_v49 = vpop.permute.xlu1 %149  ;;  %v3801_v35 = vld [vmem:[#allocation27_spill] sm:$0xff] }
  0xc5   :  { %v903_v13 = vmul.f32 %v2516_v2, %v2645_v53  ;;  %v2688_v3 = vadd.f32 %v870_v0, %v2533_v7  ;;  %v2691_v51 = vadd.f32 %v871_v62, %v2536_v60  ;;  %v2694_v1 = vadd.f32 %v872_v4, %v2539_v8  ;;  %v123_v2 = vpop.permute.xlu0 %122  ;;  %v3793_v62 = vld [vmem:[#allocation43_spill] sm:$0xff]  ;;  %v3800_v53 = vld [vmem:[#allocation36_spill] sm:$0xff] }
  0xc6   :  { %v2697_v61 = vadd.f32 %v873_v54, %v2542_v22  ;;  %v2700_v9 = vadd.f32 %v814_v58, %v2524_v63  ;;  %v2703_v42 = vadd.f32 %v815_v18, %v2526_v10  ;;  %v2706_v7 = vadd.f32 %v816_v26, %v2528_v20 }
  0xc7   :  { %v2709_v60 = vadd.f32 %v817_v25, %v2530_v6  ;;  %v2712_v4 = vmul.f32 %v928_v56, %v2580_v19  ;;  %v2715_v54 = vmul.f32 %v928_v56, %v2583_v27  ;;  %v2718_v58 = vmul.f32 %v928_v56, %v2654_v37  ;;  %v3792_v25 = vld [vmem:[#allocation44_spill] sm:$0xff] }
  0xc8   :  { %3789 = vst [vmem:[#allocation63_spill] sm:$0xff] %v2697_v61  ;;  %v2721_v18 = vmul.f32 %v928_v56, %v2657_v47  ;;  %v915_v63 = vmul.f32 %v913_v17, %v2592_v50  ;;  %v916_v26 = vmul.f32 %v913_v17, %v2595_v59  ;;  %v906_v10 = vadd.f32 %v902_v55, %v891_v28  ;;  %v3794_v56 = vld [vmem:[#allocation37_spill] sm:$0xff]  ;;  %v290_v55 = vpop.permute.xlu1 %289 }
  0xc9   :  { %3790 = vst [vmem:[#allocation64_spill] sm:$0xff] %v2709_v60  ;;  %v907_v20 = vadd.f32 %v903_v13, %v892_v29  ;;  %v617_v6 = vadd.f32 %v3792_v25, %v2563_v34  ;;  %v703_v8 = vadd.f32 %v699_v14, %v2599_v43  ;;  %v917_v22 = vmul.f32 %v913_v17, %v2648_v44  ;;  %v3796_v13 = vld [vmem:[#allocation38_spill] sm:$0xff]  ;;  %v3797_v25 = vld [vmem:[#allocation29_spill] sm:$0xff]  ;;  %v3799_v60 = vld [vmem:[#allocation35_spill] sm:$0xff]  ;;  %v243_v11 = vpop.permute.xlu0 %242 }
  0xca   :  { %3791 = vst [vmem:[#allocation65_spill] sm:$0xff] %v2721_v18  ;;  %v918_v0 = vmul.f32 %v913_v17, %v2651_v31  ;;  %v714_v27 = vmul.f32 %v3793_v62, %v2592_v50  ;;  %v168_v19 = vmul.f32 %v3794_v56, %v150_v49  ;;  %v919_v45 = vadd.f32 %v915_v63, %v904_v39  ;;  %v3795_v18 = vld [vmem:[#allocation46_spill] sm:$0xff]  ;;  %v3802_v39 = vld [vmem:[#allocation28_spill] sm:$0xff] }
  0xcb   :  { %v2733_v5 = vadd.f32 %v916_v26, %v905_v21  ;;  %v677_v28 = vadd.f32 %v3795_v18, %v617_v6  ;;  %v169_v29 = vmul.f32 %v3796_v13, %v150_v49  ;;  %v170_v43 = vmul.f32 %v3797_v25, %v150_v49  ;;  %v3798_v14 = vld [vmem:[#allocation30_spill] sm:$0xff]  ;;  %v3803_v63 = vld [vmem:[#allocation48_spill] sm:$0xff] }
  0xcc   :  { %v718_v34 = vadd.f32 %v714_v27, %v703_v8  ;;  %v171_v61 = vmul.f32 %v3798_v14, %v150_v49  ;;  %v141_v17 = vmul.f32 %v3799_v60, %v123_v2  ;;  %v142_v50 = vmul.f32 %v3800_v53, %v123_v2 }
  0xcd   :  { %v143_v56 = vmul.f32 %v3801_v35, %v123_v2  ;;  %v144_v21 = vmul.f32 %v3802_v39, %v123_v2  ;;  %v619_v18 = vadd.f32 %v3803_v63, %v2565_v36  ;;  %v705_v27 = vadd.f32 %v701_v40, %v690_v52 }
  0xce   :  { %v733_v26 = vadd.f32 %v2625_v57, %v718_v34  ;;  %v172_v6 = vadd.f32 %v168_v19, %v141_v17  ;;  %v716_v8 = vmul.f32 %v3793_v62, %v2648_v44  ;;  %v921_v49 = vadd.f32 %v917_v22, %v906_v10  ;;  %v3804_v57 = vld [vmem:[#allocation45_spill] sm:$0xff]  ;;  %v3806_v22 = vld [vmem:[#allocation14_spill] sm:$0xff] }
  0xcf   :  { %v173_v13 = vadd.f32 %v169_v29, %v142_v50  ;;  %v2748_v60 = vadd.f32 %v170_v43, %v143_v56  ;;  %v2750_v25 = vadd.f32 %v171_v61, %v144_v21  ;;  %v679_v35 = vadd.f32 %v2519_v32, %v619_v18  ;;  %v3805_v50 = vld [vmem:[#allocation13_spill] sm:$0xff]  ;;  %v341_v61 = vpop.permute.xlu1 %340  ;;  %v3808_v43 = vld [vmem:[#allocation18_spill] sm:$0xff]  ;;  %v3809_v56 = vld [vmem:[#allocation11_spill] sm:$0xff] }
  0xd0   :  { %v737_v53 = vadd.f32 %v733_v26, %v677_v28  ;;  %v720_v2 = vadd.f32 %v716_v8, %v705_v27  ;;  %v731_v36 = vmul.f32 %v2585_v30, %v2654_v37  ;;  %v618_v19 = vadd.f32 %v3804_v57, %v2587_v41  ;;  %v3807_v29 = vld [vmem:[#allocation17_spill] sm:$0xff]  ;;  %v181_v41 = vpop.permute.xlu0 %180  ;;  %v3811_v21 = vld [vmem:[#allocation15_spill] sm:$0xff]  ;;  %v3812_v26 = vld [vmem:[#allocation16_spill] sm:$0xff] }
  0xd1   :  { %v704_v40 = vadd.f32 %v2617_v38, %v2603_v16  ;;  %v715_v52 = vmul.f32 %v3793_v62, %v2595_v59  ;;  %v328_v10 = vmul.f32 %v3805_v50, %v290_v55  ;;  %v329_v28 = vmul.f32 %v3806_v22, %v290_v55  ;;  %v3810_v38 = vld [vmem:[#allocation12_spill] sm:$0xff]  ;;  %v3813_v8 = vld [vmem:[#allocation49_spill] sm:$0xff]  ;;  %v3814_v57 = vld [vmem:[#allocation47_spill] sm:$0xff] }
  0xd2   :  { %741 = vrot.lane.b32.xlu0 %v737_v53, %s2024_s1  ;;  %v735_v32 = vadd.f32 %v731_v36, %v720_v2  ;;  %v330_v34 = vmul.f32 %v3807_v29, %v290_v55  ;;  %v331_v14 = vmul.f32 %v3808_v43, %v290_v55  ;;  %v281_v16 = vmul.f32 %v3809_v56, %v243_v11 }
  0xd3   :  { %v719_v17 = vadd.f32 %v715_v52, %v704_v40  ;;  %v282_v39 = vmul.f32 %v3810_v38, %v243_v11  ;;  %v283_v63 = vmul.f32 %v3811_v21, %v243_v11  ;;  %v284_v27 = vmul.f32 %v3812_v26, %v243_v11 }
  0xd4   :  { %v739_v18 = vadd.f32 %v735_v32, %v679_v35  ;;  %v620_v53 = vadd.f32 %v3813_v8, %v2589_v46  ;;  %v706_v2 = vadd.f32 %v2669_v15, %v2663_v48  ;;  %v922_v36 = vadd.f32 %v918_v0, %v907_v20  ;;  %v474_v15 = vpop.permute.xlu1 %473 }
  0xd5   :  { %v678_v55 = vadd.f32 %v3814_v57, %v618_v19  ;;  %v734_v40 = vadd.f32 %v2629_v12, %v719_v17  ;;  %v332_v52 = vadd.f32 %v328_v10, %v281_v16  ;;  %v333_v50 = vadd.f32 %v329_v28, %v282_v39  ;;  %v447_v10 = vpop.permute.xlu0 %446  ;;  %v3819_v16 = vld [vmem:[#allocation31_spill] sm:$0xff] }
  0xd6   :  { %743 = vrot.lane.b32.xlu1 %v739_v18, %s2024_s1  ;;  %v334_v22 = vadd.f32 %v330_v34, %v283_v63  ;;  %v335_v29 = vadd.f32 %v331_v14, %v284_v27  ;;  %v717_v11 = vmul.f32 %v3793_v62, %v2651_v31  ;;  %v680_v46 = vadd.f32 %v2522_v33, %v620_v53  ;;  %v3815_v62 = vld [vmem:[#allocation19_spill] sm:$0xff]  ;;  %v3816_v33 = vld [vmem:[#allocation20_spill] sm:$0xff] }
  0xd7   :  { %v738_v35 = vadd.f32 %v734_v40, %v678_v55  ;;  %v934_v32 = vadd.f32 %v2712_v4, %v919_v45  ;;  %v379_v48 = vmul.f32 %v2295_v23, %v341_v61  ;;  %v732_v12 = vmul.f32 %v2585_v30, %v2657_v47  ;;  %v3817_v45 = vld [vmem:[#allocation41_spill] sm:$0xff]  ;;  %v3818_v23 = vld [vmem:[#allocation42_spill] sm:$0xff] }
  0xd8   :  { %v721_v20 = vadd.f32 %v717_v11, %v706_v2  ;;  %v878_v0 = vadd.f32 %v2688_v3, %v2700_v9  ;;  %v380_v19 = vmul.f32 %v2298_v24, %v341_v61  ;;  %v381_v28 = vmul.f32 %v3815_v62, %v341_v61  ;;  %v3820_v3 = vld [vmem:[#allocation32_spill] sm:$0xff]  ;;  %v392_v8 = vpop.permute.xlu1 %391 }
  0xd9   :  { %745 = vrot.lane.b32.xlu0 %v738_v35, %s2024_s1  ;;  %v382_v34 = vmul.f32 %v3816_v33, %v341_v61  ;;  %v199_v4 = vmul.f32 %v3817_v45, %v181_v41  ;;  %v200_v43 = vmul.f32 %v3818_v23, %v181_v41  ;;  %v383_v56 = vadd.f32 %v379_v48, %v332_v52  ;;  %v212_v2 = vpop.permute.xlu0 %211  ;;  %v3827_v52 = vld [vmem:[#allocation59_spill] sm:$0xff]  ;;  %v3829_v11 = vld [vmem:[#allocation64_spill] sm:$0xff]  ;;  %v3834_v23 = vld [vmem:[#allocation25_spill] sm:$0xff] }
  0xda   :  { %v736_v14 = vadd.f32 %v732_v12, %v721_v20  ;;  %v938_v17 = vadd.f32 %v934_v32, %v878_v0  ;;  %v384_v30 = vadd.f32 %v380_v19, %v333_v50  ;;  %v201_v38 = vmul.f32 %v3819_v16, %v181_v41  ;;  %v3830_v35 = vld [vmem:[#allocation63_spill] sm:$0xff]  ;;  %v3831_v32 = vld [vmem:[#allocation65_spill] sm:$0xff]  ;;  %v3833_v62 = vld [vmem:[#allocation24_spill] sm:$0xff] }
  0xdb   :  { %v202_v9 = vmul.f32 %v3820_v3, %v181_v41  ;;  %v203_v24 = vadd.f32 %v199_v4, %v172_v6  ;;  %v204_v39 = vadd.f32 %v200_v43, %v173_v13  ;;  %v880_v63 = vadd.f32 %v2694_v1, %v2706_v7  ;;  %v3821_v13 = vld [vmem:[#allocation54_spill] sm:$0xff]  ;;  %v3822_v7 = vld [vmem:[#allocation55_spill] sm:$0xff]  ;;  %v3837_v3 = vld [vmem:[#allocation40_spill] sm:$0xff] }
  0xdc   :  { %v740_v21 = vadd.f32 %v736_v14, %v680_v46  ;;  %v936_v61 = vadd.f32 %v2718_v58, %v921_v49  ;;  %v879_v18 = vadd.f32 %v2691_v51, %v2703_v42  ;;  %v205_v26 = vadd.f32 %v201_v38, %v2748_v60  ;;  %v3823_v49 = vld [vmem:[#allocation61_spill] sm:$0xff]  ;;  %v3824_v42 = vld [vmem:[#allocation62_spill] sm:$0xff]  ;;  %v3825_v60 = vld [vmem:[#allocation52_spill] sm:$0xff] }
  0xdd   :  { %942 = vrot.lane.b32.xlu0 %v938_v17, %s2025_s19  ;;  %v206_v27 = vadd.f32 %v202_v9, %v2750_v25  ;;  %v935_v6 = vadd.f32 %v2715_v54, %v2733_v5  ;;  %v492_v41 = vmul.f32 %v3821_v13, %v474_v15  ;;  %v493_v58 = vmul.f32 %v3822_v7, %v474_v15  ;;  %v3826_v25 = vld [vmem:[#allocation53_spill] sm:$0xff]  ;;  %v3828_v54 = vld [vmem:[#allocation60_spill] sm:$0xff]  ;;  %v3832_v20 = vld [vmem:[#allocation23_spill] sm:$0xff] }
  0xde   :  { %747 = vrot.lane.b32.xlu1 %v740_v21, %s2024_s1  ;;  %v940_v1 = vadd.f32 %v936_v61, %v880_v63  ;;  %v494_v51 = vmul.f32 %v3823_v49, %v474_v15  ;;  %v495_v53 = vmul.f32 %v3824_v42, %v474_v15  ;;  %v465_v55 = vmul.f32 %v3825_v60, %v447_v10  ;;  %v3835_v43 = vld [vmem:[#allocation26_spill] sm:$0xff]  ;;  %v536_v21 = vpop.permute.xlu1 %535 }
  0xdf   :  { %v939_v57 = vadd.f32 %v935_v6, %v879_v18  ;;  %v466_v40 = vmul.f32 %v3826_v25, %v447_v10  ;;  %v467_v5 = vmul.f32 %v3827_v52, %v447_v10  ;;  %v468_v50 = vmul.f32 %v3828_v54, %v447_v10  ;;  %v3838_v18 = vld [vmem:[#allocation33_spill] sm:$0xff]  ;;  %v3839_v13 = vld [vmem:[#allocation34_spill] sm:$0xff] }
  0xe0   :  { %v881_v46 = vadd.f32 %v3830_v35, %v3829_v11  ;;  %v937_v48 = vadd.f32 %v3831_v32, %v922_v36  ;;  %v430_v12 = vmul.f32 %v3832_v20, %v392_v8  ;;  %v496_v15 = vadd.f32 %v492_v41, %v465_v55  ;;  %v3836_v36 = vld [vmem:[#allocation39_spill] sm:$0xff] }
  0xe1   :  { %946 = vrot.lane.b32.xlu0 %v939_v57, %s2025_s19  ;;  %v497_v0 = vadd.f32 %v493_v58, %v466_v40  ;;  %v498_v19 = vadd.f32 %v494_v51, %v467_v5  ;;  %v431_v33 = vmul.f32 %v3833_v62, %v392_v8  ;;  %v385_v45 = vadd.f32 %v381_v28, %v334_v22  ;;  %v505_v28 = vpop.permute.xlu0 %504  ;;  %v3841_v51 = vld [vmem:[#allocation57_spill] sm:$0xff] }
  0xe2   :  { %944 = vrot.lane.b32.xlu1 %v940_v1, %s2025_s19  ;;  %v499_v4 = vadd.f32 %v495_v53, %v468_v50  ;;  %v432_v10 = vmul.f32 %v3834_v23, %v392_v8  ;;  %v433_v14 = vmul.f32 %v3835_v43, %v392_v8  ;;  %v386_v17 = vadd.f32 %v382_v34, %v335_v29  ;;  %v3840_v8 = vld [vmem:[#allocation56_spill] sm:$0xff]  ;;  %v3842_v53 = vld [vmem:[#allocation58_spill] sm:$0xff] }
  0xe3   :  { %v941_v16 = vadd.f32 %v937_v48, %v881_v46  ;;  %v230_v38 = vmul.f32 %v3836_v36, %v212_v2  ;;  %v231_v9 = vmul.f32 %v3837_v3, %v212_v2  ;;  %v434_v63 = vadd.f32 %v430_v12, %v383_v56  ;;  %v3843_v48 = vld [vmem:[#allocation7_spill] sm:$0xff] }
  0xe4   :  { %v435_v61 = vadd.f32 %v431_v33, %v384_v30  ;;  %v232_v6 = vmul.f32 %v3838_v18, %v212_v2  ;;  %v233_v22 = vmul.f32 %v3839_v13, %v212_v2  ;;  %v436_v41 = vadd.f32 %v432_v10, %v385_v45  ;;  %v3844_v33 = vld [vmem:[#allocation9_spill] sm:$0xff] }
  0xe5   :  { %v437_v1 = vadd.f32 %v433_v14, %v386_v17  ;;  %v234_v7 = vadd.f32 %v230_v38, %v203_v24  ;;  %v235_v58 = vadd.f32 %v231_v9, %v204_v39  ;;  %v554_v49 = vmul.f32 %v3840_v8, %v536_v21 }
  0xe6   :  { %948 = vrot.lane.b32.xlu1 %v941_v16, %s2025_s19  ;;  %v236_v29 = vadd.f32 %v232_v6, %v205_v26  ;;  %v237_v34 = vadd.f32 %v233_v22, %v206_v27  ;;  %v555_v42 = vmul.f32 %v3841_v51, %v536_v21  ;;  %v523_v56 = vmul.f32 %v3842_v53, %v505_v28 }
  0xe7   :  { %v524_v30 = vmul.f32 %v2595_v59, %v505_v28  ;;  %v525_v57 = vmul.f32 %v2648_v44, %v505_v28  ;;  %v526_v2 = vmul.f32 %v2651_v31, %v505_v28  ;;  %v556_v60 = vmul.f32 %v2654_v37, %v536_v21 }
  0xe8   :  { %v557_v24 = vmul.f32 %v2657_v47, %v536_v21  ;;  %v438_v39 = vadd.f32 %v434_v63, %v234_v7  ;;  %v439_v55 = vadd.f32 %v435_v61, %v235_v58  ;;  %v527_v26 = vadd.f32 %v523_v56, %v496_v15 }
  0xe9   :  { %v528_v27 = vadd.f32 %v524_v30, %v497_v0  ;;  %v529_v25 = vadd.f32 %v525_v57, %v498_v19  ;;  %v530_v40 = vadd.f32 %v526_v2, %v499_v4  ;;  %v440_v52 = vadd.f32 %v436_v41, %v236_v29 }
  0xea   :  { %v441_v5 = vadd.f32 %v437_v1, %v237_v34  ;;  %v558_v54 = vadd.f32 %v554_v49, %v527_v26  ;;  %vm749_vm6 = vcmp.lt.s32.totalorder %v3843_v48, 16  ;;  %vm64_vm7 = vcmp.ge.s32.totalorder %v3843_v48, 16 }
  0xeb   :  { %v559_v50 = vadd.f32 %v555_v42, %v528_v27  ;;  %v560_v11 = vadd.f32 %v556_v60, %v529_v25  ;;  %v561_v59 = vadd.f32 %v557_v24, %v530_v40  ;;  %vm950_vm8 = vcmp.lt.s32.totalorder %v3843_v48, 112 }
  0xec   :  { %v562_v35 = vadd.f32 %v558_v54, %v438_v39  ;;  %vm67_vm9 = vcmp.lt.s32.totalorder %v3844_v33, 240  ;;  %v1017_v54 = vld [vmem:[%s3609_s4] sm:$0xf] }
  0xed   :  { %v563_v44 = vadd.f32 %v559_v50, %v439_v55  ;;  %v564_v46 = vadd.f32 %v560_v11, %v440_v52  ;;  %v565_v31 = vadd.f32 %v561_v59, %v441_v5  ;;  %v1959_v50 = vld [vmem:[%s3610_s5 + $0x10] sm:$0xf]  ;;  %v1957_v11 = vld [vmem:[%s3610_s5 + $0x8] sm:$0xf]  ;;  %v1963_v59 = vld [vmem:[%s3610_s5 + $0x20] sm:$0xf] }
 0x144   :  { %v742_v32 = vpop.permute.xlu0 %741 }
 0x148   :  { %v744_v37 = vpop.permute.xlu1 %743 }
 0x14b   :  { %v746_v47 = vpop.permute.xlu0 %745 }
 0x14c   :  { %v752_v20 = vsel %vm749_vm6, %v746_v47, %v742_v32  ;;  %v750_v19 = vsel %vm749_vm6, %v742_v32, %v746_v47  ;;  %v1973_v32 = vld [vmem:[%s3610_s5 + $0x78] sm:$0xf]  ;;  %v1970_v47 = vld [vmem:[%s3610_s5 + $0x6c] sm:$0xf] }
 0x14d   :  { %v758_v15 = vsel %vm64_vm7, %v752_v20, 0.0  ;;  %v763_v23 = vadd.f32 %v750_v19, %v563_v44  ;;  %v1971_v44 = vld [vmem:[%s3610_s5 + $0x70] sm:$0xf] }
 0x14e   :  { %v762_v45 = vadd.f32 %v758_v15, %v562_v35  ;;  %v1967_v35 = vld [vmem:[%s3610_s5 + $0x60] sm:$0xf] }
 0x14f   :  { %v943_v12 = vpop.permute.xlu0 %942 }
 0x150   :  { %v748_v0 = vpop.permute.xlu1 %747 }
 0x151   :  { %v753_v62 = vsel %vm749_vm6, %v748_v0, %v744_v37  ;;  %v751_v38 = vsel %vm749_vm6, %v744_v37, %v748_v0  ;;  %v1976_v37 = vld [vmem:[%s3610_s5 + $0x84] sm:$0xf] }
 0x152   :  { %v760_v17 = vsel %vm64_vm7, %v753_v62, 0.0  ;;  %v765_v18 = vadd.f32 %v751_v38, %v565_v31  ;;  %v1965_v31 = vld [vmem:[%s3610_s5 + $0x28] sm:$0xf]  ;;  %v1968_v38 = vld [vmem:[%s3610_s5 + $0x64] sm:$0xf] }
 0x153   :  { %v947_v4 = vpop.permute.xlu0 %946  ;;  %v764_v21 = vadd.f32 %v760_v17, %v564_v46  ;;  %v1958_v46 = vld [vmem:[%s3610_s5 + $0xc] sm:$0xf]  ;;  %v1960_v17 = vld [vmem:[%s3610_s5 + $0x14] sm:$0xf] }
 0x154   :  { %v945_v10 = vpop.permute.xlu1 %944  ;;  %v951_v43 = vsel %vm950_vm8, %v943_v12, %v947_v4  ;;  %v953_v14 = vsel %vm950_vm8, %v947_v4, %v943_v12  ;;  %v1006_v4 = vld [vmem:[%s3608_s3] sm:$0xf] }
 0x155   :  { %v960_v16 = vsel %vm67_vm9, %v953_v14, 0.0  ;;  %v963_v36 = vadd.f32 %v951_v43, %v762_v45  ;;  %v1431_v43 = vld [vmem:[%s3610_s5] sm:$0xf]  ;;  %v1956_v14 = vld [vmem:[%s3610_s5 + $0x4] sm:$0xf] }
 0x156   :  { %v964_v3 = vadd.f32 %v960_v16, %v763_v23  ;;  %v1961_v16 = vld [vmem:[%s3610_s5 + $0x18] sm:$0xf] }
 0x157   :  { %v968_v9 = vsel %vm967_vm10, %v963_v36, 0.0 }
 0x158   :  { %v949_v63 = vpop.permute.xlu1 %948  ;;  %v969_v61 = vsel %vm967_vm10, %v964_v3, 0.0 }
 0x159   :  { %v952_v6 = vsel %vm950_vm8, %v945_v10, %v949_v63  ;;  %v954_v13 = vsel %vm950_vm8, %v949_v63, %v945_v10  ;;  %v970_v22 = vadd.f32 %v969_v61, %v968_v9  ;;  %v1962_v9 = vld [vmem:[%s3610_s5 + $0x1c] sm:$0xf]  ;;  %v1975_v63 = vld [vmem:[%s3610_s5 + $0x80] sm:$0xf]  ;;  %v1966_v61 = vld [vmem:[%s3610_s5 + $0x2c] sm:$0xf] }
 0x15a   :  { %v962_v28 = vsel %vm67_vm9, %v954_v13, 0.0  ;;  %v965_v41 = vadd.f32 %v952_v6, %v764_v21  ;;  %v1969_v21 = vld [vmem:[%s3610_s5 + $0x68] sm:$0xf] }
 0x15b   :  { %v966_v1 = vadd.f32 %v962_v28, %v765_v18  ;;  %971 = vadd.xlane.f32.xlu0 %v970_v22  ;;  %v1974_v18 = vld [vmem:[%s3610_s5 + $0x7c] sm:$0xf] }
 0x15c   :  { %v973_v7 = vsel %vm967_vm10, %v965_v41, 0.0 }
 0x15d   :  { %v974_v58 = vsel %vm967_vm10, %v966_v1, 0.0 }
 0x15e   :  { %v975_v29 = vadd.f32 %v974_v58, %v973_v7 }
 0x160   :  { %976 = vadd.xlane.f32.xlu1 %v975_v29 }
 0x1e8   :  { %v972_v34 = vpop.xlane.xlu0 %971 }
 0x1e9   :  { %v978_v49 = vsel %vm967_vm10, %v972_v34, 0.0 }
 0x1ed   :  { %v977_v8 = vpop.xlane.xlu1 %976 }
 0x1ee   :  { %v979_v51 = vsel %vm967_vm10, %v977_v8, 0.0 }
 0x1ef   :  { %v980_v42 = vadd.f32 %v979_v51, %v978_v49 }
 0x1f1   :  { %v981_v53 = vmul.f32 0.001953125, %v980_v42 }
 0x1f3   :  { %v2869_v56 = vsub.f32 %v963_v36, %v981_v53  ;;  %v2871_v30 = vsub.f32 %v964_v3, %v981_v53  ;;  %v2873_v57 = vsub.f32 %v965_v41, %v981_v53  ;;  %v2875_v2 = vsub.f32 %v966_v1, %v981_v53  ;;  %v1964_v36 = vld [vmem:[%s3610_s5 + $0x24] sm:$0xf]  ;;  %v1972_v3 = vld [vmem:[%s3610_s5 + $0x74] sm:$0xf]  ;;  %v1978_v53 = vld [vmem:[%s3610_s5 + $0x8c] sm:$0xf] }
 0x1f5   :  { %v986_v60 = vmul.f32 %v2869_v56, %v2869_v56  ;;  %v987_v24 = vmul.f32 %v2871_v30, %v2871_v30  ;;  %v988_v39 = vmul.f32 %v2873_v57, %v2873_v57  ;;  %v989_v55 = vmul.f32 %v2875_v2, %v2875_v2 }
 0x1f7   :  { %v990_v26 = vsel %vm967_vm10, %v986_v60, 0.0  ;;  %v991_v27 = vsel %vm967_vm10, %v987_v24, 0.0  ;;  %v995_v40 = vsel %vm967_vm10, %v988_v39, 0.0  ;;  %v996_v52 = vsel %vm967_vm10, %v989_v55, 0.0  ;;  %v1948_v60 = vld [vmem:[%s3610_s5 + $0x40] sm:$0xf] }
 0x1f8   :  { %v992_v25 = vadd.f32 %v991_v27, %v990_v26  ;;  %v997_v5 = vadd.f32 %v996_v52, %v995_v40  ;;  %v1950_v24 = vld [vmem:[%s3610_s5 + $0x48] sm:$0xf]  ;;  %v1946_v39 = vld [vmem:[%s3610_s5 + $0x38] sm:$0xf]  ;;  %v1953_v55 = vld [vmem:[%s3610_s5 + $0x54] sm:$0xf] }
 0x1f9   :  { %v1952_v26 = vld [vmem:[%s3610_s5 + $0x50] sm:$0xf]  ;;  %v1951_v27 = vld [vmem:[%s3610_s5 + $0x4c] sm:$0xf]  ;;  %v1955_v40 = vld [vmem:[%s3610_s5 + $0x5c] sm:$0xf] }
 0x1fa   :  { %993 = vadd.xlane.f32.xlu0 %v992_v25  ;;  %v1947_v25 = vld [vmem:[%s3610_s5 + $0x3c] sm:$0xf]  ;;  %v1954_v52 = vld [vmem:[%s3610_s5 + $0x58] sm:$0xf] }
 0x1fe   :  { %998 = vadd.xlane.f32.xlu0 %v997_v5 }
 0x214   :  { %1020 = vperm.xlu0 %1987, %v1017_v54  }
 0x218   :  { %1490 = vperm.xlu0 %1987, %v1959_v50  }
 0x21c   :  { %1460 = vperm.xlu0 %1987, %v1957_v11  }
 0x220   :  { %1550 = vperm.xlu0 %1987, %v1963_v59  }
 0x224   :  { %1630 = vperm.xlu0 %1987, %v1967_v35  }
 0x228   :  { %1686 = vperm.xlu0 %1987, %v1971_v44  }
 0x22c   :  { %1475 = vperm.xlu0 %1987, %v1958_v46  }
 0x230   :  { %1576 = vperm.xlu0 %1987, %v1965_v31  }
 0x234   :  { %1712 = vperm.xlu0 %1987, %v1973_v32  }
 0x238   :  { %1757 = vperm.xlu0 %1987, %v1976_v37  }
 0x23c   :  { %1671 = vperm.xlu0 %1987, %v1970_v47  }
 0x287   :  { %v994_v20 = vpop.xlane.xlu0 %993 }
 0x288   :  { %v1000_v15 = vsel %vm967_vm10, %v994_v20, 0.0 }
 0x28b   :  { %v999_v12 = vpop.xlane.xlu0 %998 }
 0x28c   :  { %v1001_v0 = vsel %vm967_vm10, %v999_v12, 0.0 }
 0x28d   :  { %v1002_v19 = vadd.f32 %v1001_v0, %v1000_v15 }
 0x28f   :  { %v1003_v62 = vmul.f32 0.001953125, %v1002_v19 }
 0x291   :  { %v1004_v45 = vadd.f32 1e-05, %v1003_v62 }
 0x293   :  { %1991 = vrsqrt.f32 %v1004_v45  ;;  %v1021_v1 = vpop.permute.xlu0 %1020  ;;  %v3845_v45 = vld [vmem:[#allocation5_spill] sm:$0xff] }
 0x297   :  { %v1491_v50 = vpop.permute.xlu0 %1490 }
 0x29b   :  { %v3037_v59 = vpop.permute.xlu0 %1460 }
 0x29d   :  { %v1992_v23 = vpop.eup %1991 }
 0x29e   :  { %v1007_v10 = vmul.f32 %v1992_v23, %v1006_v4 }
 0x29f   :  { %v3039_v44 = vpop.permute.xlu0 %1550 }
 0x2a0   :  { %1010 = vperm.xlu1 %1988, %v1007_v10  }
 0x2a3   :  { %v3043_v31 = vpop.permute.xlu0 %1630 }
 0x2a4   :  { %1434 = vperm.xlu1 %1988, %v1431_v43  }
 0x2a7   :  { %v1687_v37 = vpop.permute.xlu0 %1686 }
 0x2a8   :  { %1445 = vperm.xlu1 %1988, %v1956_v14   ;;  %v3850_v14 = vld [vmem:[#allocation6_spill] sm:$0xff] }
 0x2ab   :  { %v3047_v20 = vpop.permute.xlu0 %1475 }
 0x2ac   :  { %1501 = vperm.xlu1 %1988, %v1960_v17  }
 0x2af   :  { %v3049_v15 = vpop.permute.xlu0 %1576 }
 0x2b0   :  { %1516 = vperm.xlu1 %1988, %v1961_v16  }
 0x2b3   :  { %v1713_v19 = vpop.permute.xlu0 %1712 }
 0x2b4   :  { %1561 = vperm.xlu1 %1988, %v1964_v36  }
 0x2b8   :  { %1641 = vperm.xlu1 %1988, %v1968_v38   ;;  %v3083_v38 = vpop.permute.xlu0 %1757 }
 0x2bc   :  { %1697 = vperm.xlu1 %1988, %v1972_v3  }
 0x2c0   :  { %1531 = vperm.xlu1 %1988, %v1962_v9  }
 0x2c4   :  { %1656 = vperm.xlu1 %1988, %v1969_v21  }
 0x2c8   :  { %1746 = vperm.xlu1 %1988, %v1975_v63  }
 0x2cc   :  { %1591 = vperm.xlu1 %1988, %v1966_v61  }
 0x2d0   :  { %1727 = vperm.xlu1 %1988, %v1974_v18  }
 0x31f   :  { %v1011_v6 = vpop.permute.xlu1 %1010 }
 0x320   :  { %v1013_v13 = vmul.f32 %v1011_v6, %v2869_v56  ;;  %v1014_v22 = vmul.f32 %v1011_v6, %v2871_v30  ;;  %v1015_v28 = vmul.f32 %v1011_v6, %v2873_v57  ;;  %v1016_v41 = vmul.f32 %v1011_v6, %v2875_v2  ;;  %v1977_v56 = vld [vmem:[%s3610_s5 + $0x88] sm:$0xf]  ;;  %v1945_v30 = vld [vmem:[%s3610_s5 + $0x34] sm:$0xf]  ;;  %v1944_v57 = vld [vmem:[%s3610_s5 + $0x30] sm:$0xf] }
 0x321   :  { %v1949_v2 = vld [vmem:[%s3610_s5 + $0x44] sm:$0xf]  ;;  %v3853_v6 = vld [vmem:[#allocation8_spill] sm:$0xff] }
 0x322   :  { %v1023_v7 = vadd.f32 %v1021_v1, %v1013_v13  ;;  %v1025_v58 = vadd.f32 %v1021_v1, %v1015_v28  ;;  %v1024_v29 = vadd.f32 %v1021_v1, %v1014_v22  ;;  %v1026_v34 = vadd.f32 %v1021_v1, %v1016_v41 }
 0x323   :  { %v3033_v5 = vpop.permute.xlu1 %1434 }
 0x324   :  { %v2967_v8 = vmax.f32 %v1023_v7, 0.0  ;;  %v2969_v49 = vmax.f32 %v1025_v58, 0.0  ;;  %v2975_v51 = vmax.f32 %v1024_v29, 0.0  ;;  %v2977_v42 = vmax.f32 %v1026_v34, 0.0 }
 0x326   :  { %1033 = vrot.lane.b32.xlu1 %v2969_v49, %s2022_s12  ;;  %1031 = vrot.lane.b32.xlu0 %v2967_v8, %s2022_s12  ;;  %v3057_v4 = vrot.slane %v2967_v8, %v3845_v45  ;;  %v3061_v23 = vrot.slane %v2975_v51, %v3845_v45  ;;  %v3065_v10 = vrot.slane %v2969_v49, %v3845_v45 }
 0x327   :  { %v3035_v54 = vpop.permute.xlu1 %1445  ;;  %v3069_v43 = vrot.slane %v2977_v42, %v3845_v45  ;;  %v3073_v17 = vrot.slane %v2967_v8, %v3850_v14  ;;  %v3077_v16 = vrot.slane %v2975_v51, %v3850_v14  ;;  %v3081_v36 = vrot.slane %v2969_v49, %v3850_v14 }
 0x328   :  { %3846 = vst [vmem:[#allocation44_spill] sm:$0xff] %v3057_v4  ;;  %3847 = vst [vmem:[#allocation43_spill] sm:$0xff] %v3061_v23  ;;  %v3087_v3 = vrot.slane %v2977_v42, %v3850_v14  ;;  %v1493_v9 = vmul.f32 %v1491_v50, %v3057_v4  ;;  %v1494_v21 = vmul.f32 %v1491_v50, %v3061_v23 }
 0x329   :  { %3848 = vst [vmem:[#allocation37_spill] sm:$0xff] %v3065_v10  ;;  %3849 = vst [vmem:[#allocation46_spill] sm:$0xff] %v3069_v43  ;;  %v1495_v63 = vmul.f32 %v1491_v50, %v3065_v10  ;;  %v1496_v18 = vmul.f32 %v1491_v50, %v3069_v43  ;;  %v3097_v13 = vrot.slane %v2967_v8, %v3853_v6 }
 0x32a   :  { %1037 = vrot.lane.b32.xlu1 %v2977_v42, %s2022_s12  ;;  %1035 = vrot.lane.b32.xlu0 %v2975_v51, %s2022_s12  ;;  %3851 = vst [vmem:[#allocation38_spill] sm:$0xff] %v3081_v36  ;;  %3852 = vst [vmem:[#allocation29_spill] sm:$0xff] %v3087_v3  ;;  %v3101_v22 = vrot.slane %v2975_v51, %v3853_v6  ;;  %v3105_v28 = vrot.slane %v2969_v49, %v3853_v6 }
 0x32b   :  { %v1502_v11 = vpop.permute.xlu1 %1501  ;;  %3854 = vst [vmem:[#allocation30_spill] sm:$0xff] %v3097_v13  ;;  %v3110_v1 = vrot.slane %v2977_v42, %v3853_v6  ;;  %v1689_v7 = vmul.f32 %v1687_v37, %v3057_v4  ;;  %v1690_v58 = vmul.f32 %v1687_v37, %v3061_v23 }
 0x32c   :  { %3855 = vst [vmem:[#allocation35_spill] sm:$0xff] %v3101_v22  ;;  %3856 = vst [vmem:[#allocation36_spill] sm:$0xff] %v3105_v28  ;;  %v1504_v41 = vmul.f32 %v1502_v11, %v3073_v17  ;;  %v1505_v29 = vmul.f32 %v1502_v11, %v3077_v16  ;;  %v1506_v34 = vmul.f32 %v1502_v11, %v3081_v36 }
 0x32d   :  { %3857 = vst [vmem:[#allocation27_spill] sm:$0xff] %v3110_v1  ;;  %v1716_v50 = vmul.f32 %v1713_v19, %v3101_v22 }
 0x32e   :  { %1047 = vrot.lane.b32.xlu1 %v2967_v8, %s2023_s27  ;;  %1049 = vrot.lane.b32.xlu0 %v2969_v49, %s2023_s27 }
 0x32f   :  { %v1517_v35 = vpop.permute.xlu1 %1516 }
 0x330   :  { %v1520_v33 = vmul.f32 %v1517_v35, %v3101_v22 }
 0x332   :  { %1051 = vrot.lane.b32.xlu1 %v2975_v51, %s2023_s27  ;;  %1053 = vrot.lane.b32.xlu0 %v2977_v42, %s2023_s27 }
 0x333   :  { %v3041_v46 = vpop.permute.xlu1 %1561 }
 0x336   :  { %1787 = vperm.xlu1 %1988, %v1978_v53   ;;  %1772 = vperm.xlu0 %1987, %v1977_v56   ;;  %v1691_v53 = vmul.f32 %v1687_v37, %v3065_v10  ;;  %v1692_v56 = vmul.f32 %v1687_v37, %v3069_v43  ;;  %v1510_v37 = vadd.f32 %v1506_v34, %v1495_v63 }
 0x337   :  { %v3045_v32 = vpop.permute.xlu1 %1641  ;;  %v1522_v43 = vmul.f32 %v1517_v35, %v3110_v1 }
 0x33a   :  { %1094 = vperm.xlu1 %1988, %v1945_v30   ;;  %1067 = vperm.xlu0 %1987, %v1944_v57  }
 0x33b   :  { %v1698_v47 = vpop.permute.xlu1 %1697 }
 0x33c   :  { %v1700_v30 = vmul.f32 %v1698_v47, %v3073_v17  ;;  %v1701_v57 = vmul.f32 %v1698_v47, %v3077_v16 }
 0x33e   :  { %1214 = vperm.xlu1 %1988, %v1949_v2   ;;  %1187 = vperm.xlu0 %1987, %v1948_v60   ;;  %v3858_v2 = vld [vmem:[#allocation10_spill] sm:$0xff] }
 0x33f   :  { %v1532_v12 = vpop.permute.xlu1 %1531  ;;  %v3122_v60 = vrot.slane %v2967_v8, %v3858_v2  ;;  %v3139_v8 = vrot.slane %v2977_v42, %v3858_v2 }
 0x341   :  { %3859 = vst [vmem:[#allocation28_spill] sm:$0xff] %v3122_v60  ;;  %3862 = vst [vmem:[#allocation13_spill] sm:$0xff] %v3139_v8  ;;  %v1534_v23 = vmul.f32 %v1532_v12, %v3122_v60  ;;  %v1537_v63 = vmul.f32 %v1532_v12, %v3139_v8 }
 0x342   :  { %1245 = vperm.xlu1 %1988, %v1950_v24   ;;  %1125 = vperm.xlu0 %1987, %v1946_v39   ;;  %v3126_v24 = vrot.slane %v2975_v51, %v3858_v2  ;;  %v1507_v39 = vmul.f32 %v1502_v11, %v3087_v3  ;;  %v1715_v51 = vmul.f32 %v1713_v19, %v3097_v13 }
 0x343   :  { %v3051_v0 = vpop.permute.xlu1 %1656  ;;  %v1509_v11 = vadd.f32 %v1505_v29, %v1494_v21  ;;  %v1717_v29 = vmul.f32 %v1713_v19, %v3105_v28 }
 0x344   :  { %3860 = vst [vmem:[#allocation48_spill] sm:$0xff] %v3126_v24  ;;  %v1535_v4 = vmul.f32 %v1532_v12, %v3126_v24 }
 0x346   :  { %1338 = vperm.xlu1 %1988, %v1953_v55   ;;  %1311 = vperm.xlu0 %1987, %v1952_v26   ;;  %v1702_v55 = vmul.f32 %v1698_v47, %v3081_v36  ;;  %v1703_v26 = vmul.f32 %v1698_v47, %v3087_v3  ;;  %v1519_v47 = vmul.f32 %v1517_v35, %v3097_v13 }
 0x347   :  { %v3053_v62 = vpop.permute.xlu1 %1746  ;;  %v1511_v3 = vadd.f32 %v1507_v39, %v1496_v18  ;;  %v1524_v36 = vadd.f32 %v1520_v33, %v1509_v11 }
 0x348   :  { %v1706_v10 = vadd.f32 %v1702_v55, %v1691_v53  ;;  %v1707_v42 = vadd.f32 %v1703_v26, %v1692_v56 }
 0x349   :  { %v1526_v53 = vadd.f32 %v1522_v43, %v1511_v3  ;;  %v3156_v18 = vadd.f32 %v1535_v4, %v1524_v36 }
 0x34a   :  { %1276 = vperm.xlu1 %1988, %v1951_v27   ;;  %1156 = vperm.xlu0 %1987, %v1947_v25   ;;  %v3133_v27 = vrot.slane %v2969_v49, %v3858_v2  ;;  %v3135_v25 = vpop.permute.xlu0 %1671  ;;  %v1521_v49 = vmul.f32 %v1517_v35, %v3105_v28  ;;  %v1718_v35 = vmul.f32 %v1713_v19, %v3110_v1 }
 0x34b   :  { %v3092_v61 = vpop.permute.xlu1 %1591  ;;  %v1721_v39 = vadd.f32 %v1717_v29, %v1706_v10  ;;  %v3160_v26 = vadd.f32 %v1537_v63, %v1526_v53 }
 0x34c   :  { %3861 = vst [vmem:[#allocation45_spill] sm:$0xff] %v3133_v27  ;;  %v1536_v21 = vmul.f32 %v1532_v12, %v3133_v27  ;;  %v1722_v12 = vadd.f32 %v1718_v35, %v1707_v42 }
 0x34e   :  { %1400 = vperm.xlu1 %1988, %v1955_v40   ;;  %1369 = vperm.xlu0 %1987, %v1954_v52   ;;  %v1508_v40 = vadd.f32 %v1504_v41, %v1493_v9  ;;  %v1704_v9 = vadd.f32 %v1700_v30, %v1689_v7  ;;  %v1705_v41 = vadd.f32 %v1701_v57, %v1690_v58 }
 0x34f   :  { %v1728_v52 = vpop.permute.xlu1 %1727  ;;  %v1525_v58 = vadd.f32 %v1521_v49, %v1510_v37 }
 0x350   :  { %v1523_v13 = vadd.f32 %v1519_v47, %v1508_v40  ;;  %v1730_v7 = vmul.f32 %v1728_v52, %v3122_v60  ;;  %v1719_v56 = vadd.f32 %v1715_v51, %v1704_v9  ;;  %v1720_v30 = vadd.f32 %v1716_v50, %v1705_v41 }
 0x351   :  { %v3158_v55 = vadd.f32 %v1536_v21, %v1525_v58  ;;  %v1731_v33 = vmul.f32 %v1728_v52, %v3126_v24  ;;  %v1732_v19 = vmul.f32 %v1728_v52, %v3133_v27  ;;  %v1733_v43 = vmul.f32 %v1728_v52, %v3139_v8 }
 0x352   :  { %v3154_v57 = vadd.f32 %v1534_v23, %v1523_v13  ;;  %v3165_v3 = vadd.f32 %v1730_v7, %v1719_v56 }
 0x353   :  { %v3211_v7 = vadd.f32 %v1731_v33, %v1720_v30  ;;  %v3213_v58 = vadd.f32 %v1732_v19, %v1721_v39  ;;  %v3215_v53 = vadd.f32 %v1733_v43, %v1722_v12 }
 0x354   :  { %3863 = vst [vmem:[#allocation14_spill] sm:$0xff] %v3165_v3 }
 0x355   :  { %3870 = vst [vmem:[#allocation15_spill] sm:$0xff] %v3211_v7  ;;  %3871 = vst [vmem:[#allocation16_spill] sm:$0xff] %v3213_v58 }
 0x356   :  { %3872 = vst [vmem:[#allocation49_spill] sm:$0xff] %v3215_v53 }
 0x398   :  { %v1034_v34 = vpop.permute.xlu1 %1033  ;;  %v1032_v22 = vpop.permute.xlu0 %1031 }
 0x39c   :  { %v1038_v40 = vpop.permute.xlu1 %1037  ;;  %v1036_v11 = vpop.permute.xlu0 %1035 }
 0x39d   :  { %v1040_v4 = vsel %vm84_vm0, %v1034_v34, %v1038_v40  ;;  %v1042_v23 = vsel %vm84_vm0, %v1038_v40, %v1034_v34  ;;  %v1039_v50 = vsel %vm84_vm0, %v1032_v22, %v1036_v11  ;;  %v1041_v52 = vsel %vm84_vm0, %v1036_v11, %v1032_v22 }
 0x39e   :  { %v1045_v36 = vsel %vm2313_vm1, %v1042_v23, 0.0  ;;  %v1046_v51 = vsel %vm2319_vm2, %v1040_v4, 0.0  ;;  %v1043_v56 = vsel %vm2313_vm1, %v1041_v52, 0.0  ;;  %v1044_v30 = vsel %vm2319_vm2, %v1039_v50, 0.0 }
 0x39f   :  { %v3180_v37 = vrot.slane %v1045_v36, %v3845_v45  ;;  %v3183_v47 = vrot.slane %v1046_v51, %v3845_v45  ;;  %v3186_v49 = vrot.slane %v1045_v36, %v3850_v14  ;;  %v3189_v9 = vrot.slane %v1046_v51, %v3850_v14 }
 0x3a0   :  { %v3192_v41 = vrot.slane %v1045_v36, %v3853_v6  ;;  %v3195_v42 = vrot.slane %v1046_v51, %v3853_v6  ;;  %v3198_v22 = vrot.slane %v1045_v36, %v3858_v2  ;;  %v3201_v21 = vrot.slane %v1046_v51, %v3858_v2  ;;  %v1048_v13 = vpop.permute.xlu1 %1047  ;;  %v1050_v7 = vpop.permute.xlu0 %1049 }
 0x3a1   :  { %v1439_v63 = vmul.f32 %v3033_v5, %v3180_v37  ;;  %v1440_v29 = vmul.f32 %v3033_v5, %v3183_v47  ;;  %v1450_v34 = vmul.f32 %v3035_v54, %v3186_v49  ;;  %v1451_v35 = vmul.f32 %v3035_v54, %v3189_v9 }
 0x3a2   :  { %3866 = vst [vmem:[#allocation17_spill] sm:$0xff] %v3192_v41  ;;  %3867 = vst [vmem:[#allocation18_spill] sm:$0xff] %v3195_v42  ;;  %v1465_v40 = vmul.f32 %v3037_v59, %v3192_v41  ;;  %v1635_v11 = vmul.f32 %v3043_v31, %v3180_v37  ;;  %v1636_v4 = vmul.f32 %v3043_v31, %v3183_v47 }
 0x3a3   :  { %3868 = vst [vmem:[#allocation11_spill] sm:$0xff] %v3198_v22  ;;  %3869 = vst [vmem:[#allocation12_spill] sm:$0xff] %v3201_v21  ;;  %v1454_v33 = vadd.f32 %v1450_v34, %v1439_v63  ;;  %v1466_v39 = vmul.f32 %v3037_v59, %v3195_v42  ;;  %v1646_v12 = vmul.f32 %v3045_v32, %v3186_v49 }
 0x3a4   :  { %v1647_v19 = vmul.f32 %v3045_v32, %v3189_v9  ;;  %v1455_v43 = vadd.f32 %v1451_v35, %v1440_v29  ;;  %v3235_v23 = vmul.f32 %v3047_v20, %v3198_v22  ;;  %v3239_v10 = vmul.f32 %v3047_v20, %v3201_v21 }
 0x3a5   :  { %v1661_v36 = vmul.f32 %v3051_v0, %v3192_v41  ;;  %v1650_v51 = vadd.f32 %v1646_v12, %v1635_v11  ;;  %v1662_v50 = vmul.f32 %v3051_v0, %v3195_v42  ;;  %v3246_v52 = vrot.slane %v1043_v56, %v3845_v45 }
 0x3a6   :  { %v3249_v63 = vrot.slane %v1044_v30, %v3845_v45  ;;  %v1651_v29 = vadd.f32 %v1647_v19, %v1636_v4  ;;  %v3252_v34 = vrot.slane %v1043_v56, %v3850_v14  ;;  %v3255_v35 = vrot.slane %v1044_v30, %v3850_v14 }
 0x3a7   :  { %v3258_v8 = vrot.slane %v1043_v56, %v3853_v6  ;;  %v3260_v11 = vadd.f32 %v1465_v40, %v1454_v33  ;;  %v3263_v12 = vrot.slane %v1044_v30, %v3853_v6  ;;  %v3266_v24 = vrot.slane %v1043_v56, %v3858_v2 }
 0x3a8   :  { %v3269_v27 = vrot.slane %v1044_v30, %v3858_v2  ;;  %v1437_v4 = vmul.f32 %v3033_v5, %v3246_v52  ;;  %v1438_v19 = vmul.f32 %v3033_v5, %v3249_v63  ;;  %v1448_v60 = vmul.f32 %v3035_v54, %v3252_v34 }
 0x3a9   :  { %3873 = vst [vmem:[#allocation47_spill] sm:$0xff] %v3258_v8  ;;  %3874 = vst [vmem:[#allocation19_spill] sm:$0xff] %v3263_v12  ;;  %v1449_v40 = vmul.f32 %v3035_v54, %v3255_v35  ;;  %v3279_v33 = vadd.f32 %v1466_v39, %v1455_v43  ;;  %v3281_v1 = vadd.f32 %v1661_v36, %v1650_v51  ;;  %v1052_v39 = vpop.permute.xlu1 %1051 }
 0x3aa   :  { %3875 = vst [vmem:[#allocation20_spill] sm:$0xff] %v3266_v24  ;;  %3876 = vst [vmem:[#allocation41_spill] sm:$0xff] %v3269_v27  ;;  %v3285_v56 = vmul.f32 %v3135_v25, %v3198_v22  ;;  %v3289_v30 = vmul.f32 %v3135_v25, %v3201_v21  ;;  %v3291_v5 = vadd.f32 %v1662_v50, %v1651_v29 }
 0x3ab   :  { %3877 = vst [vmem:[#allocation42_spill] sm:$0xff] %v3281_v1  ;;  %v1452_v53 = vadd.f32 %v1448_v60, %v1437_v4  ;;  %v1453_v42 = vadd.f32 %v1449_v40, %v1438_v19  ;;  %v1463_v54 = vmul.f32 %v3037_v59, %v3258_v8  ;;  %v1464_v43 = vmul.f32 %v3037_v59, %v3263_v12 }
 0x3ac   :  { %3878 = vst [vmem:[#allocation31_spill] sm:$0xff] %v3285_v56  ;;  %3879 = vst [vmem:[#allocation32_spill] sm:$0xff] %v3289_v30  ;;  %v1478_v36 = vmul.f32 %v3047_v20, %v3266_v24  ;;  %v1633_v51 = vmul.f32 %v3043_v31, %v3246_v52  ;;  %v1644_v21 = vmul.f32 %v3045_v32, %v3252_v34 }
 0x3ad   :  { %3880 = vst [vmem:[#allocation54_spill] sm:$0xff] %v3291_v5  ;;  %v3305_v60 = vmul.f32 %v3047_v20, %v3269_v27  ;;  %v1634_v50 = vmul.f32 %v3043_v31, %v3249_v63  ;;  %v1645_v29 = vmul.f32 %v3045_v32, %v3255_v35  ;;  %v1659_v59 = vmul.f32 %v3051_v0, %v3258_v8 }
 0x3ae   :  { %v1467_v4 = vadd.f32 %v1463_v54, %v1452_v53  ;;  %v3315_v19 = vmul.f32 %v3051_v0, %v3263_v12  ;;  %v1055_v40 = vsel %vm105_vm3, %v1048_v13, %v1052_v39  ;;  %v1057_v20 = vsel %vm105_vm3, %v1052_v39, %v1048_v13  ;;  %v1054_v13 = vpop.permute.xlu0 %1053 }
 0x3af   :  { %v3321_v22 = vadd.f32 %v1464_v43, %v1453_v42  ;;  %v3325_v31 = vmul.f32 %v3135_v25, %v3266_v24  ;;  %v1059_v30 = vsel %vm2480_vm4, %v1055_v40, 0.0  ;;  %v1060_v54 = vsel %vm2486_vm5, %v1057_v20, 0.0 }
 0x3b0   :  { %3881 = vst [vmem:[#allocation55_spill] sm:$0xff] %v3315_v19  ;;  %v1648_v0 = vadd.f32 %v1644_v21, %v1633_v51  ;;  %v3333_v5 = vmul.f32 %v3135_v25, %v3269_v27  ;;  %v3336_v41 = vrot.slane %v1059_v30, %v3845_v45  ;;  %v3339_v42 = vrot.slane %v1060_v54, %v3845_v45 }
 0x3b1   :  { %3882 = vst [vmem:[#allocation61_spill] sm:$0xff] %v3325_v31  ;;  %v3342_v39 = vrot.slane %v1059_v30, %v3850_v14  ;;  %v3345_v43 = vrot.slane %v1060_v54, %v3850_v14  ;;  %v3348_v40 = vrot.slane %v1059_v30, %v3853_v6  ;;  %v3351_v21 = vrot.slane %v1060_v54, %v3853_v6 }
 0x3b2   :  { %3885 = vst [vmem:[#allocation62_spill] sm:$0xff] %v3333_v5  ;;  %3886 = vst [vmem:[#allocation52_spill] sm:$0xff] %v3336_v41  ;;  %v3354_v25 = vrot.slane %v1059_v30, %v3858_v2  ;;  %v3357_v51 = vrot.slane %v1060_v54, %v3858_v2  ;;  %v1553_v20 = vmul.f32 %v3039_v44, %v3336_v41 }
 0x3b3   :  { %3887 = vst [vmem:[#allocation53_spill] sm:$0xff] %v3339_v42  ;;  %3888 = vst [vmem:[#allocation59_spill] sm:$0xff] %v3342_v39  ;;  %v1554_v27 = vmul.f32 %v3039_v44, %v3339_v42  ;;  %v1564_v24 = vmul.f32 %v3041_v46, %v3342_v39  ;;  %v1565_v5 = vmul.f32 %v3041_v46, %v3345_v43 }
 0x3b4   :  { %3889 = vst [vmem:[#allocation60_spill] sm:$0xff] %v3345_v43  ;;  %3890 = vst [vmem:[#allocation64_spill] sm:$0xff] %v3357_v51  ;;  %v1056_v28 = vsel %vm105_vm3, %v1050_v7, %v1054_v13  ;;  %v1058_v30 = vsel %vm105_vm3, %v1054_v13, %v1050_v7  ;;  %v3371_v54 = vadd.f32 %v1645_v29, %v1634_v50 }
 0x3b5   :  { %v3373_v12 = vadd.f32 %v1659_v59, %v1648_v0  ;;  %v1579_v8 = vmul.f32 %v3049_v15, %v3348_v40  ;;  %v1580_v3 = vmul.f32 %v3049_v15, %v3351_v21  ;;  %v1594_v58 = vmul.f32 %v3092_v61, %v3354_v25  ;;  %v3389_v29 = vpop.permute.xlu1 %1787 }
 0x3b6   :  { %3891 = vst [vmem:[#allocation63_spill] sm:$0xff] %v3371_v54  ;;  %v3383_v19 = vmul.f32 %v3092_v61, %v3357_v51  ;;  %v1749_v7 = vmul.f32 %v3053_v62, %v3336_v41  ;;  %v1750_v50 = vmul.f32 %v3053_v62, %v3339_v42  ;;  %v1568_v59 = vadd.f32 %v1564_v24, %v1553_v20  ;;  %v1773_v54 = vpop.permute.xlu0 %1772 }
 0x3b7   :  { %3892 = vst [vmem:[#allocation65_spill] sm:$0xff] %v3373_v12  ;;  %v1569_v0 = vadd.f32 %v1565_v5, %v1554_v27  ;;  %v1061_v13 = vsel %vm2480_vm4, %v1056_v28, 0.0  ;;  %v1062_v48 = vsel %vm2486_vm5, %v1058_v30, 0.0  ;;  %v1761_v20 = vmul.f32 %v3083_v38, %v3345_v43 }
 0x3b8   :  { %v3396_v51 = vrot.slane %v1061_v13, %v3845_v45  ;;  %v3399_v31 = vrot.slane %v1062_v48, %v3845_v45  ;;  %v3402_v41 = vrot.slane %v1061_v13, %v3850_v14  ;;  %v3405_v42 = vrot.slane %v1062_v48, %v3850_v14 }
 0x3b9   :  { %v3408_v24 = vrot.slane %v1061_v13, %v3853_v6  ;;  %v3411_v28 = vrot.slane %v1062_v48, %v3853_v6  ;;  %v3414_v27 = vrot.slane %v1061_v13, %v3858_v2  ;;  %v3417_v5 = vrot.slane %v1062_v48, %v3858_v2  ;;  %v1095_v30 = vpop.permute.xlu1 %1094 }
 0x3ba   :  { %3893 = vst [vmem:[#allocation23_spill] sm:$0xff] %v3396_v51  ;;  %3894 = vst [vmem:[#allocation24_spill] sm:$0xff] %v3399_v31  ;;  %v1555_v45 = vmul.f32 %v3039_v44, %v3396_v51  ;;  %v1556_v32 = vmul.f32 %v3039_v44, %v3399_v31  ;;  %v1566_v14 = vmul.f32 %v3041_v46, %v3402_v41  ;;  %v1068_v13 = vpop.permute.xlu0 %1067 }
 0x3bb   :  { %3895 = vst [vmem:[#allocation25_spill] sm:$0xff] %v3417_v5  ;;  %v1567_v53 = vmul.f32 %v3041_v46, %v3405_v42  ;;  %v1760_v6 = vmul.f32 %v3083_v38, %v3342_v39  ;;  %v1482_v48 = vadd.f32 %v1478_v36, %v1467_v4  ;;  %v1484_v2 = vadd.f32 %v3235_v23, %v3260_v11 }
 0x3bc   :  { %v1570_v12 = vadd.f32 %v1566_v14, %v1555_v45  ;;  %v1581_v44 = vmul.f32 %v3049_v15, %v3408_v24  ;;  %v1582_v56 = vmul.f32 %v3049_v15, %v3411_v28  ;;  %v1596_v46 = vmul.f32 %v3092_v61, %v3414_v27 }
 0x3bd   :  { %v1597_v39 = vmul.f32 %v3092_v61, %v3417_v5  ;;  %v1751_v36 = vmul.f32 %v3053_v62, %v3396_v51  ;;  %v1762_v23 = vmul.f32 %v3083_v38, %v3402_v41  ;;  %v1583_v11 = vadd.f32 %v1579_v8, %v1568_v59 }
 0x3be   :  { %v1571_v4 = vadd.f32 %v1567_v53, %v1556_v32  ;;  %v1752_v45 = vmul.f32 %v3053_v62, %v3399_v31  ;;  %v1763_v15 = vmul.f32 %v3083_v38, %v3405_v42  ;;  %v1585_v14 = vadd.f32 %v1581_v44, %v1570_v12  ;;  %v1215_v12 = vpop.permute.xlu1 %1214 }
 0x3bf   :  { %v1542_v43 = vadd.f32 %v3154_v57, %v1482_v48  ;;  %v1598_v1 = vadd.f32 %v1594_v58, %v1583_v11  ;;  %v1544_v61 = vadd.f32 %v3158_v55, %v1484_v2  ;;  %v1790_v51 = vmul.f32 %v3389_v29, %v3354_v25  ;;  %v1188_v57 = vpop.permute.xlu0 %1187 }
 0x3c0   :  { %v1600_v5 = vadd.f32 %v1596_v46, %v1585_v14  ;;  %v1792_v8 = vmul.f32 %v3389_v29, %v3414_v27  ;;  %v1764_v59 = vadd.f32 %v1760_v6, %v1749_v7  ;;  %v1765_v32 = vadd.f32 %v1761_v20, %v1750_v50 }
 0x3c1   :  { %v1602_v53 = vadd.f32 %v1598_v1, %v1542_v43  ;;  %v1766_v62 = vadd.f32 %v1762_v23, %v1751_v36  ;;  %v1775_v31 = vmul.f32 %v1773_v54, %v3348_v40  ;;  %v1777_v38 = vmul.f32 %v1773_v54, %v3408_v24  ;;  %v3897_v23 = vld [vmem:[#allocation29_spill] sm:$0xff] }
 0x3c2   :  { %v1604_v58 = vadd.f32 %v1600_v5, %v1544_v61  ;;  %v1767_v48 = vadd.f32 %v1763_v15, %v1752_v45  ;;  %v1483_v55 = vadd.f32 %v3305_v60, %v3321_v22  ;;  %v1584_v2 = vadd.f32 %v1580_v3, %v1569_v0  ;;  %v3901_v15 = vld [vmem:[#allocation46_spill] sm:$0xff] }
 0x3c3   :  { %1606 = vrot.lane.b32.xlu0 %v1602_v53, %s2024_s1  ;;  %v1776_v44 = vmul.f32 %v1773_v54, %v3351_v21  ;;  %v1778_v7 = vmul.f32 %v1773_v54, %v3411_v28  ;;  %v1779_v1 = vadd.f32 %v1775_v31, %v1764_v59  ;;  %v1485_v43 = vadd.f32 %v3239_v10, %v3279_v33  ;;  %v3902_v61 = vld [vmem:[#allocation42_spill] sm:$0xff]  ;;  %v3903_v59 = vld [vmem:[#allocation31_spill] sm:$0xff] }
 0x3c4   :  { %1608 = vrot.lane.b32.xlu1 %v1604_v58, %s2024_s1  ;;  %v1781_v50 = vadd.f32 %v1777_v38, %v1766_v62  ;;  %v1543_v5 = vadd.f32 %v3156_v18, %v1483_v55  ;;  %v1599_v6 = vadd.f32 %v3383_v19, %v1584_v2  ;;  %v1586_v20 = vadd.f32 %v1582_v56, %v1571_v4  ;;  %v3477_v19 = vpop.permute.xlu1 %1245  ;;  %v3900_v4 = vld [vmem:[#allocation37_spill] sm:$0xff]  ;;  %v3906_v2 = vld [vmem:[#allocation63_spill] sm:$0xff] }
 0x3c5   :  { %v1545_v3 = vadd.f32 %v3160_v26, %v1485_v43  ;;  %v1113_v22 = vmul.f32 %v3252_v34, %v1095_v30  ;;  %v1114_v60 = vmul.f32 %v3255_v35, %v1095_v30  ;;  %v1115_v54 = vmul.f32 %v3186_v49, %v1095_v30  ;;  %v1126_v34 = vpop.permute.xlu0 %1125  ;;  %v3904_v62 = vld [vmem:[#allocation65_spill] sm:$0xff] }
 0x3c6   :  { %v1603_v31 = vadd.f32 %v1599_v6, %v1543_v5  ;;  %v1601_v0 = vadd.f32 %v1597_v39, %v1586_v20  ;;  %v1116_v10 = vmul.f32 %v3189_v9, %v1095_v30  ;;  %v1086_v33 = vmul.f32 %v3246_v52, %v1068_v13  ;;  %v3896_v9 = vld [vmem:[#allocation38_spill] sm:$0xff]  ;;  %v3905_v38 = vld [vmem:[#allocation61_spill] sm:$0xff]  ;;  %v3908_v5 = vld [vmem:[#allocation64_spill] sm:$0xff] }
 0x3c7   :  { %v1087_v46 = vmul.f32 %v3249_v63, %v1068_v13  ;;  %v1088_v18 = vmul.f32 %v3180_v37, %v1068_v13  ;;  %v1089_v56 = vmul.f32 %v3183_v47, %v1068_v13  ;;  %v1233_v26 = vmul.f32 %v3073_v17, %v1215_v12  ;;  %v3898_v47 = vld [vmem:[#allocation44_spill] sm:$0xff]  ;;  %v3899_v13 = vld [vmem:[#allocation43_spill] sm:$0xff]  ;;  %v3909_v20 = vld [vmem:[#allocation25_spill] sm:$0xff] }
 0x3c8   :  { %1610 = vrot.lane.b32.xlu0 %v1603_v31, %s2024_s1  ;;  %v1605_v49 = vadd.f32 %v1601_v0, %v1545_v3  ;;  %v1117_v35 = vadd.f32 %v1113_v22, %v1086_v33  ;;  %v1234_v39 = vmul.f32 %v3077_v16, %v1215_v12  ;;  %v1235_v30 = vmul.f32 %v3896_v9, %v1215_v12  ;;  %v3911_v0 = vld [vmem:[#allocation14_spill] sm:$0xff] }
 0x3c9   :  { %v1118_v52 = vadd.f32 %v1114_v60, %v1087_v46  ;;  %v1119_v36 = vadd.f32 %v1115_v54, %v1088_v18  ;;  %v1120_v63 = vadd.f32 %v1116_v10, %v1089_v56  ;;  %v1236_v37 = vmul.f32 %v3897_v23, %v1215_v12  ;;  %v3907_v12 = vld [vmem:[#allocation55_spill] sm:$0xff]  ;;  %v3910_v54 = vld [vmem:[#allocation16_spill] sm:$0xff]  ;;  %v1312_v10 = vpop.permute.xlu0 %1311 }
 0x3ca   :  { %1612 = vrot.lane.b32.xlu1 %v1605_v49, %s2024_s1  ;;  %v1206_v17 = vmul.f32 %v3898_v47, %v1188_v57  ;;  %v1207_v11 = vmul.f32 %v3899_v13, %v1188_v57  ;;  %v1208_v45 = vmul.f32 %v3900_v4, %v1188_v57  ;;  %v1209_v14 = vmul.f32 %v3901_v15, %v1188_v57  ;;  %v3913_v18 = vld [vmem:[#allocation19_spill] sm:$0xff]  ;;  %v3917_v47 = vld [vmem:[#allocation17_spill] sm:$0xff]  ;;  %v3920_v4 = vld [vmem:[#allocation32_spill] sm:$0xff] }
 0x3cb   :  { %v1680_v16 = vadd.f32 %v3903_v59, %v3902_v61  ;;  %v1796_v53 = vadd.f32 %v1792_v8, %v1781_v50  ;;  %v1678_v58 = vadd.f32 %v3905_v38, %v3904_v62  ;;  %v1794_v55 = vadd.f32 %v1790_v51, %v1779_v1  ;;  %v1339_v50 = vpop.permute.xlu1 %1338  ;;  %v3912_v1 = vld [vmem:[#allocation47_spill] sm:$0xff]  ;;  %v3921_v59 = vld [vmem:[#allocation62_spill] sm:$0xff] }
 0x3cc   :  { %v1664_v43 = vadd.f32 %v3907_v12, %v3906_v2  ;;  %v1791_v6 = vmul.f32 %v3389_v29, %v3908_v5  ;;  %v1793_v3 = vmul.f32 %v3389_v29, %v3909_v20  ;;  %v1780_v22 = vadd.f32 %v1776_v44, %v1765_v32  ;;  %v3914_v29 = vld [vmem:[#allocation30_spill] sm:$0xff] }
 0x3cd   :  { %v1782_v60 = vadd.f32 %v1778_v7, %v1767_v48  ;;  %v1237_v57 = vadd.f32 %v1233_v26, %v1206_v17  ;;  %v1740_v31 = vadd.f32 %v3910_v54, %v1680_v16  ;;  %v1738_v8 = vadd.f32 %v3911_v0, %v1678_v58  ;;  %v3915_v48 = vld [vmem:[#allocation35_spill] sm:$0xff]  ;;  %v3916_v7 = vld [vmem:[#allocation36_spill] sm:$0xff]  ;;  %v1157_v54 = vpop.permute.xlu0 %1156 }
 0x3ce   :  { %v1238_v33 = vadd.f32 %v1234_v39, %v1207_v11  ;;  %v1239_v51 = vadd.f32 %v1235_v30, %v1208_v45  ;;  %v1144_v46 = vmul.f32 %v3912_v1, %v1126_v34  ;;  %v1145_v56 = vmul.f32 %v3913_v18, %v1126_v34  ;;  %v3918_v39 = vld [vmem:[#allocation18_spill] sm:$0xff]  ;;  %v3923_v58 = vld [vmem:[#allocation59_spill] sm:$0xff] }
 0x3cf   :  { %v1240_v49 = vadd.f32 %v1236_v37, %v1209_v14  ;;  %v1800_v9 = vadd.f32 %v1796_v53, %v1740_v31  ;;  %v1798_v23 = vadd.f32 %v1794_v55, %v1738_v8  ;;  %v1264_v32 = vmul.f32 %v3914_v29, %v3477_v19  ;;  %v3919_v11 = vld [vmem:[#allocation54_spill] sm:$0xff]  ;;  %v3922_v53 = vld [vmem:[#allocation49_spill] sm:$0xff]  ;;  %v1277_v12 = vpop.permute.xlu1 %1276  ;;  %v3925_v31 = vld [vmem:[#allocation15_spill] sm:$0xff] }
 0x3d0   :  { %v1265_v44 = vmul.f32 %v3915_v48, %v3477_v19  ;;  %v1266_v26 = vmul.f32 %v3916_v7, %v3477_v19  ;;  %v1146_v17 = vmul.f32 %v3917_v47, %v1126_v34  ;;  %v1147_v30 = vmul.f32 %v3918_v39, %v1126_v34  ;;  %v3924_v34 = vld [vmem:[#allocation60_spill] sm:$0xff]  ;;  %v3928_v8 = vld [vmem:[#allocation23_spill] sm:$0xff]  ;;  %v3932_v48 = vld [vmem:[#allocation45_spill] sm:$0xff] }
 0x3d1   :  { %1804 = vrot.lane.b32.xlu1 %v1800_v9, %s2025_s19  ;;  %1802 = vrot.lane.b32.xlu0 %v1798_v23, %s2025_s19  ;;  %v1148_v37 = vadd.f32 %v1144_v46, %v1117_v35  ;;  %v1149_v13 = vadd.f32 %v1145_v56, %v1118_v52  ;;  %v1681_v45 = vadd.f32 %v3920_v4, %v3919_v11  ;;  %v3930_v46 = vld [vmem:[#allocation27_spill] sm:$0xff]  ;;  %v3931_v23 = vld [vmem:[#allocation28_spill] sm:$0xff] }
 0x3d2   :  { %v1150_v15 = vadd.f32 %v1146_v17, %v1119_v36  ;;  %v1151_v14 = vadd.f32 %v1147_v30, %v1120_v63  ;;  %v1797_v61 = vadd.f32 %v1793_v3, %v1782_v60  ;;  %v1679_v16 = vadd.f32 %v3921_v59, %v1664_v43  ;;  %v3926_v36 = vld [vmem:[#allocation52_spill] sm:$0xff]  ;;  %v3927_v60 = vld [vmem:[#allocation53_spill] sm:$0xff]  ;;  %v3937_v59 = vld [vmem:[#allocation11_spill] sm:$0xff] }
 0x3d3   :  { %v1741_v62 = vadd.f32 %v3922_v53, %v1681_v45  ;;  %v1795_v38 = vadd.f32 %v1791_v6, %v1780_v22  ;;  %v1357_v55 = vmul.f32 %v3923_v58, %v1339_v50  ;;  %v1358_v2 = vmul.f32 %v3924_v34, %v1339_v50  ;;  %v3929_v6 = vld [vmem:[#allocation24_spill] sm:$0xff]  ;;  %v3936_v45 = vld [vmem:[#allocation41_spill] sm:$0xff] }
 0x3d4   :  { %v1739_v35 = vadd.f32 %v3925_v31, %v1679_v16  ;;  %v1359_v52 = vmul.f32 %v3402_v41, %v1339_v50  ;;  %v1360_v0 = vmul.f32 %v3405_v42, %v1339_v50  ;;  %v1330_v63 = vmul.f32 %v3926_v36, %v1312_v10  ;;  %v3933_v39 = vld [vmem:[#allocation48_spill] sm:$0xff] }
 0x3d5   :  { %v1801_v3 = vadd.f32 %v1797_v61, %v1741_v62  ;;  %v1331_v43 = vmul.f32 %v3927_v60, %v1312_v10  ;;  %v1332_v1 = vmul.f32 %v3928_v8, %v1312_v10  ;;  %v1333_v22 = vmul.f32 %v3929_v6, %v1312_v10  ;;  %v3934_v30 = vld [vmem:[#allocation20_spill] sm:$0xff] }
 0x3d6   :  { %v1267_v18 = vmul.f32 %v3930_v46, %v3477_v19  ;;  %v1799_v56 = vadd.f32 %v1795_v38, %v1739_v35  ;;  %v1361_v9 = vadd.f32 %v1357_v55, %v1330_v63  ;;  %v1295_v29 = vmul.f32 %v3931_v23, %v1277_v12  ;;  %v3935_v19 = vld [vmem:[#allocation13_spill] sm:$0xff]  ;;  %v3938_v53 = vld [vmem:[#allocation12_spill] sm:$0xff]  ;;  %v1370_v38 = vpop.permute.xlu0 %1369 }
 0x3d7   :  { %1808 = vrot.lane.b32.xlu1 %v1801_v3, %s2025_s19  ;;  %v1362_v41 = vadd.f32 %v1358_v2, %v1331_v43  ;;  %v1363_v42 = vadd.f32 %v1359_v52, %v1332_v1  ;;  %v1364_v50 = vadd.f32 %v1360_v0, %v1333_v22  ;;  %v1297_v7 = vmul.f32 %v3932_v48, %v1277_v12 }
 0x3d8   :  { %v1268_v47 = vadd.f32 %v1264_v32, %v1237_v57  ;;  %v1270_v17 = vadd.f32 %v1266_v26, %v1239_v51  ;;  %1806 = vrot.lane.b32.xlu0 %v1799_v56, %s2025_s19  ;;  %v1296_v10 = vmul.f32 %v3933_v39, %v1277_v12  ;;  %v1175_v11 = vmul.f32 %v3934_v30, %v1157_v54  ;;  %v1401_v51 = vpop.permute.xlu1 %1400 }
 0x3d9   :  { %v1298_v4 = vmul.f32 %v3935_v19, %v1277_v12  ;;  %v1176_v61 = vmul.f32 %v3936_v45, %v1157_v54  ;;  %v1177_v16 = vmul.f32 %v3937_v59, %v1157_v54  ;;  %v1178_v62 = vmul.f32 %v3938_v53, %v1157_v54 }
 0x3da   :  { %v1269_v58 = vadd.f32 %v1265_v44, %v1238_v33  ;;  %v1271_v55 = vadd.f32 %v1267_v18, %v1240_v49  ;;  %v1299_v34 = vadd.f32 %v1295_v29, %v1268_v47  ;;  %v1179_v57 = vadd.f32 %v1175_v11, %v1148_v37 }
 0x3db   :  { %v1301_v32 = vadd.f32 %v1297_v7, %v1270_v17  ;;  %v1180_v26 = vadd.f32 %v1176_v61, %v1149_v13  ;;  %v1181_v2 = vadd.f32 %v1177_v16, %v1150_v15  ;;  %v1182_v31 = vadd.f32 %v1178_v62, %v1151_v14 }
 0x3dc   :  { %v1300_v35 = vadd.f32 %v1296_v10, %v1269_v58  ;;  %v1388_v52 = vmul.f32 %v3348_v40, %v1370_v38  ;;  %v1389_v12 = vmul.f32 %v3351_v21, %v1370_v38  ;;  %v1390_v0 = vmul.f32 %v3408_v24, %v1370_v38 }
 0x3dd   :  { %v1302_v36 = vadd.f32 %v1298_v4, %v1271_v55  ;;  %v1419_v54 = vmul.f32 %v3354_v25, %v1401_v51  ;;  %v1420_v33 = vmul.f32 %v3908_v5, %v1401_v51  ;;  %v1391_v49 = vmul.f32 %v3411_v28, %v1370_v38 }
 0x3de   :  { %v1421_v44 = vmul.f32 %v3414_v27, %v1401_v51  ;;  %v1392_v37 = vadd.f32 %v1388_v52, %v1361_v9  ;;  %v1393_v13 = vadd.f32 %v1389_v12, %v1362_v41  ;;  %v1394_v15 = vadd.f32 %v1390_v0, %v1363_v42 }
 0x3df   :  { %v1422_v14 = vmul.f32 %v3909_v20, %v1401_v51  ;;  %v1395_v63 = vadd.f32 %v1391_v49, %v1364_v50  ;;  %v1305_v40 = vadd.f32 %v1301_v32, %v1181_v2  ;;  %v1303_v3 = vadd.f32 %v1299_v34, %v1179_v57 }
 0x3e0   :  { %v1425_v21 = vadd.f32 %v1421_v44, %v1394_v15  ;;  %v1304_v60 = vadd.f32 %v1300_v35, %v1180_v26  ;;  %v1423_v24 = vadd.f32 %v1419_v54, %v1392_v37  ;;  %v1424_v43 = vadd.f32 %v1420_v33, %v1393_v13 }
 0x3e1   :  { %v1306_v8 = vadd.f32 %v1302_v36, %v1182_v31  ;;  %v1426_v25 = vadd.f32 %v1422_v14, %v1395_v63 }
 0x3e2   :  { %v1429_v1 = vadd.f32 %v1425_v21, %v1305_v40  ;;  %v1427_v5 = vadd.f32 %v1423_v24, %v1303_v3  ;;  %v1428_v6 = vadd.f32 %v1424_v43, %v1304_v60  ;;  %v1871_v24 = vld [vmem:[%s3613_s8] sm:$0xf]  ;;  %s2026_s8 = smov [#allocation2]  }
 0x3e3   :  { %v1430_v28 = vadd.f32 %v1426_v25, %v1306_v8  ;;  %s1898_s29 = sshll.u32 %s2026_s8, 4  ;;  %s1899_s29 = int_to_ptr.vmem [resolvable:$true] %s1898_s29 }
 0x3e4   :  { %s1997_s30 = scalar_lea.vmem %s1899_s29, 256  ;;  %p2002_p1 = scmp.lt.s32.totalorder %s1899_s29, %s1899_s29 }
 0x3e5   :  { %p1998_p0 = scmp.ne.s32.totalorder %s1899_s29, %s1997_s30  ;;  %p2003_p2 = scmp.lt.s32.totalorder %s1997_s30, %s1997_s30 }
 0x3e7   :  { %p2004_p3 = por %p2003_p2, %p2002_p1 }
 0x3e9   :  { %p2005_p4 = pnand %p2004_p3, %p1998_p0 }
 0x435   :  { %v1607_v27 = vpop.permute.xlu0 %1606 }
 0x436   :  { %v1609_v22 = vpop.permute.xlu1 %1608 }
 0x43a   :  { %v1611_v18 = vpop.permute.xlu0 %1610 }
 0x43b   :  { %v1616_v23 = vsel %vm749_vm6, %v1611_v18, %v1607_v27  ;;  %v1614_v42 = vsel %vm749_vm6, %v1607_v27, %v1611_v18 }
 0x43c   :  { %v1613_v46 = vpop.permute.xlu1 %1612  ;;  %v1618_v48 = vsel %vm64_vm7, %v1616_v23, 0.0  ;;  %v1623_v47 = vadd.f32 %v1614_v42, %v1428_v6 }
 0x43d   :  { %v1617_v20 = vsel %vm749_vm6, %v1613_v46, %v1609_v22  ;;  %v1615_v50 = vsel %vm749_vm6, %v1609_v22, %v1613_v46  ;;  %v1622_v10 = vadd.f32 %v1618_v48, %v1427_v5  ;;  %v1860_v22 = vld [vmem:[%s3612_s7] sm:$0xf] }
 0x43e   :  { %v1620_v41 = vsel %vm64_vm7, %v1617_v20, 0.0  ;;  %v1625_v39 = vadd.f32 %v1615_v50, %v1430_v28 }
 0x43f   :  { %v1624_v7 = vadd.f32 %v1620_v41, %v1429_v1 }
 0x443   :  { %v1805_v9 = vpop.permute.xlu1 %1804  ;;  %v1803_v29 = vpop.permute.xlu0 %1802 }
 0x449   :  { %v1809_v17 = vpop.permute.xlu1 %1808 }
 0x44a   :  { %v1811_v30 = vsel %vm950_vm8, %v1805_v9, %v1809_v17  ;;  %v1813_v11 = vsel %vm950_vm8, %v1809_v17, %v1805_v9  ;;  %v1807_v19 = vpop.permute.xlu0 %1806  ;;  %v1995_v17 = vld [vmem:[%s3605_s0] sm:$0xff] }
 0x44b   :  { %v1817_v45 = vsel %vm67_vm9, %v1813_v11, 0.0  ;;  %v1820_v61 = vadd.f32 %v1811_v30, %v1624_v7  ;;  %v1810_v59 = vsel %vm950_vm8, %v1803_v29, %v1807_v19  ;;  %v1812_v16 = vsel %vm950_vm8, %v1807_v19, %v1803_v29 }
 0x44c   :  { %v1821_v53 = vadd.f32 %v1817_v45, %v1625_v39  ;;  %v1815_v62 = vsel %vm67_vm9, %v1812_v16, 0.0  ;;  %v1818_v38 = vadd.f32 %v1810_v59, %v1622_v10  ;;  %v1996_v10 = vld [vmem:[%s3605_s0 + $0x8] sm:$0xff] }
 0x44d   :  { %v1827_v58 = vsel %vm967_vm10, %v1820_v61, 0.0  ;;  %v1819_v55 = vadd.f32 %v1815_v62, %v1623_v47 }
 0x44e   :  { %v1822_v34 = vsel %vm967_vm10, %v1818_v38, 0.0  ;;  %v1828_v57 = vsel %vm967_vm10, %v1821_v53, 0.0 }
 0x44f   :  { %v1829_v51 = vadd.f32 %v1828_v57, %v1827_v58  ;;  %v1823_v32 = vsel %vm967_vm10, %v1819_v55, 0.0 }
 0x450   :  { %v1824_v26 = vadd.f32 %v1823_v32, %v1822_v34 }
 0x451   :  { %1830 = vadd.xlane.f32.xlu1 %v1829_v51 }
 0x452   :  { %1825 = vadd.xlane.f32.xlu0 %v1824_v26 }
 0x4de   :  { %v1831_v2 = vpop.xlane.xlu1 %1830 }
 0x4df   :  { %v1833_v31 = vsel %vm967_vm10, %v1831_v2, 0.0  ;;  %v1826_v35 = vpop.xlane.xlu0 %1825 }
 0x4e0   :  { %v1832_v52 = vsel %vm967_vm10, %v1826_v35, 0.0 }
 0x4e1   :  { %v1834_v12 = vadd.f32 %v1833_v31, %v1832_v52 }
 0x4e3   :  { %v1835_v0 = vmul.f32 0.001953125, %v1834_v12 }
 0x4e5   :  { %v1836_v36 = vsub.f32 %v1818_v38, %v1835_v0  ;;  %v1837_v54 = vsub.f32 %v1819_v55, %v1835_v0  ;;  %v1838_v33 = vsub.f32 %v1820_v61, %v1835_v0  ;;  %v1839_v49 = vsub.f32 %v1821_v53, %v1835_v0 }
 0x4e7   :  { %v1840_v44 = vmul.f32 %v1836_v36, %v1836_v36  ;;  %v1841_v37 = vmul.f32 %v1837_v54, %v1837_v54  ;;  %v1842_v13 = vmul.f32 %v1838_v33, %v1838_v33  ;;  %v1843_v15 = vmul.f32 %v1839_v49, %v1839_v49 }
 0x4e9   :  { %v1844_v14 = vsel %vm967_vm10, %v1840_v44, 0.0  ;;  %v1845_v63 = vsel %vm967_vm10, %v1841_v37, 0.0  ;;  %v1849_v3 = vsel %vm967_vm10, %v1842_v13, 0.0  ;;  %v1850_v21 = vsel %vm967_vm10, %v1843_v15, 0.0 }
 0x4ea   :  { %v1846_v40 = vadd.f32 %v1845_v63, %v1844_v14  ;;  %v1851_v60 = vadd.f32 %v1850_v21, %v1849_v3 }
 0x4ec   :  { %1847 = vadd.xlane.f32.xlu0 %v1846_v40 }
 0x4f0   :  { %1852 = vadd.xlane.f32.xlu0 %v1851_v60 }
 0x506   :  { %1874 = vperm.xlu0 %1987, %v1871_v24  }
 0x579   :  { %v1848_v43 = vpop.xlane.xlu0 %1847 }
 0x57a   :  { %v1854_v25 = vsel %vm967_vm10, %v1848_v43, 0.0 }
 0x57d   :  { %v1853_v8 = vpop.xlane.xlu0 %1852 }
 0x57e   :  { %v1855_v1 = vsel %vm967_vm10, %v1853_v8, 0.0 }
 0x57f   :  { %v1856_v5 = vadd.f32 %v1855_v1, %v1854_v25 }
 0x581   :  { %v1857_v6 = vmul.f32 0.001953125, %v1856_v5 }
 0x583   :  { %v1858_v28 = vadd.f32 1e-05, %v1857_v6 }
 0x585   :  { %1993 = vrsqrt.f32 %v1858_v28  ;;  %v1875_v29 = vpop.permute.xlu0 %1874 }
 0x58f   :  { %v1994_v27 = vpop.eup %1993 }
 0x590   :  { %v1861_v46 = vmul.f32 %v1994_v27, %v1860_v22 }
 0x592   :  { %1864 = vperm.xlu1 %1988, %v1861_v46  }
 0x611   :  { %v1865_v18 = vpop.permute.xlu1 %1864 }
 0x612   :  { %v1867_v56 = vmul.f32 %v1865_v18, %v1836_v36  ;;  %v1868_v20 = vmul.f32 %v1865_v18, %v1837_v54  ;;  %v1869_v9 = vmul.f32 %v1865_v18, %v1838_v33  ;;  %v1870_v23 = vmul.f32 %v1865_v18, %v1839_v49 }
 0x614   :  { %v1877_v41 = vadd.f32 %v1875_v29, %v1867_v56  ;;  %v1878_v42 = vadd.f32 %v1875_v29, %v1868_v20  ;;  %v1879_v50 = vadd.f32 %v1875_v29, %v1869_v9  ;;  %v1880_v48 = vadd.f32 %v1875_v29, %v1870_v23 }
 0x616   :  { %v1885_v7 = vcombine.low %v1877_v41, %v1878_v42  ;;  %v1886_v47 = vcombine.low %v1879_v50, %v1880_v48 }
 0x618   :  { %v1889_v39 = vadd.f32 %v1995_v17, %v1885_v7  ;;  %v1890_v30 = vadd.f32 %v1996_v10, %v1886_v47 }
 0x61a   :  { %1891 = vst [vmem:[#allocation2] sm:$0xff] %v1889_v39  ;;  %1892 = vst [vmem:[#allocation2 + $0x8] sm:$0xff] %v1890_v30 }
 0x61b   :  { %2008 = shalt.err (!%p2005_p4)
}
 0x61c   :  { %s2009_s6 = scalar_lea.hbm %s3614_s9, 256 }
 0x61d   :  { %p2010_p5 = scmp.ne.s32.totalorder %s3614_s9, %s2009_s6  ;;  %p2013_p6 = scmp.lt.u32.totalorder %s2009_s6, %s3614_s9 }
 0x61f   :  { %p2015_p7 = pnand %p2013_p6, %p2010_p5 }
 0x621   :  { %2018 = shalt.err (!%p2015_p7)
}
 0x622   :  { %s2027_s16 = smov 128   ;;  %s2028_s17 = smov 8  }
 0x623   :  { %1904 = dma.vmem_to_hbm [thread:$0]  %s1899_s29, 256, %s3614_s9, [#allocation3], %s2027_s16, %s2027_s16, %s2028_s17  }
 0x624   :  { %2019 = dma.done.wait [#allocation3], 256  }
 0x625   :  { %2020 = vsyncadd [#allocation3], 4294967040 }
 0x626   :  { %1908 = vsyncpa [#allocation3], 1 }

</bundles_post_ra>
